<compile_context>
chip_gen: v5e
topology: v5e:2x2
jax: 0.10.0
libtpu: 0.0.40
codegen_flags: <defaults>
</compile_context>

<pallas_src>
import functools
import math

import jax
import jax.numpy as jnp
from jax.experimental import pallas as pl
from jax.experimental.pallas import tpu as pltpu


# ----------------------------------------------------------------------------
# Fused forward kernel (one grid step == one batch element)
# ----------------------------------------------------------------------------
def _fused_forward_kernel(
    src_ref, tgt_ref, pe_ref,
    lin_w, lin_b,
    e_qkv_w, e_qkv_b, e_ao_w, e_ao_b, e_ln1_g, e_ln1_b,
    e_ff1_w, e_ff1_b, e_ff2_w, e_ff2_b, e_ln2_g, e_ln2_b,
    d_qkv_w, d_qkv_b, d_so_w, d_so_b, d_ln1_g, d_ln1_b,
    d_cq_w, d_cq_b, d_ckv_w, d_ckv_b, d_co_w, d_co_b, d_ln2_g, d_ln2_b,
    d_ff1_w, d_ff1_b, d_ff2_w, d_ff2_b, d_ln3_g, d_ln3_b,
    out_w, out_b,
    o_ref,
    *, d, nhead,
):
    f32 = jnp.float32
    eps = 1e-5
    hd = d // nhead
    sqrt_d = math.sqrt(d)
    attn_scale = 1.0 / math.sqrt(hd)

    def linproj(x, w_ref, b_ref):
        return jnp.dot(x, w_ref[...], preferred_element_type=f32) + b_ref[...]

    def layer_norm(h, g_ref, b_ref):
        mean = jnp.mean(h, axis=-1, keepdims=True)
        var = jnp.mean((h - mean) ** 2, axis=-1, keepdims=True)
        return (h - mean) * jax.lax.rsqrt(var + eps) * g_ref[...] + b_ref[...]

    def mha_outproj(q2d, k2d, v2d, wout_ref, bout_ref):
        # Per-head scaled-dot-product attention with the output projection folded
        # into the head loop: concat_h(o_h) @ Wout == sum_h o_h @ Wout[h*hd:(h+1)*hd].
        # Static lane slices, no head transpose / concat materialised.
        wout = wout_ref[...]
        acc = None
        for h in range(nhead):
            sl = slice(h * hd, (h + 1) * hd)
            qh = q2d[:, sl] * attn_scale
            kh = k2d[:, sl]
            vh = v2d[:, sl]
            s = jax.lax.dot_general(qh, kh, (((1,), (1,)), ((), ())),
                                    preferred_element_type=f32)            # (Sq, Sk)
            m = jnp.max(s, axis=-1, keepdims=True)
            p = jnp.exp(s - m)
            p = p * pl.reciprocal(jnp.sum(p, axis=-1, keepdims=True), approx=True)
            oh = jnp.dot(p, vh, preferred_element_type=f32)                # (Sq, hd)
            contrib = jnp.dot(oh, wout[sl, :], preferred_element_type=f32)  # (Sq, d)
            acc = contrib if acc is None else acc + contrib
        return acc + bout_ref[...]

    # ---- source path: in-projection * sqrt(d_model) + positional encoding -------
    s = linproj(src_ref[0], lin_w, lin_b) * sqrt_d + pe_ref[...]

    # ---- encoder layer (post-norm) -----------------------------------------------
    qkv = linproj(s, e_qkv_w, e_qkv_b)                                      # (S, 3d)
    a = mha_outproj(qkv[:, :d], qkv[:, d:2 * d], qkv[:, 2 * d:], e_ao_w, e_ao_b)
    x = layer_norm(s + a, e_ln1_g, e_ln1_b)
    hdn = jnp.maximum(linproj(x, e_ff1_w, e_ff1_b), 0.0)
    hdn = linproj(hdn, e_ff2_w, e_ff2_b)
    memory = layer_norm(x + hdn, e_ln2_g, e_ln2_b)

    # ---- target path (no positional encoding in the PyTorch forward) ------------
    t = linproj(tgt_ref[0], lin_w, lin_b) * sqrt_d

    # ---- decoder layer (post-norm) -----------------------------------------------
    qkv = linproj(t, d_qkv_w, d_qkv_b)
    a = mha_outproj(qkv[:, :d], qkv[:, d:2 * d], qkv[:, 2 * d:], d_so_w, d_so_b)
    x = layer_norm(t + a, d_ln1_g, d_ln1_b)

    q = linproj(x, d_cq_w, d_cq_b)
    kv = linproj(memory, d_ckv_w, d_ckv_b)                                  # (S, 2d)
    a = mha_outproj(q, kv[:, :d], kv[:, d:], d_co_w, d_co_b)
    x = layer_norm(x + a, d_ln2_g, d_ln2_b)

    hdn = jnp.maximum(linproj(x, d_ff1_w, d_ff1_b), 0.0)
    hdn = linproj(hdn, d_ff2_w, d_ff2_b)
    x = layer_norm(x + hdn, d_ln3_g, d_ln3_b)

    # ---- output projection + sigmoid ----------------------------------------------
    o_ref[0] = jax.nn.sigmoid(linproj(x, out_w, out_b))


# ----------------------------------------------------------------------------
# Forward wrapper (jitted; single pallas_call)
# ----------------------------------------------------------------------------
@functools.partial(jax.jit, static_argnames=("feats", "scale"))
def transformer_basicv2_scaling_forward(src, tgt, packed, *, feats, scale=16):
    # TODO(synk): dropout layers (p=0.1) omitted — forward matches eval() mode.
    B, S, _ = src.shape
    d = scale * feats
    nhead = feats

    data_spec = pl.BlockSpec((1, S, feats), lambda i: (i, 0, 0))
    w_specs = [pl.BlockSpec(p.shape, lambda i: (0, 0)) for p in packed]

    return pl.pallas_call(
        functools.partial(_fused_forward_kernel, d=d, nhead=nhead),
        grid=(B,),
        in_specs=[data_spec, data_spec] + w_specs,
        out_specs=pl.BlockSpec((1, S, feats), lambda i: (i, 0, 0)),
        out_shape=jax.ShapeDtypeStruct((B, S, feats), jnp.float32),
        compiler_params=pltpu.CompilerParams(
            dimension_semantics=("parallel",)),
    )(src, tgt, *packed)


# ----------------------------------------------------------------------------
# Parameter construction / one-time packing (pre-transposed (K, N) weights)
# ----------------------------------------------------------------------------
def positional_encoding(seq_len, d_model):
    pos = jnp.arange(seq_len, dtype=jnp.float32)[:, None]
    div = jnp.exp(jnp.arange(0, d_model, 2, dtype=jnp.float32)
                  * (-math.log(10000.0) / d_model))
    pe = jnp.zeros((seq_len, d_model), jnp.float32)
    pe = pe.at[:, 0::2].set(jnp.sin(pos * div))
    pe = pe.at[:, 1::2].set(jnp.cos(pos * div))
    return pe


def init_params(key, feats, scale=16, dff=256):
    d = scale * feats
    keys = iter(jax.random.split(key, 64))

    def w(shape, s=0.05):
        return jax.random.normal(next(keys), shape, jnp.float32) * s

    def attn_params():
        return dict(in_w=w((3 * d, d)), in_b=w((3 * d,)),
                    out_w=w((d, d)), out_b=w((d,)))

    def ln():
        return jnp.ones((d,), jnp.float32), jnp.zeros((d,), jnp.float32)

    enc_ln1_g, enc_ln1_b = ln(); enc_ln2_g, enc_ln2_b = ln()
    dec_ln1_g, dec_ln1_b = ln(); dec_ln2_g, dec_ln2_b = ln(); dec_ln3_g, dec_ln3_b = ln()

    return dict(
        lin_w=w((d, feats)), lin_b=w((d,)),          # nn.Linear(feats, 16*feats)
        out_w=w((feats, d)), out_b=w((feats,)),      # nn.Linear(16*feats, feats)
        enc=dict(self_attn=attn_params(),
                 ff1_w=w((dff, d)), ff1_b=w((dff,)),
                 ff2_w=w((d, dff)), ff2_b=w((d,)),
                 ln1_g=enc_ln1_g, ln1_b=enc_ln1_b,
                 ln2_g=enc_ln2_g, ln2_b=enc_ln2_b),
        dec=dict(self_attn=attn_params(), cross_attn=attn_params(),
                 ff1_w=w((dff, d)), ff1_b=w((dff,)),
                 ff2_w=w((d, dff)), ff2_b=w((d,)),
                 ln1_g=dec_ln1_g, ln1_b=dec_ln1_b,
                 ln2_g=dec_ln2_g, ln2_b=dec_ln2_b,
                 ln3_g=dec_ln3_g, ln3_b=dec_ln3_b),
    )


def pack_params(params, feats, window, scale=16):
    """One-time packing: PyTorch (N,K) weights -> (K,N); biases/LN as (1,N);
    positional encoding precomputed; cross-attn kv projection fused (d, 2d)."""
    d = scale * feats

    def t(w):
        return jnp.asarray(w, jnp.float32).T

    def b(v):
        return jnp.asarray(v, jnp.float32).reshape(1, -1)

    enc, dec = params["enc"], params["dec"]
    ea, dsa, dca = enc["self_attn"], dec["self_attn"], dec["cross_attn"]

    pe = positional_encoding(window, d)                      # (S, d), constant

    return (
        pe,
        t(params["lin_w"]), b(params["lin_b"]),
        # encoder layer
        t(ea["in_w"]), b(ea["in_b"]),                        # fused QKV (d, 3d)
        t(ea["out_w"]), b(ea["out_b"]),
        b(enc["ln1_g"]), b(enc["ln1_b"]),
        t(enc["ff1_w"]), b(enc["ff1_b"]),
        t(enc["ff2_w"]), b(enc["ff2_b"]),
        b(enc["ln2_g"]), b(enc["ln2_b"]),
        # decoder layer
        t(dsa["in_w"]), b(dsa["in_b"]),                      # fused QKV (d, 3d)
        t(dsa["out_w"]), b(dsa["out_b"]),
        b(dec["ln1_g"]), b(dec["ln1_b"]),
        t(dca["in_w"][:d]), b(dca["in_b"][:d]),              # cross q proj (d, d)
        t(dca["in_w"][d:]), b(dca["in_b"][d:]),              # cross kv proj (d, 2d)
        t(dca["out_w"]), b(dca["out_b"]),
        b(dec["ln2_g"]), b(dec["ln2_b"]),
        t(dec["ff1_w"]), b(dec["ff1_b"]),
        t(dec["ff2_w"]), b(dec["ff2_b"]),
        b(dec["ln3_g"]), b(dec["ln3_b"]),
        # output head
        t(params["out_w"]), b(params["out_b"]),
    )


if __name__ == "__main__":
    FEATS = 4          # nhead = feats = 4, d_model = 16*feats = 64, head_dim = 16
    WINDOW = 8         # sequence length
    BATCH = 2

    key = jax.random.PRNGKey(0)
    k_params, k_src, k_tgt = jax.random.split(key, 3)

    params = init_params(k_params, FEATS)
    packed = pack_params(params, FEATS, WINDOW)

    src = jax.random.normal(k_src, (BATCH, WINDOW, FEATS), jnp.float32)
    tgt = jax.random.normal(k_tgt, (BATCH, WINDOW, FEATS), jnp.float32)

    out = transformer_basicv2_scaling_forward(src, tgt, packed, feats=FEATS)
    out = jax.block_until_ready(out)

    assert out.shape == (BATCH, WINDOW, FEATS)
    assert bool(jnp.all(jnp.isfinite(out)))
    assert bool(jnp.all((out >= 0.0) & (out <= 1.0)))   # sigmoid range
    print("KERNEL_OK")
</pallas_src>

<mosaic_0001>
module attributes {stable_mosaic.version = 11 : i64} {
  func.func @_fused_forward_kernel(%arg0: i32, %arg1: memref<1x8x4xf32, #tpu.memory_space<vmem>>, %arg2: memref<1x8x4xf32, #tpu.memory_space<vmem>>, %arg3: memref<8x64xf32, #tpu.memory_space<vmem>>, %arg4: memref<4x64xf32, #tpu.memory_space<vmem>>, %arg5: memref<1x64xf32, #tpu.memory_space<vmem>>, %arg6: memref<64x192xf32, #tpu.memory_space<vmem>>, %arg7: memref<1x192xf32, #tpu.memory_space<vmem>>, %arg8: memref<64x64xf32, #tpu.memory_space<vmem>>, %arg9: memref<1x64xf32, #tpu.memory_space<vmem>>, %arg10: memref<1x64xf32, #tpu.memory_space<vmem>>, %arg11: memref<1x64xf32, #tpu.memory_space<vmem>>, %arg12: memref<64x256xf32, #tpu.memory_space<vmem>>, %arg13: memref<1x256xf32, #tpu.memory_space<vmem>>, %arg14: memref<256x64xf32, #tpu.memory_space<vmem>>, %arg15: memref<1x64xf32, #tpu.memory_space<vmem>>, %arg16: memref<1x64xf32, #tpu.memory_space<vmem>>, %arg17: memref<1x64xf32, #tpu.memory_space<vmem>>, %arg18: memref<64x192xf32, #tpu.memory_space<vmem>>, %arg19: memref<1x192xf32, #tpu.memory_space<vmem>>, %arg20: memref<64x64xf32, #tpu.memory_space<vmem>>, %arg21: memref<1x64xf32, #tpu.memory_space<vmem>>, %arg22: memref<1x64xf32, #tpu.memory_space<vmem>>, %arg23: memref<1x64xf32, #tpu.memory_space<vmem>>, %arg24: memref<64x64xf32, #tpu.memory_space<vmem>>, %arg25: memref<1x64xf32, #tpu.memory_space<vmem>>, %arg26: memref<64x128xf32, #tpu.memory_space<vmem>>, %arg27: memref<1x128xf32, #tpu.memory_space<vmem>>, %arg28: memref<64x64xf32, #tpu.memory_space<vmem>>, %arg29: memref<1x64xf32, #tpu.memory_space<vmem>>, %arg30: memref<1x64xf32, #tpu.memory_space<vmem>>, %arg31: memref<1x64xf32, #tpu.memory_space<vmem>>, %arg32: memref<64x256xf32, #tpu.memory_space<vmem>>, %arg33: memref<1x256xf32, #tpu.memory_space<vmem>>, %arg34: memref<256x64xf32, #tpu.memory_space<vmem>>, %arg35: memref<1x64xf32, #tpu.memory_space<vmem>>, %arg36: memref<1x64xf32, #tpu.memory_space<vmem>>, %arg37: memref<1x64xf32, #tpu.memory_space<vmem>>, %arg38: memref<64x4xf32, #tpu.memory_space<vmem>>, %arg39: memref<1x4xf32, #tpu.memory_space<vmem>>, %arg40: memref<1x8x4xf32, #tpu.memory_space<vmem>>) attributes {dimension_semantics = [#tpu.dimension_semantics<parallel>], iteration_bounds = array<i64: 2>, scalar_prefetch = 0 : i64, scratch_operands = 0 : i64, tpu.core_type = #tpu.core_type<tc>, window_params = [{transform_indices = @transform_0, window_bounds = array<i64: 1, 8, 4>}, {transform_indices = @transform_1, window_bounds = array<i64: 1, 8, 4>}, {pipeline_mode = #tpu.pipeline_mode<synchronous>, transform_indices = @transform_2, window_bounds = array<i64: 8, 64>}, {pipeline_mode = #tpu.pipeline_mode<synchronous>, transform_indices = @transform_3, window_bounds = array<i64: 4, 64>}, {pipeline_mode = #tpu.pipeline_mode<synchronous>, transform_indices = @transform_4, window_bounds = array<i64: 1, 64>}, {pipeline_mode = #tpu.pipeline_mode<synchronous>, transform_indices = @transform_5, window_bounds = array<i64: 64, 192>}, {pipeline_mode = #tpu.pipeline_mode<synchronous>, transform_indices = @transform_6, window_bounds = array<i64: 1, 192>}, {pipeline_mode = #tpu.pipeline_mode<synchronous>, transform_indices = @transform_7, window_bounds = array<i64: 64, 64>}, {pipeline_mode = #tpu.pipeline_mode<synchronous>, transform_indices = @transform_8, window_bounds = array<i64: 1, 64>}, {pipeline_mode = #tpu.pipeline_mode<synchronous>, transform_indices = @transform_9, window_bounds = array<i64: 1, 64>}, {pipeline_mode = #tpu.pipeline_mode<synchronous>, transform_indices = @transform_10, window_bounds = array<i64: 1, 64>}, {pipeline_mode = #tpu.pipeline_mode<synchronous>, transform_indices = @transform_11, window_bounds = array<i64: 64, 256>}, {pipeline_mode = #tpu.pipeline_mode<synchronous>, transform_indices = @transform_12, window_bounds = array<i64: 1, 256>}, {pipeline_mode = #tpu.pipeline_mode<synchronous>, transform_indices = @transform_13, window_bounds = array<i64: 256, 64>}, {pipeline_mode = #tpu.pipeline_mode<synchronous>, transform_indices = @transform_14, window_bounds = array<i64: 1, 64>}, {pipeline_mode = #tpu.pipeline_mode<synchronous>, transform_indices = @transform_15, window_bounds = array<i64: 1, 64>}, {pipeline_mode = #tpu.pipeline_mode<synchronous>, transform_indices = @transform_16, window_bounds = array<i64: 1, 64>}, {pipeline_mode = #tpu.pipeline_mode<synchronous>, transform_indices = @transform_17, window_bounds = array<i64: 64, 192>}, {pipeline_mode = #tpu.pipeline_mode<synchronous>, transform_indices = @transform_18, window_bounds = array<i64: 1, 192>}, {pipeline_mode = #tpu.pipeline_mode<synchronous>, transform_indices = @transform_19, window_bounds = array<i64: 64, 64>}, {pipeline_mode = #tpu.pipeline_mode<synchronous>, transform_indices = @transform_20, window_bounds = array<i64: 1, 64>}, {pipeline_mode = #tpu.pipeline_mode<synchronous>, transform_indices = @transform_21, window_bounds = array<i64: 1, 64>}, {pipeline_mode = #tpu.pipeline_mode<synchronous>, transform_indices = @transform_22, window_bounds = array<i64: 1, 64>}, {pipeline_mode = #tpu.pipeline_mode<synchronous>, transform_indices = @transform_23, window_bounds = array<i64: 64, 64>}, {pipeline_mode = #tpu.pipeline_mode<synchronous>, transform_indices = @transform_24, window_bounds = array<i64: 1, 64>}, {pipeline_mode = #tpu.pipeline_mode<synchronous>, transform_indices = @transform_25, window_bounds = array<i64: 64, 128>}, {pipeline_mode = #tpu.pipeline_mode<synchronous>, transform_indices = @transform_26, window_bounds = array<i64: 1, 128>}, {pipeline_mode = #tpu.pipeline_mode<synchronous>, transform_indices = @transform_27, window_bounds = array<i64: 64, 64>}, {pipeline_mode = #tpu.pipeline_mode<synchronous>, transform_indices = @transform_28, window_bounds = array<i64: 1, 64>}, {pipeline_mode = #tpu.pipeline_mode<synchronous>, transform_indices = @transform_29, window_bounds = array<i64: 1, 64>}, {pipeline_mode = #tpu.pipeline_mode<synchronous>, transform_indices = @transform_30, window_bounds = array<i64: 1, 64>}, {pipeline_mode = #tpu.pipeline_mode<synchronous>, transform_indices = @transform_31, window_bounds = array<i64: 64, 256>}, {pipeline_mode = #tpu.pipeline_mode<synchronous>, transform_indices = @transform_32, window_bounds = array<i64: 1, 256>}, {pipeline_mode = #tpu.pipeline_mode<synchronous>, transform_indices = @transform_33, window_bounds = array<i64: 256, 64>}, {pipeline_mode = #tpu.pipeline_mode<synchronous>, transform_indices = @transform_34, window_bounds = array<i64: 1, 64>}, {pipeline_mode = #tpu.pipeline_mode<synchronous>, transform_indices = @transform_35, window_bounds = array<i64: 1, 64>}, {pipeline_mode = #tpu.pipeline_mode<synchronous>, transform_indices = @transform_36, window_bounds = array<i64: 1, 64>}, {pipeline_mode = #tpu.pipeline_mode<synchronous>, transform_indices = @transform_37, window_bounds = array<i64: 64, 4>}, {pipeline_mode = #tpu.pipeline_mode<synchronous>, transform_indices = @transform_38, window_bounds = array<i64: 1, 4>}, {transform_indices = @transform_39, window_bounds = array<i64: 1, 8, 4>}]} {
    %c0 = arith.constant 0 : index
    %c0_0 = arith.constant 0 : index
    %c0_1 = arith.constant 0 : index
    %0 = vector.load %arg1[%c0, %c0_0, %c0_1] : memref<1x8x4xf32, #tpu.memory_space<vmem>>, vector<1x8x4xf32>
    %1 = vector.shape_cast %0 : vector<1x8x4xf32> to vector<8x4xf32>
    %c0_2 = arith.constant 0 : index
    %c0_3 = arith.constant 0 : index
    %2 = vector.load %arg4[%c0_2, %c0_3] : memref<4x64xf32, #tpu.memory_space<vmem>>, vector<4x64xf32>
    %cst = arith.constant dense<0.000000e+00> : vector<8x64xf32>
    %3 = tpu.matmul %1, %2, %cst {dimension_numbers = #tpu.dot_dimension_numbers<[1], [0], [0], [1], [0, 0, 1, 1], [], []>} : vector<8x4xf32>, vector<4x64xf32>, vector<8x64xf32> -> vector<8x64xf32>
    %c0_4 = arith.constant 0 : index
    %c0_5 = arith.constant 0 : index
    %4 = vector.load %arg5[%c0_4, %c0_5] : memref<1x64xf32, #tpu.memory_space<vmem>>, vector<1x64xf32>
    %5 = vector.broadcast %4 : vector<1x64xf32> to vector<8x64xf32>
    %6 = arith.addf %3, %5 : vector<8x64xf32>
    %cst_6 = arith.constant 8.000000e+00 : f32
    %7 = vector.broadcast %cst_6 : f32 to vector<8x64xf32>
    %8 = arith.mulf %6, %7 : vector<8x64xf32>
    %c0_7 = arith.constant 0 : index
    %c0_8 = arith.constant 0 : index
    %9 = vector.load %arg3[%c0_7, %c0_8] : memref<8x64xf32, #tpu.memory_space<vmem>>, vector<8x64xf32>
    %10 = arith.addf %8, %9 : vector<8x64xf32>
    %c0_9 = arith.constant 0 : index
    %c0_10 = arith.constant 0 : index
    %11 = vector.load %arg6[%c0_9, %c0_10] : memref<64x192xf32, #tpu.memory_space<vmem>>, vector<64x192xf32>
    %cst_11 = arith.constant dense<0.000000e+00> : vector<8x192xf32>
    %12 = tpu.matmul %10, %11, %cst_11 {dimension_numbers = #tpu.dot_dimension_numbers<[1], [0], [0], [1], [0, 0, 1, 1], [], []>} : vector<8x64xf32>, vector<64x192xf32>, vector<8x192xf32> -> vector<8x192xf32>
    %c0_12 = arith.constant 0 : index
    %c0_13 = arith.constant 0 : index
    %13 = vector.load %arg7[%c0_12, %c0_13] : memref<1x192xf32, #tpu.memory_space<vmem>>, vector<1x192xf32>
    %14 = vector.broadcast %13 : vector<1x192xf32> to vector<8x192xf32>
    %15 = arith.addf %12, %14 : vector<8x192xf32>
    %16 = vector.extract_strided_slice %15 {offsets = [0, 0], sizes = [8, 64], strides = [1, 1]} : vector<8x192xf32> to vector<8x64xf32>
    %17 = vector.extract_strided_slice %15 {offsets = [0, 64], sizes = [8, 64], strides = [1, 1]} : vector<8x192xf32> to vector<8x64xf32>
    %18 = vector.extract_strided_slice %15 {offsets = [0, 128], sizes = [8, 64], strides = [1, 1]} : vector<8x192xf32> to vector<8x64xf32>
    %c0_14 = arith.constant 0 : index
    %c0_15 = arith.constant 0 : index
    %19 = vector.load %arg8[%c0_14, %c0_15] : memref<64x64xf32, #tpu.memory_space<vmem>>, vector<64x64xf32>
    %20 = vector.extract_strided_slice %16 {offsets = [0, 0], sizes = [8, 16], strides = [1, 1]} : vector<8x64xf32> to vector<8x16xf32>
    %cst_16 = arith.constant 2.500000e-01 : f32
    %21 = vector.broadcast %cst_16 : f32 to vector<8x16xf32>
    %22 = arith.mulf %20, %21 : vector<8x16xf32>
    %23 = vector.extract_strided_slice %17 {offsets = [0, 0], sizes = [8, 16], strides = [1, 1]} : vector<8x64xf32> to vector<8x16xf32>
    %24 = vector.extract_strided_slice %18 {offsets = [0, 0], sizes = [8, 16], strides = [1, 1]} : vector<8x64xf32> to vector<8x16xf32>
    %cst_17 = arith.constant dense<0.000000e+00> : vector<8x8xf32>
    %25 = tpu.matmul %22, %23, %cst_17 {dimension_numbers = #tpu.dot_dimension_numbers<[1], [1], [0], [0], [0, 0, 1, 0], [], []>} : vector<8x16xf32>, vector<8x16xf32>, vector<8x8xf32> -> vector<8x8xf32>
    %cst_18 = arith.constant dense<0xFF800000> : vector<8xf32>
    %26 = vector.multi_reduction <maximumf>, %25, %cst_18 [1] : vector<8x8xf32> to vector<8xf32>
    %27 = vector.shape_cast %26 : vector<8xf32> to vector<8x1xf32>
    %28 = vector.broadcast %27 : vector<8x1xf32> to vector<8x8xf32>
    %29 = arith.subf %25, %28 : vector<8x8xf32>
    %30 = math.exp %29 : vector<8x8xf32>
    %cst_19 = arith.constant dense<0.000000e+00> : vector<8xf32>
    %31 = vector.multi_reduction <add>, %30, %cst_19 [1] : vector<8x8xf32> to vector<8xf32>
    %32 = vector.shape_cast %31 : vector<8xf32> to vector<8x1xf32>
    %33 = tpu.reciprocal %32 {approx = true} : vector<8x1xf32> -> vector<8x1xf32>
    %34 = vector.broadcast %33 : vector<8x1xf32> to vector<8x8xf32>
    %35 = arith.mulf %30, %34 : vector<8x8xf32>
    %cst_20 = arith.constant dense<0.000000e+00> : vector<8x16xf32>
    %36 = tpu.matmul %35, %24, %cst_20 {dimension_numbers = #tpu.dot_dimension_numbers<[1], [0], [0], [1], [0, 0, 1, 1], [], []>} : vector<8x8xf32>, vector<8x16xf32>, vector<8x16xf32> -> vector<8x16xf32>
    %37 = vector.extract_strided_slice %19 {offsets = [0, 0], sizes = [16, 64], strides = [1, 1]} : vector<64x64xf32> to vector<16x64xf32>
    %cst_21 = arith.constant dense<0.000000e+00> : vector<8x64xf32>
    %38 = tpu.matmul %36, %37, %cst_21 {dimension_numbers = #tpu.dot_dimension_numbers<[1], [0], [0], [1], [0, 0, 1, 1], [], []>} : vector<8x16xf32>, vector<16x64xf32>, vector<8x64xf32> -> vector<8x64xf32>
    %39 = vector.extract_strided_slice %16 {offsets = [0, 16], sizes = [8, 16], strides = [1, 1]} : vector<8x64xf32> to vector<8x16xf32>
    %cst_22 = arith.constant 2.500000e-01 : f32
    %40 = vector.broadcast %cst_22 : f32 to vector<8x16xf32>
    %41 = arith.mulf %39, %40 : vector<8x16xf32>
    %42 = vector.extract_strided_slice %17 {offsets = [0, 16], sizes = [8, 16], strides = [1, 1]} : vector<8x64xf32> to vector<8x16xf32>
    %43 = vector.extract_strided_slice %18 {offsets = [0, 16], sizes = [8, 16], strides = [1, 1]} : vector<8x64xf32> to vector<8x16xf32>
    %cst_23 = arith.constant dense<0.000000e+00> : vector<8x8xf32>
    %44 = tpu.matmul %41, %42, %cst_23 {dimension_numbers = #tpu.dot_dimension_numbers<[1], [1], [0], [0], [0, 0, 1, 0], [], []>} : vector<8x16xf32>, vector<8x16xf32>, vector<8x8xf32> -> vector<8x8xf32>
    %cst_24 = arith.constant dense<0xFF800000> : vector<8xf32>
    %45 = vector.multi_reduction <maximumf>, %44, %cst_24 [1] : vector<8x8xf32> to vector<8xf32>
    %46 = vector.shape_cast %45 : vector<8xf32> to vector<8x1xf32>
    %47 = vector.broadcast %46 : vector<8x1xf32> to vector<8x8xf32>
    %48 = arith.subf %44, %47 : vector<8x8xf32>
    %49 = math.exp %48 : vector<8x8xf32>
    %cst_25 = arith.constant dense<0.000000e+00> : vector<8xf32>
    %50 = vector.multi_reduction <add>, %49, %cst_25 [1] : vector<8x8xf32> to vector<8xf32>
    %51 = vector.shape_cast %50 : vector<8xf32> to vector<8x1xf32>
    %52 = tpu.reciprocal %51 {approx = true} : vector<8x1xf32> -> vector<8x1xf32>
    %53 = vector.broadcast %52 : vector<8x1xf32> to vector<8x8xf32>
    %54 = arith.mulf %49, %53 : vector<8x8xf32>
    %cst_26 = arith.constant dense<0.000000e+00> : vector<8x16xf32>
    %55 = tpu.matmul %54, %43, %cst_26 {dimension_numbers = #tpu.dot_dimension_numbers<[1], [0], [0], [1], [0, 0, 1, 1], [], []>} : vector<8x8xf32>, vector<8x16xf32>, vector<8x16xf32> -> vector<8x16xf32>
    %56 = vector.extract_strided_slice %19 {offsets = [16, 0], sizes = [16, 64], strides = [1, 1]} : vector<64x64xf32> to vector<16x64xf32>
    %cst_27 = arith.constant dense<0.000000e+00> : vector<8x64xf32>
    %57 = tpu.matmul %55, %56, %cst_27 {dimension_numbers = #tpu.dot_dimension_numbers<[1], [0], [0], [1], [0, 0, 1, 1], [], []>} : vector<8x16xf32>, vector<16x64xf32>, vector<8x64xf32> -> vector<8x64xf32>
    %58 = arith.addf %38, %57 : vector<8x64xf32>
    %59 = vector.extract_strided_slice %16 {offsets = [0, 32], sizes = [8, 16], strides = [1, 1]} : vector<8x64xf32> to vector<8x16xf32>
    %cst_28 = arith.constant 2.500000e-01 : f32
    %60 = vector.broadcast %cst_28 : f32 to vector<8x16xf32>
    %61 = arith.mulf %59, %60 : vector<8x16xf32>
    %62 = vector.extract_strided_slice %17 {offsets = [0, 32], sizes = [8, 16], strides = [1, 1]} : vector<8x64xf32> to vector<8x16xf32>
    %63 = vector.extract_strided_slice %18 {offsets = [0, 32], sizes = [8, 16], strides = [1, 1]} : vector<8x64xf32> to vector<8x16xf32>
    %cst_29 = arith.constant dense<0.000000e+00> : vector<8x8xf32>
    %64 = tpu.matmul %61, %62, %cst_29 {dimension_numbers = #tpu.dot_dimension_numbers<[1], [1], [0], [0], [0, 0, 1, 0], [], []>} : vector<8x16xf32>, vector<8x16xf32>, vector<8x8xf32> -> vector<8x8xf32>
    %cst_30 = arith.constant dense<0xFF800000> : vector<8xf32>
    %65 = vector.multi_reduction <maximumf>, %64, %cst_30 [1] : vector<8x8xf32> to vector<8xf32>
    %66 = vector.shape_cast %65 : vector<8xf32> to vector<8x1xf32>
    %67 = vector.broadcast %66 : vector<8x1xf32> to vector<8x8xf32>
    %68 = arith.subf %64, %67 : vector<8x8xf32>
    %69 = math.exp %68 : vector<8x8xf32>
    %cst_31 = arith.constant dense<0.000000e+00> : vector<8xf32>
    %70 = vector.multi_reduction <add>, %69, %cst_31 [1] : vector<8x8xf32> to vector<8xf32>
    %71 = vector.shape_cast %70 : vector<8xf32> to vector<8x1xf32>
    %72 = tpu.reciprocal %71 {approx = true} : vector<8x1xf32> -> vector<8x1xf32>
    %73 = vector.broadcast %72 : vector<8x1xf32> to vector<8x8xf32>
    %74 = arith.mulf %69, %73 : vector<8x8xf32>
    %cst_32 = arith.constant dense<0.000000e+00> : vector<8x16xf32>
    %75 = tpu.matmul %74, %63, %cst_32 {dimension_numbers = #tpu.dot_dimension_numbers<[1], [0], [0], [1], [0, 0, 1, 1], [], []>} : vector<8x8xf32>, vector<8x16xf32>, vector<8x16xf32> -> vector<8x16xf32>
    %76 = vector.extract_strided_slice %19 {offsets = [32, 0], sizes = [16, 64], strides = [1, 1]} : vector<64x64xf32> to vector<16x64xf32>
    %cst_33 = arith.constant dense<0.000000e+00> : vector<8x64xf32>
    %77 = tpu.matmul %75, %76, %cst_33 {dimension_numbers = #tpu.dot_dimension_numbers<[1], [0], [0], [1], [0, 0, 1, 1], [], []>} : vector<8x16xf32>, vector<16x64xf32>, vector<8x64xf32> -> vector<8x64xf32>
    %78 = arith.addf %58, %77 : vector<8x64xf32>
    %79 = vector.extract_strided_slice %16 {offsets = [0, 48], sizes = [8, 16], strides = [1, 1]} : vector<8x64xf32> to vector<8x16xf32>
    %cst_34 = arith.constant 2.500000e-01 : f32
    %80 = vector.broadcast %cst_34 : f32 to vector<8x16xf32>
    %81 = arith.mulf %79, %80 : vector<8x16xf32>
    %82 = vector.extract_strided_slice %17 {offsets = [0, 48], sizes = [8, 16], strides = [1, 1]} : vector<8x64xf32> to vector<8x16xf32>
    %83 = vector.extract_strided_slice %18 {offsets = [0, 48], sizes = [8, 16], strides = [1, 1]} : vector<8x64xf32> to vector<8x16xf32>
    %cst_35 = arith.constant dense<0.000000e+00> : vector<8x8xf32>
    %84 = tpu.matmul %81, %82, %cst_35 {dimension_numbers = #tpu.dot_dimension_numbers<[1], [1], [0], [0], [0, 0, 1, 0], [], []>} : vector<8x16xf32>, vector<8x16xf32>, vector<8x8xf32> -> vector<8x8xf32>
    %cst_36 = arith.constant dense<0xFF800000> : vector<8xf32>
    %85 = vector.multi_reduction <maximumf>, %84, %cst_36 [1] : vector<8x8xf32> to vector<8xf32>
    %86 = vector.shape_cast %85 : vector<8xf32> to vector<8x1xf32>
    %87 = vector.broadcast %86 : vector<8x1xf32> to vector<8x8xf32>
    %88 = arith.subf %84, %87 : vector<8x8xf32>
    %89 = math.exp %88 : vector<8x8xf32>
    %cst_37 = arith.constant dense<0.000000e+00> : vector<8xf32>
    %90 = vector.multi_reduction <add>, %89, %cst_37 [1] : vector<8x8xf32> to vector<8xf32>
    %91 = vector.shape_cast %90 : vector<8xf32> to vector<8x1xf32>
    %92 = tpu.reciprocal %91 {approx = true} : vector<8x1xf32> -> vector<8x1xf32>
    %93 = vector.broadcast %92 : vector<8x1xf32> to vector<8x8xf32>
    %94 = arith.mulf %89, %93 : vector<8x8xf32>
    %cst_38 = arith.constant dense<0.000000e+00> : vector<8x16xf32>
    %95 = tpu.matmul %94, %83, %cst_38 {dimension_numbers = #tpu.dot_dimension_numbers<[1], [0], [0], [1], [0, 0, 1, 1], [], []>} : vector<8x8xf32>, vector<8x16xf32>, vector<8x16xf32> -> vector<8x16xf32>
    %96 = vector.extract_strided_slice %19 {offsets = [48, 0], sizes = [16, 64], strides = [1, 1]} : vector<64x64xf32> to vector<16x64xf32>
    %cst_39 = arith.constant dense<0.000000e+00> : vector<8x64xf32>
    %97 = tpu.matmul %95, %96, %cst_39 {dimension_numbers = #tpu.dot_dimension_numbers<[1], [0], [0], [1], [0, 0, 1, 1], [], []>} : vector<8x16xf32>, vector<16x64xf32>, vector<8x64xf32> -> vector<8x64xf32>
    %98 = arith.addf %78, %97 : vector<8x64xf32>
    %c0_40 = arith.constant 0 : index
    %c0_41 = arith.constant 0 : index
    %99 = vector.load %arg9[%c0_40, %c0_41] : memref<1x64xf32, #tpu.memory_space<vmem>>, vector<1x64xf32>
    %100 = vector.broadcast %99 : vector<1x64xf32> to vector<8x64xf32>
    %101 = arith.addf %98, %100 : vector<8x64xf32>
    %102 = arith.addf %10, %101 : vector<8x64xf32>
    %cst_42 = arith.constant dense<0.000000e+00> : vector<8xf32>
    %103 = vector.multi_reduction <add>, %102, %cst_42 [1] : vector<8x64xf32> to vector<8xf32>
    %104 = vector.shape_cast %103 : vector<8xf32> to vector<8x1xf32>
    %cst_43 = arith.constant 6.400000e+01 : f32
    %105 = vector.broadcast %cst_43 : f32 to vector<8x1xf32>
    %106 = arith.divf %104, %105 : vector<8x1xf32>
    %107 = vector.broadcast %106 : vector<8x1xf32> to vector<8x64xf32>
    %108 = arith.subf %102, %107 : vector<8x64xf32>
    %109 = arith.mulf %108, %108 : vector<8x64xf32>
    %cst_44 = arith.constant dense<0.000000e+00> : vector<8xf32>
    %110 = vector.multi_reduction <add>, %109, %cst_44 [1] : vector<8x64xf32> to vector<8xf32>
    %111 = vector.shape_cast %110 : vector<8xf32> to vector<8x1xf32>
    %cst_45 = arith.constant 6.400000e+01 : f32
    %112 = vector.broadcast %cst_45 : f32 to vector<8x1xf32>
    %113 = arith.divf %111, %112 : vector<8x1xf32>
    %114 = vector.broadcast %106 : vector<8x1xf32> to vector<8x64xf32>
    %115 = arith.subf %102, %114 : vector<8x64xf32>
    %cst_46 = arith.constant 9.99999974E-6 : f32
    %116 = vector.broadcast %cst_46 : f32 to vector<8x1xf32>
    %117 = arith.addf %113, %116 : vector<8x1xf32>
    %118 = math.rsqrt %117 : vector<8x1xf32>
    %119 = vector.broadcast %118 : vector<8x1xf32> to vector<8x64xf32>
    %120 = arith.mulf %115, %119 : vector<8x64xf32>
    %c0_47 = arith.constant 0 : index
    %c0_48 = arith.constant 0 : index
    %121 = vector.load %arg10[%c0_47, %c0_48] : memref<1x64xf32, #tpu.memory_space<vmem>>, vector<1x64xf32>
    %122 = vector.broadcast %121 : vector<1x64xf32> to vector<8x64xf32>
    %123 = arith.mulf %120, %122 : vector<8x64xf32>
    %c0_49 = arith.constant 0 : index
    %c0_50 = arith.constant 0 : index
    %124 = vector.load %arg11[%c0_49, %c0_50] : memref<1x64xf32, #tpu.memory_space<vmem>>, vector<1x64xf32>
    %125 = vector.broadcast %124 : vector<1x64xf32> to vector<8x64xf32>
    %126 = arith.addf %123, %125 : vector<8x64xf32>
    %c0_51 = arith.constant 0 : index
    %c0_52 = arith.constant 0 : index
    %127 = vector.load %arg12[%c0_51, %c0_52] : memref<64x256xf32, #tpu.memory_space<vmem>>, vector<64x256xf32>
    %cst_53 = arith.constant dense<0.000000e+00> : vector<8x256xf32>
    %128 = tpu.matmul %126, %127, %cst_53 {dimension_numbers = #tpu.dot_dimension_numbers<[1], [0], [0], [1], [0, 0, 1, 1], [], []>} : vector<8x64xf32>, vector<64x256xf32>, vector<8x256xf32> -> vector<8x256xf32>
    %c0_54 = arith.constant 0 : index
    %c0_55 = arith.constant 0 : index
    %129 = vector.load %arg13[%c0_54, %c0_55] : memref<1x256xf32, #tpu.memory_space<vmem>>, vector<1x256xf32>
    %130 = vector.broadcast %129 : vector<1x256xf32> to vector<8x256xf32>
    %131 = arith.addf %128, %130 : vector<8x256xf32>
    %cst_56 = arith.constant 0.000000e+00 : f32
    %132 = vector.broadcast %cst_56 : f32 to vector<8x256xf32>
    %133 = arith.maximumf %131, %132 : vector<8x256xf32>
    %c0_57 = arith.constant 0 : index
    %c0_58 = arith.constant 0 : index
    %134 = vector.load %arg14[%c0_57, %c0_58] : memref<256x64xf32, #tpu.memory_space<vmem>>, vector<256x64xf32>
    %cst_59 = arith.constant dense<0.000000e+00> : vector<8x64xf32>
    %135 = tpu.matmul %133, %134, %cst_59 {dimension_numbers = #tpu.dot_dimension_numbers<[1], [0], [0], [1], [0, 0, 1, 1], [], []>} : vector<8x256xf32>, vector<256x64xf32>, vector<8x64xf32> -> vector<8x64xf32>
    %c0_60 = arith.constant 0 : index
    %c0_61 = arith.constant 0 : index
    %136 = vector.load %arg15[%c0_60, %c0_61] : memref<1x64xf32, #tpu.memory_space<vmem>>, vector<1x64xf32>
    %137 = vector.broadcast %136 : vector<1x64xf32> to vector<8x64xf32>
    %138 = arith.addf %135, %137 : vector<8x64xf32>
    %139 = arith.addf %126, %138 : vector<8x64xf32>
    %cst_62 = arith.constant dense<0.000000e+00> : vector<8xf32>
    %140 = vector.multi_reduction <add>, %139, %cst_62 [1] : vector<8x64xf32> to vector<8xf32>
    %141 = vector.shape_cast %140 : vector<8xf32> to vector<8x1xf32>
    %cst_63 = arith.constant 6.400000e+01 : f32
    %142 = vector.broadcast %cst_63 : f32 to vector<8x1xf32>
    %143 = arith.divf %141, %142 : vector<8x1xf32>
    %144 = vector.broadcast %143 : vector<8x1xf32> to vector<8x64xf32>
    %145 = arith.subf %139, %144 : vector<8x64xf32>
    %146 = arith.mulf %145, %145 : vector<8x64xf32>
    %cst_64 = arith.constant dense<0.000000e+00> : vector<8xf32>
    %147 = vector.multi_reduction <add>, %146, %cst_64 [1] : vector<8x64xf32> to vector<8xf32>
    %148 = vector.shape_cast %147 : vector<8xf32> to vector<8x1xf32>
    %cst_65 = arith.constant 6.400000e+01 : f32
    %149 = vector.broadcast %cst_65 : f32 to vector<8x1xf32>
    %150 = arith.divf %148, %149 : vector<8x1xf32>
    %151 = vector.broadcast %143 : vector<8x1xf32> to vector<8x64xf32>
    %152 = arith.subf %139, %151 : vector<8x64xf32>
    %cst_66 = arith.constant 9.99999974E-6 : f32
    %153 = vector.broadcast %cst_66 : f32 to vector<8x1xf32>
    %154 = arith.addf %150, %153 : vector<8x1xf32>
    %155 = math.rsqrt %154 : vector<8x1xf32>
    %156 = vector.broadcast %155 : vector<8x1xf32> to vector<8x64xf32>
    %157 = arith.mulf %152, %156 : vector<8x64xf32>
    %c0_67 = arith.constant 0 : index
    %c0_68 = arith.constant 0 : index
    %158 = vector.load %arg16[%c0_67, %c0_68] : memref<1x64xf32, #tpu.memory_space<vmem>>, vector<1x64xf32>
    %159 = vector.broadcast %158 : vector<1x64xf32> to vector<8x64xf32>
    %160 = arith.mulf %157, %159 : vector<8x64xf32>
    %c0_69 = arith.constant 0 : index
    %c0_70 = arith.constant 0 : index
    %161 = vector.load %arg17[%c0_69, %c0_70] : memref<1x64xf32, #tpu.memory_space<vmem>>, vector<1x64xf32>
    %162 = vector.broadcast %161 : vector<1x64xf32> to vector<8x64xf32>
    %163 = arith.addf %160, %162 : vector<8x64xf32>
    %c0_71 = arith.constant 0 : index
    %c0_72 = arith.constant 0 : index
    %c0_73 = arith.constant 0 : index
    %164 = vector.load %arg2[%c0_71, %c0_72, %c0_73] : memref<1x8x4xf32, #tpu.memory_space<vmem>>, vector<1x8x4xf32>
    %165 = vector.shape_cast %164 : vector<1x8x4xf32> to vector<8x4xf32>
    %c0_74 = arith.constant 0 : index
    %c0_75 = arith.constant 0 : index
    %166 = vector.load %arg4[%c0_74, %c0_75] : memref<4x64xf32, #tpu.memory_space<vmem>>, vector<4x64xf32>
    %cst_76 = arith.constant dense<0.000000e+00> : vector<8x64xf32>
    %167 = tpu.matmul %165, %166, %cst_76 {dimension_numbers = #tpu.dot_dimension_numbers<[1], [0], [0], [1], [0, 0, 1, 1], [], []>} : vector<8x4xf32>, vector<4x64xf32>, vector<8x64xf32> -> vector<8x64xf32>
    %c0_77 = arith.constant 0 : index
    %c0_78 = arith.constant 0 : index
    %168 = vector.load %arg5[%c0_77, %c0_78] : memref<1x64xf32, #tpu.memory_space<vmem>>, vector<1x64xf32>
    %169 = vector.broadcast %168 : vector<1x64xf32> to vector<8x64xf32>
    %170 = arith.addf %167, %169 : vector<8x64xf32>
    %cst_79 = arith.constant 8.000000e+00 : f32
    %171 = vector.broadcast %cst_79 : f32 to vector<8x64xf32>
    %172 = arith.mulf %170, %171 : vector<8x64xf32>
    %c0_80 = arith.constant 0 : index
    %c0_81 = arith.constant 0 : index
    %173 = vector.load %arg18[%c0_80, %c0_81] : memref<64x192xf32, #tpu.memory_space<vmem>>, vector<64x192xf32>
    %cst_82 = arith.constant dense<0.000000e+00> : vector<8x192xf32>
    %174 = tpu.matmul %172, %173, %cst_82 {dimension_numbers = #tpu.dot_dimension_numbers<[1], [0], [0], [1], [0, 0, 1, 1], [], []>} : vector<8x64xf32>, vector<64x192xf32>, vector<8x192xf32> -> vector<8x192xf32>
    %c0_83 = arith.constant 0 : index
    %c0_84 = arith.constant 0 : index
    %175 = vector.load %arg19[%c0_83, %c0_84] : memref<1x192xf32, #tpu.memory_space<vmem>>, vector<1x192xf32>
    %176 = vector.broadcast %175 : vector<1x192xf32> to vector<8x192xf32>
    %177 = arith.addf %174, %176 : vector<8x192xf32>
    %178 = vector.extract_strided_slice %177 {offsets = [0, 0], sizes = [8, 64], strides = [1, 1]} : vector<8x192xf32> to vector<8x64xf32>
    %179 = vector.extract_strided_slice %177 {offsets = [0, 64], sizes = [8, 64], strides = [1, 1]} : vector<8x192xf32> to vector<8x64xf32>
    %180 = vector.extract_strided_slice %177 {offsets = [0, 128], sizes = [8, 64], strides = [1, 1]} : vector<8x192xf32> to vector<8x64xf32>
    %c0_85 = arith.constant 0 : index
    %c0_86 = arith.constant 0 : index
    %181 = vector.load %arg20[%c0_85, %c0_86] : memref<64x64xf32, #tpu.memory_space<vmem>>, vector<64x64xf32>
    %182 = vector.extract_strided_slice %178 {offsets = [0, 0], sizes = [8, 16], strides = [1, 1]} : vector<8x64xf32> to vector<8x16xf32>
    %cst_87 = arith.constant 2.500000e-01 : f32
    %183 = vector.broadcast %cst_87 : f32 to vector<8x16xf32>
    %184 = arith.mulf %182, %183 : vector<8x16xf32>
    %185 = vector.extract_strided_slice %179 {offsets = [0, 0], sizes = [8, 16], strides = [1, 1]} : vector<8x64xf32> to vector<8x16xf32>
    %186 = vector.extract_strided_slice %180 {offsets = [0, 0], sizes = [8, 16], strides = [1, 1]} : vector<8x64xf32> to vector<8x16xf32>
    %cst_88 = arith.constant dense<0.000000e+00> : vector<8x8xf32>
    %187 = tpu.matmul %184, %185, %cst_88 {dimension_numbers = #tpu.dot_dimension_numbers<[1], [1], [0], [0], [0, 0, 1, 0], [], []>} : vector<8x16xf32>, vector<8x16xf32>, vector<8x8xf32> -> vector<8x8xf32>
    %cst_89 = arith.constant dense<0xFF800000> : vector<8xf32>
    %188 = vector.multi_reduction <maximumf>, %187, %cst_89 [1] : vector<8x8xf32> to vector<8xf32>
    %189 = vector.shape_cast %188 : vector<8xf32> to vector<8x1xf32>
    %190 = vector.broadcast %189 : vector<8x1xf32> to vector<8x8xf32>
    %191 = arith.subf %187, %190 : vector<8x8xf32>
    %192 = math.exp %191 : vector<8x8xf32>
    %cst_90 = arith.constant dense<0.000000e+00> : vector<8xf32>
    %193 = vector.multi_reduction <add>, %192, %cst_90 [1] : vector<8x8xf32> to vector<8xf32>
    %194 = vector.shape_cast %193 : vector<8xf32> to vector<8x1xf32>
    %195 = tpu.reciprocal %194 {approx = true} : vector<8x1xf32> -> vector<8x1xf32>
    %196 = vector.broadcast %195 : vector<8x1xf32> to vector<8x8xf32>
    %197 = arith.mulf %192, %196 : vector<8x8xf32>
    %cst_91 = arith.constant dense<0.000000e+00> : vector<8x16xf32>
    %198 = tpu.matmul %197, %186, %cst_91 {dimension_numbers = #tpu.dot_dimension_numbers<[1], [0], [0], [1], [0, 0, 1, 1], [], []>} : vector<8x8xf32>, vector<8x16xf32>, vector<8x16xf32> -> vector<8x16xf32>
    %199 = vector.extract_strided_slice %181 {offsets = [0, 0], sizes = [16, 64], strides = [1, 1]} : vector<64x64xf32> to vector<16x64xf32>
    %cst_92 = arith.constant dense<0.000000e+00> : vector<8x64xf32>
    %200 = tpu.matmul %198, %199, %cst_92 {dimension_numbers = #tpu.dot_dimension_numbers<[1], [0], [0], [1], [0, 0, 1, 1], [], []>} : vector<8x16xf32>, vector<16x64xf32>, vector<8x64xf32> -> vector<8x64xf32>
    %201 = vector.extract_strided_slice %178 {offsets = [0, 16], sizes = [8, 16], strides = [1, 1]} : vector<8x64xf32> to vector<8x16xf32>
    %cst_93 = arith.constant 2.500000e-01 : f32
    %202 = vector.broadcast %cst_93 : f32 to vector<8x16xf32>
    %203 = arith.mulf %201, %202 : vector<8x16xf32>
    %204 = vector.extract_strided_slice %179 {offsets = [0, 16], sizes = [8, 16], strides = [1, 1]} : vector<8x64xf32> to vector<8x16xf32>
    %205 = vector.extract_strided_slice %180 {offsets = [0, 16], sizes = [8, 16], strides = [1, 1]} : vector<8x64xf32> to vector<8x16xf32>
    %cst_94 = arith.constant dense<0.000000e+00> : vector<8x8xf32>
    %206 = tpu.matmul %203, %204, %cst_94 {dimension_numbers = #tpu.dot_dimension_numbers<[1], [1], [0], [0], [0, 0, 1, 0], [], []>} : vector<8x16xf32>, vector<8x16xf32>, vector<8x8xf32> -> vector<8x8xf32>
    %cst_95 = arith.constant dense<0xFF800000> : vector<8xf32>
    %207 = vector.multi_reduction <maximumf>, %206, %cst_95 [1] : vector<8x8xf32> to vector<8xf32>
    %208 = vector.shape_cast %207 : vector<8xf32> to vector<8x1xf32>
    %209 = vector.broadcast %208 : vector<8x1xf32> to vector<8x8xf32>
    %210 = arith.subf %206, %209 : vector<8x8xf32>
    %211 = math.exp %210 : vector<8x8xf32>
    %cst_96 = arith.constant dense<0.000000e+00> : vector<8xf32>
    %212 = vector.multi_reduction <add>, %211, %cst_96 [1] : vector<8x8xf32> to vector<8xf32>
    %213 = vector.shape_cast %212 : vector<8xf32> to vector<8x1xf32>
    %214 = tpu.reciprocal %213 {approx = true} : vector<8x1xf32> -> vector<8x1xf32>
    %215 = vector.broadcast %214 : vector<8x1xf32> to vector<8x8xf32>
    %216 = arith.mulf %211, %215 : vector<8x8xf32>
    %cst_97 = arith.constant dense<0.000000e+00> : vector<8x16xf32>
    %217 = tpu.matmul %216, %205, %cst_97 {dimension_numbers = #tpu.dot_dimension_numbers<[1], [0], [0], [1], [0, 0, 1, 1], [], []>} : vector<8x8xf32>, vector<8x16xf32>, vector<8x16xf32> -> vector<8x16xf32>
    %218 = vector.extract_strided_slice %181 {offsets = [16, 0], sizes = [16, 64], strides = [1, 1]} : vector<64x64xf32> to vector<16x64xf32>
    %cst_98 = arith.constant dense<0.000000e+00> : vector<8x64xf32>
    %219 = tpu.matmul %217, %218, %cst_98 {dimension_numbers = #tpu.dot_dimension_numbers<[1], [0], [0], [1], [0, 0, 1, 1], [], []>} : vector<8x16xf32>, vector<16x64xf32>, vector<8x64xf32> -> vector<8x64xf32>
    %220 = arith.addf %200, %219 : vector<8x64xf32>
    %221 = vector.extract_strided_slice %178 {offsets = [0, 32], sizes = [8, 16], strides = [1, 1]} : vector<8x64xf32> to vector<8x16xf32>
    %cst_99 = arith.constant 2.500000e-01 : f32
    %222 = vector.broadcast %cst_99 : f32 to vector<8x16xf32>
    %223 = arith.mulf %221, %222 : vector<8x16xf32>
    %224 = vector.extract_strided_slice %179 {offsets = [0, 32], sizes = [8, 16], strides = [1, 1]} : vector<8x64xf32> to vector<8x16xf32>
    %225 = vector.extract_strided_slice %180 {offsets = [0, 32], sizes = [8, 16], strides = [1, 1]} : vector<8x64xf32> to vector<8x16xf32>
    %cst_100 = arith.constant dense<0.000000e+00> : vector<8x8xf32>
    %226 = tpu.matmul %223, %224, %cst_100 {dimension_numbers = #tpu.dot_dimension_numbers<[1], [1], [0], [0], [0, 0, 1, 0], [], []>} : vector<8x16xf32>, vector<8x16xf32>, vector<8x8xf32> -> vector<8x8xf32>
    %cst_101 = arith.constant dense<0xFF800000> : vector<8xf32>
    %227 = vector.multi_reduction <maximumf>, %226, %cst_101 [1] : vector<8x8xf32> to vector<8xf32>
    %228 = vector.shape_cast %227 : vector<8xf32> to vector<8x1xf32>
    %229 = vector.broadcast %228 : vector<8x1xf32> to vector<8x8xf32>
    %230 = arith.subf %226, %229 : vector<8x8xf32>
    %231 = math.exp %230 : vector<8x8xf32>
    %cst_102 = arith.constant dense<0.000000e+00> : vector<8xf32>
    %232 = vector.multi_reduction <add>, %231, %cst_102 [1] : vector<8x8xf32> to vector<8xf32>
    %233 = vector.shape_cast %232 : vector<8xf32> to vector<8x1xf32>
    %234 = tpu.reciprocal %233 {approx = true} : vector<8x1xf32> -> vector<8x1xf32>
    %235 = vector.broadcast %234 : vector<8x1xf32> to vector<8x8xf32>
    %236 = arith.mulf %231, %235 : vector<8x8xf32>
    %cst_103 = arith.constant dense<0.000000e+00> : vector<8x16xf32>
    %237 = tpu.matmul %236, %225, %cst_103 {dimension_numbers = #tpu.dot_dimension_numbers<[1], [0], [0], [1], [0, 0, 1, 1], [], []>} : vector<8x8xf32>, vector<8x16xf32>, vector<8x16xf32> -> vector<8x16xf32>
    %238 = vector.extract_strided_slice %181 {offsets = [32, 0], sizes = [16, 64], strides = [1, 1]} : vector<64x64xf32> to vector<16x64xf32>
    %cst_104 = arith.constant dense<0.000000e+00> : vector<8x64xf32>
    %239 = tpu.matmul %237, %238, %cst_104 {dimension_numbers = #tpu.dot_dimension_numbers<[1], [0], [0], [1], [0, 0, 1, 1], [], []>} : vector<8x16xf32>, vector<16x64xf32>, vector<8x64xf32> -> vector<8x64xf32>
    %240 = arith.addf %220, %239 : vector<8x64xf32>
    %241 = vector.extract_strided_slice %178 {offsets = [0, 48], sizes = [8, 16], strides = [1, 1]} : vector<8x64xf32> to vector<8x16xf32>
    %cst_105 = arith.constant 2.500000e-01 : f32
    %242 = vector.broadcast %cst_105 : f32 to vector<8x16xf32>
    %243 = arith.mulf %241, %242 : vector<8x16xf32>
    %244 = vector.extract_strided_slice %179 {offsets = [0, 48], sizes = [8, 16], strides = [1, 1]} : vector<8x64xf32> to vector<8x16xf32>
    %245 = vector.extract_strided_slice %180 {offsets = [0, 48], sizes = [8, 16], strides = [1, 1]} : vector<8x64xf32> to vector<8x16xf32>
    %cst_106 = arith.constant dense<0.000000e+00> : vector<8x8xf32>
    %246 = tpu.matmul %243, %244, %cst_106 {dimension_numbers = #tpu.dot_dimension_numbers<[1], [1], [0], [0], [0, 0, 1, 0], [], []>} : vector<8x16xf32>, vector<8x16xf32>, vector<8x8xf32> -> vector<8x8xf32>
    %cst_107 = arith.constant dense<0xFF800000> : vector<8xf32>
    %247 = vector.multi_reduction <maximumf>, %246, %cst_107 [1] : vector<8x8xf32> to vector<8xf32>
    %248 = vector.shape_cast %247 : vector<8xf32> to vector<8x1xf32>
    %249 = vector.broadcast %248 : vector<8x1xf32> to vector<8x8xf32>
    %250 = arith.subf %246, %249 : vector<8x8xf32>
    %251 = math.exp %250 : vector<8x8xf32>
    %cst_108 = arith.constant dense<0.000000e+00> : vector<8xf32>
    %252 = vector.multi_reduction <add>, %251, %cst_108 [1] : vector<8x8xf32> to vector<8xf32>
    %253 = vector.shape_cast %252 : vector<8xf32> to vector<8x1xf32>
    %254 = tpu.reciprocal %253 {approx = true} : vector<8x1xf32> -> vector<8x1xf32>
    %255 = vector.broadcast %254 : vector<8x1xf32> to vector<8x8xf32>
    %256 = arith.mulf %251, %255 : vector<8x8xf32>
    %cst_109 = arith.constant dense<0.000000e+00> : vector<8x16xf32>
    %257 = tpu.matmul %256, %245, %cst_109 {dimension_numbers = #tpu.dot_dimension_numbers<[1], [0], [0], [1], [0, 0, 1, 1], [], []>} : vector<8x8xf32>, vector<8x16xf32>, vector<8x16xf32> -> vector<8x16xf32>
    %258 = vector.extract_strided_slice %181 {offsets = [48, 0], sizes = [16, 64], strides = [1, 1]} : vector<64x64xf32> to vector<16x64xf32>
    %cst_110 = arith.constant dense<0.000000e+00> : vector<8x64xf32>
    %259 = tpu.matmul %257, %258, %cst_110 {dimension_numbers = #tpu.dot_dimension_numbers<[1], [0], [0], [1], [0, 0, 1, 1], [], []>} : vector<8x16xf32>, vector<16x64xf32>, vector<8x64xf32> -> vector<8x64xf32>
    %260 = arith.addf %240, %259 : vector<8x64xf32>
    %c0_111 = arith.constant 0 : index
    %c0_112 = arith.constant 0 : index
    %261 = vector.load %arg21[%c0_111, %c0_112] : memref<1x64xf32, #tpu.memory_space<vmem>>, vector<1x64xf32>
    %262 = vector.broadcast %261 : vector<1x64xf32> to vector<8x64xf32>
    %263 = arith.addf %260, %262 : vector<8x64xf32>
    %264 = arith.addf %172, %263 : vector<8x64xf32>
    %cst_113 = arith.constant dense<0.000000e+00> : vector<8xf32>
    %265 = vector.multi_reduction <add>, %264, %cst_113 [1] : vector<8x64xf32> to vector<8xf32>
    %266 = vector.shape_cast %265 : vector<8xf32> to vector<8x1xf32>
    %cst_114 = arith.constant 6.400000e+01 : f32
    %267 = vector.broadcast %cst_114 : f32 to vector<8x1xf32>
    %268 = arith.divf %266, %267 : vector<8x1xf32>
    %269 = vector.broadcast %268 : vector<8x1xf32> to vector<8x64xf32>
    %270 = arith.subf %264, %269 : vector<8x64xf32>
    %271 = arith.mulf %270, %270 : vector<8x64xf32>
    %cst_115 = arith.constant dense<0.000000e+00> : vector<8xf32>
    %272 = vector.multi_reduction <add>, %271, %cst_115 [1] : vector<8x64xf32> to vector<8xf32>
    %273 = vector.shape_cast %272 : vector<8xf32> to vector<8x1xf32>
    %cst_116 = arith.constant 6.400000e+01 : f32
    %274 = vector.broadcast %cst_116 : f32 to vector<8x1xf32>
    %275 = arith.divf %273, %274 : vector<8x1xf32>
    %276 = vector.broadcast %268 : vector<8x1xf32> to vector<8x64xf32>
    %277 = arith.subf %264, %276 : vector<8x64xf32>
    %cst_117 = arith.constant 9.99999974E-6 : f32
    %278 = vector.broadcast %cst_117 : f32 to vector<8x1xf32>
    %279 = arith.addf %275, %278 : vector<8x1xf32>
    %280 = math.rsqrt %279 : vector<8x1xf32>
    %281 = vector.broadcast %280 : vector<8x1xf32> to vector<8x64xf32>
    %282 = arith.mulf %277, %281 : vector<8x64xf32>
    %c0_118 = arith.constant 0 : index
    %c0_119 = arith.constant 0 : index
    %283 = vector.load %arg22[%c0_118, %c0_119] : memref<1x64xf32, #tpu.memory_space<vmem>>, vector<1x64xf32>
    %284 = vector.broadcast %283 : vector<1x64xf32> to vector<8x64xf32>
    %285 = arith.mulf %282, %284 : vector<8x64xf32>
    %c0_120 = arith.constant 0 : index
    %c0_121 = arith.constant 0 : index
    %286 = vector.load %arg23[%c0_120, %c0_121] : memref<1x64xf32, #tpu.memory_space<vmem>>, vector<1x64xf32>
    %287 = vector.broadcast %286 : vector<1x64xf32> to vector<8x64xf32>
    %288 = arith.addf %285, %287 : vector<8x64xf32>
    %c0_122 = arith.constant 0 : index
    %c0_123 = arith.constant 0 : index
    %289 = vector.load %arg24[%c0_122, %c0_123] : memref<64x64xf32, #tpu.memory_space<vmem>>, vector<64x64xf32>
    %cst_124 = arith.constant dense<0.000000e+00> : vector<8x64xf32>
    %290 = tpu.matmul %288, %289, %cst_124 {dimension_numbers = #tpu.dot_dimension_numbers<[1], [0], [0], [1], [0, 0, 1, 1], [], []>} : vector<8x64xf32>, vector<64x64xf32>, vector<8x64xf32> -> vector<8x64xf32>
    %c0_125 = arith.constant 0 : index
    %c0_126 = arith.constant 0 : index
    %291 = vector.load %arg25[%c0_125, %c0_126] : memref<1x64xf32, #tpu.memory_space<vmem>>, vector<1x64xf32>
    %292 = vector.broadcast %291 : vector<1x64xf32> to vector<8x64xf32>
    %293 = arith.addf %290, %292 : vector<8x64xf32>
    %c0_127 = arith.constant 0 : index
    %c0_128 = arith.constant 0 : index
    %294 = vector.load %arg26[%c0_127, %c0_128] : memref<64x128xf32, #tpu.memory_space<vmem>>, vector<64x128xf32>
    %cst_129 = arith.constant dense<0.000000e+00> : vector<8x128xf32>
    %295 = tpu.matmul %163, %294, %cst_129 {dimension_numbers = #tpu.dot_dimension_numbers<[1], [0], [0], [1], [0, 0, 1, 1], [], []>} : vector<8x64xf32>, vector<64x128xf32>, vector<8x128xf32> -> vector<8x128xf32>
    %c0_130 = arith.constant 0 : index
    %c0_131 = arith.constant 0 : index
    %296 = vector.load %arg27[%c0_130, %c0_131] : memref<1x128xf32, #tpu.memory_space<vmem>>, vector<1x128xf32>
    %297 = vector.broadcast %296 : vector<1x128xf32> to vector<8x128xf32>
    %298 = arith.addf %295, %297 : vector<8x128xf32>
    %299 = vector.extract_strided_slice %298 {offsets = [0, 0], sizes = [8, 64], strides = [1, 1]} : vector<8x128xf32> to vector<8x64xf32>
    %300 = vector.extract_strided_slice %298 {offsets = [0, 64], sizes = [8, 64], strides = [1, 1]} : vector<8x128xf32> to vector<8x64xf32>
    %c0_132 = arith.constant 0 : index
    %c0_133 = arith.constant 0 : index
    %301 = vector.load %arg28[%c0_132, %c0_133] : memref<64x64xf32, #tpu.memory_space<vmem>>, vector<64x64xf32>
    %302 = vector.extract_strided_slice %293 {offsets = [0, 0], sizes = [8, 16], strides = [1, 1]} : vector<8x64xf32> to vector<8x16xf32>
    %cst_134 = arith.constant 2.500000e-01 : f32
    %303 = vector.broadcast %cst_134 : f32 to vector<8x16xf32>
    %304 = arith.mulf %302, %303 : vector<8x16xf32>
    %305 = vector.extract_strided_slice %299 {offsets = [0, 0], sizes = [8, 16], strides = [1, 1]} : vector<8x64xf32> to vector<8x16xf32>
    %306 = vector.extract_strided_slice %300 {offsets = [0, 0], sizes = [8, 16], strides = [1, 1]} : vector<8x64xf32> to vector<8x16xf32>
    %cst_135 = arith.constant dense<0.000000e+00> : vector<8x8xf32>
    %307 = tpu.matmul %304, %305, %cst_135 {dimension_numbers = #tpu.dot_dimension_numbers<[1], [1], [0], [0], [0, 0, 1, 0], [], []>} : vector<8x16xf32>, vector<8x16xf32>, vector<8x8xf32> -> vector<8x8xf32>
    %cst_136 = arith.constant dense<0xFF800000> : vector<8xf32>
    %308 = vector.multi_reduction <maximumf>, %307, %cst_136 [1] : vector<8x8xf32> to vector<8xf32>
    %309 = vector.shape_cast %308 : vector<8xf32> to vector<8x1xf32>
    %310 = vector.broadcast %309 : vector<8x1xf32> to vector<8x8xf32>
    %311 = arith.subf %307, %310 : vector<8x8xf32>
    %312 = math.exp %311 : vector<8x8xf32>
    %cst_137 = arith.constant dense<0.000000e+00> : vector<8xf32>
    %313 = vector.multi_reduction <add>, %312, %cst_137 [1] : vector<8x8xf32> to vector<8xf32>
    %314 = vector.shape_cast %313 : vector<8xf32> to vector<8x1xf32>
    %315 = tpu.reciprocal %314 {approx = true} : vector<8x1xf32> -> vector<8x1xf32>
    %316 = vector.broadcast %315 : vector<8x1xf32> to vector<8x8xf32>
    %317 = arith.mulf %312, %316 : vector<8x8xf32>
    %cst_138 = arith.constant dense<0.000000e+00> : vector<8x16xf32>
    %318 = tpu.matmul %317, %306, %cst_138 {dimension_numbers = #tpu.dot_dimension_numbers<[1], [0], [0], [1], [0, 0, 1, 1], [], []>} : vector<8x8xf32>, vector<8x16xf32>, vector<8x16xf32> -> vector<8x16xf32>
    %319 = vector.extract_strided_slice %301 {offsets = [0, 0], sizes = [16, 64], strides = [1, 1]} : vector<64x64xf32> to vector<16x64xf32>
    %cst_139 = arith.constant dense<0.000000e+00> : vector<8x64xf32>
    %320 = tpu.matmul %318, %319, %cst_139 {dimension_numbers = #tpu.dot_dimension_numbers<[1], [0], [0], [1], [0, 0, 1, 1], [], []>} : vector<8x16xf32>, vector<16x64xf32>, vector<8x64xf32> -> vector<8x64xf32>
    %321 = vector.extract_strided_slice %293 {offsets = [0, 16], sizes = [8, 16], strides = [1, 1]} : vector<8x64xf32> to vector<8x16xf32>
    %cst_140 = arith.constant 2.500000e-01 : f32
    %322 = vector.broadcast %cst_140 : f32 to vector<8x16xf32>
    %323 = arith.mulf %321, %322 : vector<8x16xf32>
    %324 = vector.extract_strided_slice %299 {offsets = [0, 16], sizes = [8, 16], strides = [1, 1]} : vector<8x64xf32> to vector<8x16xf32>
    %325 = vector.extract_strided_slice %300 {offsets = [0, 16], sizes = [8, 16], strides = [1, 1]} : vector<8x64xf32> to vector<8x16xf32>
    %cst_141 = arith.constant dense<0.000000e+00> : vector<8x8xf32>
    %326 = tpu.matmul %323, %324, %cst_141 {dimension_numbers = #tpu.dot_dimension_numbers<[1], [1], [0], [0], [0, 0, 1, 0], [], []>} : vector<8x16xf32>, vector<8x16xf32>, vector<8x8xf32> -> vector<8x8xf32>
    %cst_142 = arith.constant dense<0xFF800000> : vector<8xf32>
    %327 = vector.multi_reduction <maximumf>, %326, %cst_142 [1] : vector<8x8xf32> to vector<8xf32>
    %328 = vector.shape_cast %327 : vector<8xf32> to vector<8x1xf32>
    %329 = vector.broadcast %328 : vector<8x1xf32> to vector<8x8xf32>
    %330 = arith.subf %326, %329 : vector<8x8xf32>
    %331 = math.exp %330 : vector<8x8xf32>
    %cst_143 = arith.constant dense<0.000000e+00> : vector<8xf32>
    %332 = vector.multi_reduction <add>, %331, %cst_143 [1] : vector<8x8xf32> to vector<8xf32>
    %333 = vector.shape_cast %332 : vector<8xf32> to vector<8x1xf32>
    %334 = tpu.reciprocal %333 {approx = true} : vector<8x1xf32> -> vector<8x1xf32>
    %335 = vector.broadcast %334 : vector<8x1xf32> to vector<8x8xf32>
    %336 = arith.mulf %331, %335 : vector<8x8xf32>
    %cst_144 = arith.constant dense<0.000000e+00> : vector<8x16xf32>
    %337 = tpu.matmul %336, %325, %cst_144 {dimension_numbers = #tpu.dot_dimension_numbers<[1], [0], [0], [1], [0, 0, 1, 1], [], []>} : vector<8x8xf32>, vector<8x16xf32>, vector<8x16xf32> -> vector<8x16xf32>
    %338 = vector.extract_strided_slice %301 {offsets = [16, 0], sizes = [16, 64], strides = [1, 1]} : vector<64x64xf32> to vector<16x64xf32>
    %cst_145 = arith.constant dense<0.000000e+00> : vector<8x64xf32>
    %339 = tpu.matmul %337, %338, %cst_145 {dimension_numbers = #tpu.dot_dimension_numbers<[1], [0], [0], [1], [0, 0, 1, 1], [], []>} : vector<8x16xf32>, vector<16x64xf32>, vector<8x64xf32> -> vector<8x64xf32>
    %340 = arith.addf %320, %339 : vector<8x64xf32>
    %341 = vector.extract_strided_slice %293 {offsets = [0, 32], sizes = [8, 16], strides = [1, 1]} : vector<8x64xf32> to vector<8x16xf32>
    %cst_146 = arith.constant 2.500000e-01 : f32
    %342 = vector.broadcast %cst_146 : f32 to vector<8x16xf32>
    %343 = arith.mulf %341, %342 : vector<8x16xf32>
    %344 = vector.extract_strided_slice %299 {offsets = [0, 32], sizes = [8, 16], strides = [1, 1]} : vector<8x64xf32> to vector<8x16xf32>
    %345 = vector.extract_strided_slice %300 {offsets = [0, 32], sizes = [8, 16], strides = [1, 1]} : vector<8x64xf32> to vector<8x16xf32>
    %cst_147 = arith.constant dense<0.000000e+00> : vector<8x8xf32>
    %346 = tpu.matmul %343, %344, %cst_147 {dimension_numbers = #tpu.dot_dimension_numbers<[1], [1], [0], [0], [0, 0, 1, 0], [], []>} : vector<8x16xf32>, vector<8x16xf32>, vector<8x8xf32> -> vector<8x8xf32>
    %cst_148 = arith.constant dense<0xFF800000> : vector<8xf32>
    %347 = vector.multi_reduction <maximumf>, %346, %cst_148 [1] : vector<8x8xf32> to vector<8xf32>
    %348 = vector.shape_cast %347 : vector<8xf32> to vector<8x1xf32>
    %349 = vector.broadcast %348 : vector<8x1xf32> to vector<8x8xf32>
    %350 = arith.subf %346, %349 : vector<8x8xf32>
    %351 = math.exp %350 : vector<8x8xf32>
    %cst_149 = arith.constant dense<0.000000e+00> : vector<8xf32>
    %352 = vector.multi_reduction <add>, %351, %cst_149 [1] : vector<8x8xf32> to vector<8xf32>
    %353 = vector.shape_cast %352 : vector<8xf32> to vector<8x1xf32>
    %354 = tpu.reciprocal %353 {approx = true} : vector<8x1xf32> -> vector<8x1xf32>
    %355 = vector.broadcast %354 : vector<8x1xf32> to vector<8x8xf32>
    %356 = arith.mulf %351, %355 : vector<8x8xf32>
    %cst_150 = arith.constant dense<0.000000e+00> : vector<8x16xf32>
    %357 = tpu.matmul %356, %345, %cst_150 {dimension_numbers = #tpu.dot_dimension_numbers<[1], [0], [0], [1], [0, 0, 1, 1], [], []>} : vector<8x8xf32>, vector<8x16xf32>, vector<8x16xf32> -> vector<8x16xf32>
    %358 = vector.extract_strided_slice %301 {offsets = [32, 0], sizes = [16, 64], strides = [1, 1]} : vector<64x64xf32> to vector<16x64xf32>
    %cst_151 = arith.constant dense<0.000000e+00> : vector<8x64xf32>
    %359 = tpu.matmul %357, %358, %cst_151 {dimension_numbers = #tpu.dot_dimension_numbers<[1], [0], [0], [1], [0, 0, 1, 1], [], []>} : vector<8x16xf32>, vector<16x64xf32>, vector<8x64xf32> -> vector<8x64xf32>
    %360 = arith.addf %340, %359 : vector<8x64xf32>
    %361 = vector.extract_strided_slice %293 {offsets = [0, 48], sizes = [8, 16], strides = [1, 1]} : vector<8x64xf32> to vector<8x16xf32>
    %cst_152 = arith.constant 2.500000e-01 : f32
    %362 = vector.broadcast %cst_152 : f32 to vector<8x16xf32>
    %363 = arith.mulf %361, %362 : vector<8x16xf32>
    %364 = vector.extract_strided_slice %299 {offsets = [0, 48], sizes = [8, 16], strides = [1, 1]} : vector<8x64xf32> to vector<8x16xf32>
    %365 = vector.extract_strided_slice %300 {offsets = [0, 48], sizes = [8, 16], strides = [1, 1]} : vector<8x64xf32> to vector<8x16xf32>
    %cst_153 = arith.constant dense<0.000000e+00> : vector<8x8xf32>
    %366 = tpu.matmul %363, %364, %cst_153 {dimension_numbers = #tpu.dot_dimension_numbers<[1], [1], [0], [0], [0, 0, 1, 0], [], []>} : vector<8x16xf32>, vector<8x16xf32>, vector<8x8xf32> -> vector<8x8xf32>
    %cst_154 = arith.constant dense<0xFF800000> : vector<8xf32>
    %367 = vector.multi_reduction <maximumf>, %366, %cst_154 [1] : vector<8x8xf32> to vector<8xf32>
    %368 = vector.shape_cast %367 : vector<8xf32> to vector<8x1xf32>
    %369 = vector.broadcast %368 : vector<8x1xf32> to vector<8x8xf32>
    %370 = arith.subf %366, %369 : vector<8x8xf32>
    %371 = math.exp %370 : vector<8x8xf32>
    %cst_155 = arith.constant dense<0.000000e+00> : vector<8xf32>
    %372 = vector.multi_reduction <add>, %371, %cst_155 [1] : vector<8x8xf32> to vector<8xf32>
    %373 = vector.shape_cast %372 : vector<8xf32> to vector<8x1xf32>
    %374 = tpu.reciprocal %373 {approx = true} : vector<8x1xf32> -> vector<8x1xf32>
    %375 = vector.broadcast %374 : vector<8x1xf32> to vector<8x8xf32>
    %376 = arith.mulf %371, %375 : vector<8x8xf32>
    %cst_156 = arith.constant dense<0.000000e+00> : vector<8x16xf32>
    %377 = tpu.matmul %376, %365, %cst_156 {dimension_numbers = #tpu.dot_dimension_numbers<[1], [0], [0], [1], [0, 0, 1, 1], [], []>} : vector<8x8xf32>, vector<8x16xf32>, vector<8x16xf32> -> vector<8x16xf32>
    %378 = vector.extract_strided_slice %301 {offsets = [48, 0], sizes = [16, 64], strides = [1, 1]} : vector<64x64xf32> to vector<16x64xf32>
    %cst_157 = arith.constant dense<0.000000e+00> : vector<8x64xf32>
    %379 = tpu.matmul %377, %378, %cst_157 {dimension_numbers = #tpu.dot_dimension_numbers<[1], [0], [0], [1], [0, 0, 1, 1], [], []>} : vector<8x16xf32>, vector<16x64xf32>, vector<8x64xf32> -> vector<8x64xf32>
    %380 = arith.addf %360, %379 : vector<8x64xf32>
    %c0_158 = arith.constant 0 : index
    %c0_159 = arith.constant 0 : index
    %381 = vector.load %arg29[%c0_158, %c0_159] : memref<1x64xf32, #tpu.memory_space<vmem>>, vector<1x64xf32>
    %382 = vector.broadcast %381 : vector<1x64xf32> to vector<8x64xf32>
    %383 = arith.addf %380, %382 : vector<8x64xf32>
    %384 = arith.addf %288, %383 : vector<8x64xf32>
    %cst_160 = arith.constant dense<0.000000e+00> : vector<8xf32>
    %385 = vector.multi_reduction <add>, %384, %cst_160 [1] : vector<8x64xf32> to vector<8xf32>
    %386 = vector.shape_cast %385 : vector<8xf32> to vector<8x1xf32>
    %cst_161 = arith.constant 6.400000e+01 : f32
    %387 = vector.broadcast %cst_161 : f32 to vector<8x1xf32>
    %388 = arith.divf %386, %387 : vector<8x1xf32>
    %389 = vector.broadcast %388 : vector<8x1xf32> to vector<8x64xf32>
    %390 = arith.subf %384, %389 : vector<8x64xf32>
    %391 = arith.mulf %390, %390 : vector<8x64xf32>
    %cst_162 = arith.constant dense<0.000000e+00> : vector<8xf32>
    %392 = vector.multi_reduction <add>, %391, %cst_162 [1] : vector<8x64xf32> to vector<8xf32>
    %393 = vector.shape_cast %392 : vector<8xf32> to vector<8x1xf32>
    %cst_163 = arith.constant 6.400000e+01 : f32
    %394 = vector.broadcast %cst_163 : f32 to vector<8x1xf32>
    %395 = arith.divf %393, %394 : vector<8x1xf32>
    %396 = vector.broadcast %388 : vector<8x1xf32> to vector<8x64xf32>
    %397 = arith.subf %384, %396 : vector<8x64xf32>
    %cst_164 = arith.constant 9.99999974E-6 : f32
    %398 = vector.broadcast %cst_164 : f32 to vector<8x1xf32>
    %399 = arith.addf %395, %398 : vector<8x1xf32>
    %400 = math.rsqrt %399 : vector<8x1xf32>
    %401 = vector.broadcast %400 : vector<8x1xf32> to vector<8x64xf32>
    %402 = arith.mulf %397, %401 : vector<8x64xf32>
    %c0_165 = arith.constant 0 : index
    %c0_166 = arith.constant 0 : index
    %403 = vector.load %arg30[%c0_165, %c0_166] : memref<1x64xf32, #tpu.memory_space<vmem>>, vector<1x64xf32>
    %404 = vector.broadcast %403 : vector<1x64xf32> to vector<8x64xf32>
    %405 = arith.mulf %402, %404 : vector<8x64xf32>
    %c0_167 = arith.constant 0 : index
    %c0_168 = arith.constant 0 : index
    %406 = vector.load %arg31[%c0_167, %c0_168] : memref<1x64xf32, #tpu.memory_space<vmem>>, vector<1x64xf32>
    %407 = vector.broadcast %406 : vector<1x64xf32> to vector<8x64xf32>
    %408 = arith.addf %405, %407 : vector<8x64xf32>
    %c0_169 = arith.constant 0 : index
    %c0_170 = arith.constant 0 : index
    %409 = vector.load %arg32[%c0_169, %c0_170] : memref<64x256xf32, #tpu.memory_space<vmem>>, vector<64x256xf32>
    %cst_171 = arith.constant dense<0.000000e+00> : vector<8x256xf32>
    %410 = tpu.matmul %408, %409, %cst_171 {dimension_numbers = #tpu.dot_dimension_numbers<[1], [0], [0], [1], [0, 0, 1, 1], [], []>} : vector<8x64xf32>, vector<64x256xf32>, vector<8x256xf32> -> vector<8x256xf32>
    %c0_172 = arith.constant 0 : index
    %c0_173 = arith.constant 0 : index
    %411 = vector.load %arg33[%c0_172, %c0_173] : memref<1x256xf32, #tpu.memory_space<vmem>>, vector<1x256xf32>
    %412 = vector.broadcast %411 : vector<1x256xf32> to vector<8x256xf32>
    %413 = arith.addf %410, %412 : vector<8x256xf32>
    %cst_174 = arith.constant 0.000000e+00 : f32
    %414 = vector.broadcast %cst_174 : f32 to vector<8x256xf32>
    %415 = arith.maximumf %413, %414 : vector<8x256xf32>
    %c0_175 = arith.constant 0 : index
    %c0_176 = arith.constant 0 : index
    %416 = vector.load %arg34[%c0_175, %c0_176] : memref<256x64xf32, #tpu.memory_space<vmem>>, vector<256x64xf32>
    %cst_177 = arith.constant dense<0.000000e+00> : vector<8x64xf32>
    %417 = tpu.matmul %415, %416, %cst_177 {dimension_numbers = #tpu.dot_dimension_numbers<[1], [0], [0], [1], [0, 0, 1, 1], [], []>} : vector<8x256xf32>, vector<256x64xf32>, vector<8x64xf32> -> vector<8x64xf32>
    %c0_178 = arith.constant 0 : index
    %c0_179 = arith.constant 0 : index
    %418 = vector.load %arg35[%c0_178, %c0_179] : memref<1x64xf32, #tpu.memory_space<vmem>>, vector<1x64xf32>
    %419 = vector.broadcast %418 : vector<1x64xf32> to vector<8x64xf32>
    %420 = arith.addf %417, %419 : vector<8x64xf32>
    %421 = arith.addf %408, %420 : vector<8x64xf32>
    %cst_180 = arith.constant dense<0.000000e+00> : vector<8xf32>
    %422 = vector.multi_reduction <add>, %421, %cst_180 [1] : vector<8x64xf32> to vector<8xf32>
    %423 = vector.shape_cast %422 : vector<8xf32> to vector<8x1xf32>
    %cst_181 = arith.constant 6.400000e+01 : f32
    %424 = vector.broadcast %cst_181 : f32 to vector<8x1xf32>
    %425 = arith.divf %423, %424 : vector<8x1xf32>
    %426 = vector.broadcast %425 : vector<8x1xf32> to vector<8x64xf32>
    %427 = arith.subf %421, %426 : vector<8x64xf32>
    %428 = arith.mulf %427, %427 : vector<8x64xf32>
    %cst_182 = arith.constant dense<0.000000e+00> : vector<8xf32>
    %429 = vector.multi_reduction <add>, %428, %cst_182 [1] : vector<8x64xf32> to vector<8xf32>
    %430 = vector.shape_cast %429 : vector<8xf32> to vector<8x1xf32>
    %cst_183 = arith.constant 6.400000e+01 : f32
    %431 = vector.broadcast %cst_183 : f32 to vector<8x1xf32>
    %432 = arith.divf %430, %431 : vector<8x1xf32>
    %433 = vector.broadcast %425 : vector<8x1xf32> to vector<8x64xf32>
    %434 = arith.subf %421, %433 : vector<8x64xf32>
    %cst_184 = arith.constant 9.99999974E-6 : f32
    %435 = vector.broadcast %cst_184 : f32 to vector<8x1xf32>
    %436 = arith.addf %432, %435 : vector<8x1xf32>
    %437 = math.rsqrt %436 : vector<8x1xf32>
    %438 = vector.broadcast %437 : vector<8x1xf32> to vector<8x64xf32>
    %439 = arith.mulf %434, %438 : vector<8x64xf32>
    %c0_185 = arith.constant 0 : index
    %c0_186 = arith.constant 0 : index
    %440 = vector.load %arg36[%c0_185, %c0_186] : memref<1x64xf32, #tpu.memory_space<vmem>>, vector<1x64xf32>
    %441 = vector.broadcast %440 : vector<1x64xf32> to vector<8x64xf32>
    %442 = arith.mulf %439, %441 : vector<8x64xf32>
    %c0_187 = arith.constant 0 : index
    %c0_188 = arith.constant 0 : index
    %443 = vector.load %arg37[%c0_187, %c0_188] : memref<1x64xf32, #tpu.memory_space<vmem>>, vector<1x64xf32>
    %444 = vector.broadcast %443 : vector<1x64xf32> to vector<8x64xf32>
    %445 = arith.addf %442, %444 : vector<8x64xf32>
    %c0_189 = arith.constant 0 : index
    %c0_190 = arith.constant 0 : index
    %446 = vector.load %arg38[%c0_189, %c0_190] : memref<64x4xf32, #tpu.memory_space<vmem>>, vector<64x4xf32>
    %cst_191 = arith.constant dense<0.000000e+00> : vector<8x4xf32>
    %447 = tpu.matmul %445, %446, %cst_191 {dimension_numbers = #tpu.dot_dimension_numbers<[1], [0], [0], [1], [0, 0, 1, 1], [], []>} : vector<8x64xf32>, vector<64x4xf32>, vector<8x4xf32> -> vector<8x4xf32>
    %c0_192 = arith.constant 0 : index
    %c0_193 = arith.constant 0 : index
    %448 = vector.load %arg39[%c0_192, %c0_193] : memref<1x4xf32, #tpu.memory_space<vmem>>, vector<1x4xf32>
    %449 = vector.broadcast %448 : vector<1x4xf32> to vector<8x4xf32>
    %450 = arith.addf %447, %449 : vector<8x4xf32>
    %451 = arith.negf %450 : vector<8x4xf32>
    %452 = math.exp %451 : vector<8x4xf32>
    %cst_194 = arith.constant 1.000000e+00 : f32
    %453 = vector.broadcast %cst_194 : f32 to vector<8x4xf32>
    %454 = arith.addf %453, %452 : vector<8x4xf32>
    %455 = arith.divf %453, %454 : vector<8x4xf32>
    %c0_195 = arith.constant 0 : index
    %c0_196 = arith.constant 0 : index
    %c0_197 = arith.constant 0 : index
    %456 = vector.load %arg40[%c0_195, %c0_196, %c0_197] : memref<1x8x4xf32, #tpu.memory_space<vmem>>, vector<1x8x4xf32>
    %457 = vector.shape_cast %456 : vector<1x8x4xf32> to vector<8x4xf32>
    %458 = vector.shape_cast %455 : vector<8x4xf32> to vector<1x8x4xf32>
    tpu.vector_store %arg40[%c0_195, %c0_196, %c0_197], %458 {strides = array<i32>} : memref<1x8x4xf32, #tpu.memory_space<vmem>>, vector<1x8x4xf32>,
    return
  }
  func.func @transform_0(%arg0: i32) -> (i32, i32, i32) {
    %c0_i32 = arith.constant 0 : i32
    %c0_i32_0 = arith.constant 0 : i32
    %c0_i32_1 = arith.constant 0 : i32
    return %arg0, %c0_i32, %c0_i32_0 : i32, i32, i32
  }
  func.func @transform_1(%arg0: i32) -> (i32, i32, i32) {
    %c0_i32 = arith.constant 0 : i32
    %c0_i32_0 = arith.constant 0 : i32
    %c0_i32_1 = arith.constant 0 : i32
    return %arg0, %c0_i32, %c0_i32_0 : i32, i32, i32
  }
  func.func @transform_2(%arg0: i32) -> (i32, i32) {
    %c0_i32 = arith.constant 0 : i32
    %c0_i32_0 = arith.constant 0 : i32
    %c0_i32_1 = arith.constant 0 : i32
    return %c0_i32, %c0_i32_0 : i32, i32
  }
  func.func @transform_3(%arg0: i32) -> (i32, i32) {
    %c0_i32 = arith.constant 0 : i32
    %c0_i32_0 = arith.constant 0 : i32
    %c0_i32_1 = arith.constant 0 : i32
    return %c0_i32, %c0_i32_0 : i32, i32
  }
  func.func @transform_4(%arg0: i32) -> (i32, i32) {
    %c0_i32 = arith.constant 0 : i32
    %c0_i32_0 = arith.constant 0 : i32
    %c0_i32_1 = arith.constant 0 : i32
    return %c0_i32, %c0_i32_0 : i32, i32
  }
  func.func @transform_5(%arg0: i32) -> (i32, i32) {
    %c0_i32 = arith.constant 0 : i32
    %c0_i32_0 = arith.constant 0 : i32
    %c0_i32_1 = arith.constant 0 : i32
    return %c0_i32, %c0_i32_0 : i32, i32
  }
  func.func @transform_6(%arg0: i32) -> (i32, i32) {
    %c0_i32 = arith.constant 0 : i32
    %c0_i32_0 = arith.constant 0 : i32
    %c0_i32_1 = arith.constant 0 : i32
    return %c0_i32, %c0_i32_0 : i32, i32
  }
  func.func @transform_7(%arg0: i32) -> (i32, i32) {
    %c0_i32 = arith.constant 0 : i32
    %c0_i32_0 = arith.constant 0 : i32
    %c0_i32_1 = arith.constant 0 : i32
    return %c0_i32, %c0_i32_0 : i32, i32
  }
  func.func @transform_8(%arg0: i32) -> (i32, i32) {
    %c0_i32 = arith.constant 0 : i32
    %c0_i32_0 = arith.constant 0 : i32
    %c0_i32_1 = arith.constant 0 : i32
    return %c0_i32, %c0_i32_0 : i32, i32
  }
  func.func @transform_9(%arg0: i32) -> (i32, i32) {
    %c0_i32 = arith.constant 0 : i32
    %c0_i32_0 = arith.constant 0 : i32
    %c0_i32_1 = arith.constant 0 : i32
    return %c0_i32, %c0_i32_0 : i32, i32
  }
  func.func @transform_10(%arg0: i32) -> (i32, i32) {
    %c0_i32 = arith.constant 0 : i32
    %c0_i32_0 = arith.constant 0 : i32
    %c0_i32_1 = arith.constant 0 : i32
    return %c0_i32, %c0_i32_0 : i32, i32
  }
  func.func @transform_11(%arg0: i32) -> (i32, i32) {
    %c0_i32 = arith.constant 0 : i32
    %c0_i32_0 = arith.constant 0 : i32
    %c0_i32_1 = arith.constant 0 : i32
    return %c0_i32, %c0_i32_0 : i32, i32
  }
  func.func @transform_12(%arg0: i32) -> (i32, i32) {
    %c0_i32 = arith.constant 0 : i32
    %c0_i32_0 = arith.constant 0 : i32
    %c0_i32_1 = arith.constant 0 : i32
    return %c0_i32, %c0_i32_0 : i32, i32
  }
  func.func @transform_13(%arg0: i32) -> (i32, i32) {
    %c0_i32 = arith.constant 0 : i32
    %c0_i32_0 = arith.constant 0 : i32
    %c0_i32_1 = arith.constant 0 : i32
    return %c0_i32, %c0_i32_0 : i32, i32
  }
  func.func @transform_14(%arg0: i32) -> (i32, i32) {
    %c0_i32 = arith.constant 0 : i32
    %c0_i32_0 = arith.constant 0 : i32
    %c0_i32_1 = arith.constant 0 : i32
    return %c0_i32, %c0_i32_0 : i32, i32
  }
  func.func @transform_15(%arg0: i32) -> (i32, i32) {
    %c0_i32 = arith.constant 0 : i32
    %c0_i32_0 = arith.constant 0 : i32
    %c0_i32_1 = arith.constant 0 : i32
    return %c0_i32, %c0_i32_0 : i32, i32
  }
  func.func @transform_16(%arg0: i32) -> (i32, i32) {
    %c0_i32 = arith.constant 0 : i32
    %c0_i32_0 = arith.constant 0 : i32
    %c0_i32_1 = arith.constant 0 : i32
    return %c0_i32, %c0_i32_0 : i32, i32
  }
  func.func @transform_17(%arg0: i32) -> (i32, i32) {
    %c0_i32 = arith.constant 0 : i32
    %c0_i32_0 = arith.constant 0 : i32
    %c0_i32_1 = arith.constant 0 : i32
    return %c0_i32, %c0_i32_0 : i32, i32
  }
  func.func @transform_18(%arg0: i32) -> (i32, i32) {
    %c0_i32 = arith.constant 0 : i32
    %c0_i32_0 = arith.constant 0 : i32
    %c0_i32_1 = arith.constant 0 : i32
    return %c0_i32, %c0_i32_0 : i32, i32
  }
  func.func @transform_19(%arg0: i32) -> (i32, i32) {
    %c0_i32 = arith.constant 0 : i32
    %c0_i32_0 = arith.constant 0 : i32
    %c0_i32_1 = arith.constant 0 : i32
    return %c0_i32, %c0_i32_0 : i32, i32
  }
  func.func @transform_20(%arg0: i32) -> (i32, i32) {
    %c0_i32 = arith.constant 0 : i32
    %c0_i32_0 = arith.constant 0 : i32
    %c0_i32_1 = arith.constant 0 : i32
    return %c0_i32, %c0_i32_0 : i32, i32
  }
  func.func @transform_21(%arg0: i32) -> (i32, i32) {
    %c0_i32 = arith.constant 0 : i32
    %c0_i32_0 = arith.constant 0 : i32
    %c0_i32_1 = arith.constant 0 : i32
    return %c0_i32, %c0_i32_0 : i32, i32
  }
  func.func @transform_22(%arg0: i32) -> (i32, i32) {
    %c0_i32 = arith.constant 0 : i32
    %c0_i32_0 = arith.constant 0 : i32
    %c0_i32_1 = arith.constant 0 : i32
    return %c0_i32, %c0_i32_0 : i32, i32
  }
  func.func @transform_23(%arg0: i32) -> (i32, i32) {
    %c0_i32 = arith.constant 0 : i32
    %c0_i32_0 = arith.constant 0 : i32
    %c0_i32_1 = arith.constant 0 : i32
    return %c0_i32, %c0_i32_0 : i32, i32
  }
  func.func @transform_24(%arg0: i32) -> (i32, i32) {
    %c0_i32 = arith.constant 0 : i32
    %c0_i32_0 = arith.constant 0 : i32
    %c0_i32_1 = arith.constant 0 : i32
    return %c0_i32, %c0_i32_0 : i32, i32
  }
  func.func @transform_25(%arg0: i32) -> (i32, i32) {
    %c0_i32 = arith.constant 0 : i32
    %c0_i32_0 = arith.constant 0 : i32
    %c0_i32_1 = arith.constant 0 : i32
    return %c0_i32, %c0_i32_0 : i32, i32
  }
  func.func @transform_26(%arg0: i32) -> (i32, i32) {
    %c0_i32 = arith.constant 0 : i32
    %c0_i32_0 = arith.constant 0 : i32
    %c0_i32_1 = arith.constant 0 : i32
    return %c0_i32, %c0_i32_0 : i32, i32
  }
  func.func @transform_27(%arg0: i32) -> (i32, i32) {
    %c0_i32 = arith.constant 0 : i32
    %c0_i32_0 = arith.constant 0 : i32
    %c0_i32_1 = arith.constant 0 : i32
    return %c0_i32, %c0_i32_0 : i32, i32
  }
  func.func @transform_28(%arg0: i32) -> (i32, i32) {
    %c0_i32 = arith.constant 0 : i32
    %c0_i32_0 = arith.constant 0 : i32
    %c0_i32_1 = arith.constant 0 : i32
    return %c0_i32, %c0_i32_0 : i32, i32
  }
  func.func @transform_29(%arg0: i32) -> (i32, i32) {
    %c0_i32 = arith.constant 0 : i32
    %c0_i32_0 = arith.constant 0 : i32
    %c0_i32_1 = arith.constant 0 : i32
    return %c0_i32, %c0_i32_0 : i32, i32
  }
  func.func @transform_30(%arg0: i32) -> (i32, i32) {
    %c0_i32 = arith.constant 0 : i32
    %c0_i32_0 = arith.constant 0 : i32
    %c0_i32_1 = arith.constant 0 : i32
    return %c0_i32, %c0_i32_0 : i32, i32
  }
  func.func @transform_31(%arg0: i32) -> (i32, i32) {
    %c0_i32 = arith.constant 0 : i32
    %c0_i32_0 = arith.constant 0 : i32
    %c0_i32_1 = arith.constant 0 : i32
    return %c0_i32, %c0_i32_0 : i32, i32
  }
  func.func @transform_32(%arg0: i32) -> (i32, i32) {
    %c0_i32 = arith.constant 0 : i32
    %c0_i32_0 = arith.constant 0 : i32
    %c0_i32_1 = arith.constant 0 : i32
    return %c0_i32, %c0_i32_0 : i32, i32
  }
  func.func @transform_33(%arg0: i32) -> (i32, i32) {
    %c0_i32 = arith.constant 0 : i32
    %c0_i32_0 = arith.constant 0 : i32
    %c0_i32_1 = arith.constant 0 : i32
    return %c0_i32, %c0_i32_0 : i32, i32
  }
  func.func @transform_34(%arg0: i32) -> (i32, i32) {
    %c0_i32 = arith.constant 0 : i32
    %c0_i32_0 = arith.constant 0 : i32
    %c0_i32_1 = arith.constant 0 : i32
    return %c0_i32, %c0_i32_0 : i32, i32
  }
  func.func @transform_35(%arg0: i32) -> (i32, i32) {
    %c0_i32 = arith.constant 0 : i32
    %c0_i32_0 = arith.constant 0 : i32
    %c0_i32_1 = arith.constant 0 : i32
    return %c0_i32, %c0_i32_0 : i32, i32
  }
  func.func @transform_36(%arg0: i32) -> (i32, i32) {
    %c0_i32 = arith.constant 0 : i32
    %c0_i32_0 = arith.constant 0 : i32
    %c0_i32_1 = arith.constant 0 : i32
    return %c0_i32, %c0_i32_0 : i32, i32
  }
  func.func @transform_37(%arg0: i32) -> (i32, i32) {
    %c0_i32 = arith.constant 0 : i32
    %c0_i32_0 = arith.constant 0 : i32
    %c0_i32_1 = arith.constant 0 : i32
    return %c0_i32, %c0_i32_0 : i32, i32
  }
  func.func @transform_38(%arg0: i32) -> (i32, i32) {
    %c0_i32 = arith.constant 0 : i32
    %c0_i32_0 = arith.constant 0 : i32
    %c0_i32_1 = arith.constant 0 : i32
    return %c0_i32, %c0_i32_0 : i32, i32
  }
  func.func @transform_39(%arg0: i32) -> (i32, i32, i32) {
    %c0_i32 = arith.constant 0 : i32
    %c0_i32_0 = arith.constant 0 : i32
    %c0_i32_1 = arith.constant 0 : i32
    return %arg0, %c0_i32, %c0_i32_0 : i32, i32, i32
  }
}

</mosaic_0001>

<bundles_post_ra>
// kernel: transformer_basicv2_scaling_forward.1
= control target key start
LH: loop header
LB: loop body
LE: loop exit
PB: predicated region body
PF: predicated region fallthrough
CT: control target
= control target key end

     0   :  { %s4837_s6 = smov 1   ;;  %s4838_s10 = smov 2   ;;  %s5806_s0 = inlined_call_operand.smem [shape: u32[40], index: -1, kind: input, shape index: {}] }
   0x1   :  { %s4915_s5 = sld [smem:[%s5806_s0]]   ;;  %s4839_s14 = smov 3  }
   0x2   :  { %s4920_s9 = sld [smem:[%s5806_s0 + %s4837_s6]]   ;;  %s4840_s18 = smov 4  }
   0x3   :  { %s4925_s13 = sld [smem:[%s5806_s0 + %s4838_s10]]   ;;  %s4841_s22 = smov 5  }
   0x4   :  { %s4930_s17 = sld [smem:[%s5806_s0 + %s4839_s14]]   ;;  %s4842_s26 = smov 6  }
   0x5   :  { %s4935_s21 = sld [smem:[%s5806_s0 + %s4840_s18]]   ;;  %s4843_s30 = smov 7  }
   0x6   :  { %s4940_s25 = sld [smem:[%s5806_s0 + %s4841_s22]]   ;;  %s4844_s4 = smov 8  }
   0x7   :  { %5831 = sst [smem:[#allocation45_spill]] %s4915_s5  ;;  %s4845_s10 = smov 9  }
   0x8   :  { %5832 = sst [smem:[#allocation46_spill]] %s4920_s9  ;;  %s4846_s15 = smov 10  }
   0x9   :  { %5833 = sst [smem:[#allocation47_spill]] %s4925_s13  ;;  %s4847_s20 = smov 11  }
   0xa   :  { %s4945_s29 = sld [smem:[%s5806_s0 + %s4842_s26]]   ;;  %s4848_s26 = smov 12  }
   0xb   :  { %s4950_s3 = sld [smem:[%s5806_s0 + %s4843_s30]]   ;;  %s4849_s1 = smov 13  }
   0xc   :  { %5834 = sst [smem:[#allocation48_spill]] %s4940_s25  ;;  %s4850_s7 = smov 14  }
   0xd   :  { %s4955_s8 = sld [smem:[%s5806_s0 + %s4844_s4]]   ;;  %s4852_s22 = smov 16  }
   0xe   :  { %s4960_s14 = sld [smem:[%s5806_s0 + %s4845_s10]]   ;;  %s4853_s28 = smov 17  }
   0xf   :  { %s4965_s19 = sld [smem:[%s5806_s0 + %s4846_s15]]   ;;  %s4851_s15 = smov 15  }
  0x10   :  { %s4970_s24 = sld [smem:[%s5806_s0 + %s4847_s20]]  }
  0x11   :  { %5835 = sst [smem:[#allocation49_spill]] %s4950_s3 }
  0x12   :  { %s4975_s30 = sld [smem:[%s5806_s0 + %s4848_s26]]  }
  0x13   :  { %5836 = sst [smem:[#allocation50_spill]] %s4955_s8 }
  0x14   :  { %s4980_s6 = sld [smem:[%s5806_s0 + %s4849_s1]]  }
  0x15   :  { %s4985_s12 = sld [smem:[%s5806_s0 + %s4850_s7]]   ;;  %s4854_s7 = smov 18  }
  0x16   :  { %5837 = sst [smem:[#allocation51_spill]] %s4970_s24 }
  0x17   :  { %s4990_s20 = sld [smem:[%s5806_s0 + %s4851_s15]]   ;;  %s4855_s15 = smov 19  }
  0x18   :  { %s4995_s27 = sld [smem:[%s5806_s0 + %s4852_s22]]   ;;  %s4856_s22 = smov 20  }
  0x19   :  { %s5000_s4 = sld [smem:[%s5806_s0 + %s4853_s28]]   ;;  %s4857_s28 = smov 21  }
  0x1a   :  { %5838 = sst [smem:[#allocation52_spill]] %s4980_s6 }
  0x1b   :  { %5839 = sst [smem:[#allocation53_spill]] %s4985_s12 }
  0x1c   :  { %s5005_s9 = sld [smem:[%s5806_s0 + %s4854_s7]]   ;;  %s4858_s7 = smov 22  }
  0x1d   :  { %s5010_s6 = sld [smem:[%s5806_s0 + %s4855_s15]]   ;;  %s4859_s15 = smov 23  }
  0x1e   :  { %5840 = sst [smem:[#allocation54_spill]] %s4995_s27 }
  0x1f   :  { %5841 = sst [smem:[#allocation55_spill]] %s5000_s4 }
  0x20   :  { %s5015_s24 = sld [smem:[%s5806_s0 + %s4856_s22]]   ;;  %s4860_s22 = smov 24  }
  0x21   :  { %s5020_s4 = sld [smem:[%s5806_s0 + %s4857_s28]]   ;;  %s4861_s28 = smov 25  }
  0x22   :  { %5842 = sst [smem:[#allocation56_spill]] %s5005_s9 }
  0x23   :  { %5843 = sst [smem:[#allocation57_spill]] %s5010_s6 }
  0x24   :  { %s5025_s3 = sld [smem:[%s5806_s0 + %s4858_s7]]   ;;  %s4862_s7 = smov 26  }
  0x25   :  { %s5030_s6 = sld [smem:[%s5806_s0 + %s4859_s15]]   ;;  %s4863_s15 = smov 27  }
  0x26   :  { %5844 = sst [smem:[#allocation58_spill]] %s5015_s24 }
  0x27   :  { %5845 = sst [smem:[#allocation59_spill]] %s5020_s4 }
  0x28   :  { %s5035_s24 = sld [smem:[%s5806_s0 + %s4860_s22]]   ;;  %s4864_s22 = smov 28  }
  0x29   :  { %s5040_s25 = sld [smem:[%s5806_s0 + %s4861_s28]]   ;;  %s4865_s28 = smov 29  }
  0x2a   :  { %5846 = sst [smem:[#allocation60_spill]] %s5025_s3 }
  0x2b   :  { %5847 = sst [smem:[#allocation61_spill]] %s5030_s6 }
  0x2c   :  { %s5045_s5 = sld [smem:[%s5806_s0 + %s4862_s7]]   ;;  %s4866_s7 = smov 30  }
  0x2d   :  { %s5050_s6 = sld [smem:[%s5806_s0 + %s4863_s15]]   ;;  %s4867_s15 = smov 31  }
  0x2e   :  { %s5055_s4 = sld [smem:[%s5806_s0 + %s4864_s22]]   ;;  %s4868_s22 = smov 32  }
  0x2f   :  { %5848 = sst [smem:[#allocation62_spill]] %s5040_s25 }
  0x30   :  { %s5060_s25 = sld [smem:[%s5806_s0 + %s4865_s28]]   ;;  %s4869_s28 = smov 33  }
  0x31   :  { %s5065_s27 = sld [smem:[%s5806_s0 + %s4866_s7]]   ;;  %s4870_s7 = smov 34  }
  0x32   :  { %5849 = sst [smem:[#allocation63_spill]] %s5045_s5 }
  0x33   :  { %5850 = sst [smem:[#allocation64_spill]] %s5050_s6 }
  0x34   :  { %5851 = sst [smem:[#allocation65_spill]] %s5055_s4 }
  0x35   :  { %s5070_s6 = sld [smem:[%s5806_s0 + %s4867_s15]]   ;;  %s4871_s15 = smov 35  }
  0x36   :  { %5852 = sst [smem:[#allocation66_spill]] %s5060_s25 }
  0x37   :  { %5853 = sst [smem:[#allocation67_spill]] %s5065_s27 }
  0x38   :  { %s5075_s12 = sld [smem:[%s5806_s0 + %s4868_s22]]   ;;  %s4872_s22 = smov 36  }
  0x39   :  { %s5080_s25 = sld [smem:[%s5806_s0 + %s4869_s28]]   ;;  %s4873_s28 = smov 37  }
  0x3a   :  { %s5085_s27 = sld [smem:[%s5806_s0 + %s4870_s7]]   ;;  %s4874_s7 = smov 38  }
  0x3b   :  { %5854 = sst [smem:[#allocation68_spill]] %s5070_s6 }
  0x3c   :  { %s5090_s6 = sld [smem:[%s5806_s0 + %s4871_s15]]   ;;  %s4875_s15 = smov 39  }
  0x3e   :  { %5855 = sst [smem:[#allocation69_spill]] %s5075_s12 }
  0x3f   :  { %5856 = sst [smem:[#allocation70_spill]] %s5080_s25 }
  0x40   :  { %5857 = sst [smem:[#allocation71_spill]] %s5085_s27 }
  0x41   :  { %s5095_s12 = sld [smem:[%s5806_s0 + %s4872_s22]]  }
  0x42   :  { %5858 = sst [smem:[#allocation72_spill]] %s5090_s6 }
  0x43   :  { %s5100_s25 = sld [smem:[%s5806_s0 + %s4873_s28]]  }
  0x44   :  { %s5105_s27 = sld [smem:[%s5806_s0 + %s4874_s7]]  }
  0x45   :  { %s5110_s6 = sld [smem:[%s5806_s0 + %s4875_s15]]  }
  0x4b   :  { %5859 = sst [smem:[#allocation73_spill]] %s5110_s6 }
  0x4c   :  { %84 = vsyncpa [#allocation3], 0 }
  0x4d   :  { %85 = vsyncpa [#allocation5], 0 }
  0x4e   :  { %86 = vsyncpa [#allocation8], 0 }
  0x4f   :  { %87 = vsyncpa [#allocation11], 0 }
  0x50   :  { %88 = vsyncpa [#allocation14], 0 }
  0x51   :  { %89 = vsyncpa [#allocation17], 0 }
  0x52   :  { %90 = vsyncpa [#allocation20], 0 }
  0x53   :  { %91 = vsyncpa [#allocation23], 0 }
  0x54   :  { %92 = vsyncpa [#allocation26], 0 }
  0x55   :  { %93 = vsyncpa [#allocation29], 0 }
  0x56   :  { %94 = vsyncpa [#allocation32], 0  ;;  %s5112_s22 = smov 0  }
  0x57 LB: > { %s5860_s13 = sld [smem:[#allocation47_spill]]  ;;  %s984_s0 = sshll.u32 %s4930_s17, 4  ;;  %s4835_s22 = sphi %s5112_s22, %s100_s22   ;;  %s5118_s0 = int_to_ptr.hbm [resolvable:$true] %s984_s0 }
  0x58   : > { %s5861_s9 = sld [smem:[#allocation56_spill]]  ;;  %s5121_s23 = sadd.s32 4294967295, %s4835_s22  }
  0x59   : > { %s5862_s8 = sld [smem:[#allocation50_spill]]  ;;  %p3690_p0 = scmp.ge.s32.totalorder %s4835_s22, 1 }
  0x5a   : > { %s5863_s5 = sld [smem:[#allocation63_spill]]  ;;  %p960_p1 = scmp.lt.s32.totalorder %s4835_s22, 3 }
  0x5b   : > { %s5864_s4 = sld [smem:[#allocation65_spill]]  ;;  %p3952_p2 = scmp.eq.s32.totalorder %s5121_s23, 0 }
  0x5c   : > { %s5865_s3 = sld [smem:[#allocation60_spill]]  ;;  %p5126_p3 = pnand %p3690_p0, %p960_p1 }
  0x5d   : > { %5866 = sst [smem:[#allocation74_spill]] %s4835_s22  ;;  %s4876_s28 = smov [#allocation4]  }
  0x5e   : > { %s986_s1 = sshll.u32 %s4876_s28, 4  ;;  %s1011_s2 = sshll.u32 %s4945_s29, 4  ;;  %s987_s1 = int_to_ptr.vmem [resolvable:$true] %s986_s1  ;;  %s5133_s2 = int_to_ptr.hbm [resolvable:$true] %s1011_s2 }
  0x5f   : > { %p3888_p4 = pneg %p5126_p3  ;;  %s1038_s7 = sshll.u32 %s4960_s14, 4  ;;  %s5145_s7 = int_to_ptr.hbm [resolvable:$true] %s1038_s7 }
  0x60   : > { %s4877_s11 = smov [#allocation7]   ;;  %s4155_s16 = sshra.s32 %s5118_s0, 4  ;;  %s4156_s16 = int_to_ptr.hbm [resolvable:$true] %s4155_s16 }
  0x61   : > { %p5138_p5 = pnand %p3952_p2, %p3888_p4  ;;  %s5142_s15 = sshll.u32 %s4877_s11, 4  ;;  %s1014_s15 = int_to_ptr.vmem [resolvable:$true] %s5142_s15 }
  0x62   : > { %s4157_s18 = scalar_lea.hbm %s4156_s16, 4  ;;  %s4162_s22 = scalar_lea.hbm %s4930_s17, 4 }
  0x63   : > { %p4158_p6 = scmp.ne.s32.totalorder %s4156_s16, %s4157_s18  ;;  %p5150_p7 = pneg %p5138_p5 }
  0x64   : > { %p4163_p10 = scmp.lt.s32.totalorder %s4156_s16, %s4930_s17  ;;  %p4164_p11 = scmp.lt.s32.totalorder %s4162_s22, %s4157_s18 }
  0x65   : > { %p4160_p8 = pnand %p5150_p7, %p4158_p6 }
  0x66   : > { %p4165_p12 = por %p4164_p11, %p4163_p10 }
  0x67   : > { %p4161_p9 = pneg %p4160_p8 }
  0x69   : > { %p4166_p13 = pnand %p4165_p12, %p4161_p9 }
  0x6b   : > { %4169 = shalt.err (!%p4166_p13)
}
  0x6c   : > { %3894 = dma.hbm_to_vmem [thread:$0]  (!%p5138_p5), %s5118_s0, 64, %s987_s1, [#allocation5]  }
  0x6d   : > { %s4185_s11 = sshra.s32 %s5133_s2, 4  ;;  %s4192_s16 = scalar_lea.hbm %s4945_s29, 2  ;;  %s4186_s11 = int_to_ptr.hbm [resolvable:$true] %s4185_s11 }
  0x6e   : > { %s4187_s6 = scalar_lea.hbm %s4186_s11, 2  ;;  %p4193_p6 = scmp.lt.s32.totalorder %s4186_s11, %s4945_s29 }
  0x6f   : > { %p4188_p0 = scmp.ne.s32.totalorder %s4186_s11, %s4187_s6  ;;  %p4194_p8 = scmp.lt.s32.totalorder %s4192_s16, %s4187_s6 }
  0x71   : > { %p4190_p1 = pnand %p4188_p0, %p5150_p7  ;;  %p4195_p9 = por %p4194_p8, %p4193_p6 }
  0x73   : > { %p4191_p4 = pneg %p4190_p1 }
  0x75   : > { %p4196_p10 = pnand %p4195_p9, %p4191_p4 }
  0x77   : > { %4199 = shalt.err (!%p4196_p10)
}
  0x78   : > { %3900 = dma.hbm_to_vmem [thread:$0]  (!%p5138_p5), %s5133_s2, 32, %s1014_s15, [#allocation8]  }
  0x79   : > { %s4878_s22 = smov [#allocation10]   ;;  %s1065_s1 = sshll.u32 %s4975_s30, 4  ;;  %s5170_s1 = int_to_ptr.hbm [resolvable:$true] %s1065_s1 }
  0x7a   : > { %s1040_s0 = sshll.u32 %s4878_s22, 4  ;;  %s4215_s18 = sshra.s32 %s5145_s7, 4  ;;  %s1041_s0 = int_to_ptr.vmem [resolvable:$true] %s1040_s0  ;;  %s4216_s18 = int_to_ptr.hbm [resolvable:$true] %s4215_s18 }
  0x7b   : > { %s4217_s6 = scalar_lea.hbm %s4216_s18, 1  ;;  %s4222_s11 = scalar_lea.hbm %s4960_s14, 1 }
  0x7c   : > { %p4218_p11 = scmp.ne.s32.totalorder %s4216_s18, %s4217_s6  ;;  %p4223_p0 = scmp.lt.s32.totalorder %s4216_s18, %s4960_s14 }
  0x7d   : > { %p4224_p1 = scmp.lt.s32.totalorder %s4222_s11, %s4217_s6 }
  0x7e   : > { %p4220_p12 = pnand %p4218_p11, %p5150_p7 }
  0x7f   : > { %p4225_p4 = por %p4224_p1, %p4223_p0 }
  0x80   : > { %p4221_p13 = pneg %p4220_p12 }
  0x82   : > { %p4226_p6 = pnand %p4225_p4, %p4221_p13 }
  0x84   : > { %4229 = shalt.err (!%p4226_p6)
}
  0x85   : > { %3906 = dma.hbm_to_vmem [thread:$0]  (!%p5138_p5), %s5145_s7, 16, %s1041_s0, [#allocation11]  }
  0x86   : > { %s1092_s2 = sshll.u32 %s4990_s20, 4  ;;  %s4879_s15 = smov [#allocation13]   ;;  %s5181_s2 = int_to_ptr.hbm [resolvable:$true] %s1092_s2 }
  0x87   : > { %s1067_s16 = sshll.u32 %s4879_s15, 4  ;;  %s4245_s22 = sshra.s32 %s5170_s1, 4  ;;  %s1068_s16 = int_to_ptr.vmem [resolvable:$true] %s1067_s16  ;;  %s4246_s22 = int_to_ptr.hbm [resolvable:$true] %s4245_s22 }
  0x88   : > { %s4247_s18 = scalar_lea.hbm %s4246_s22, 2  ;;  %s4252_s6 = scalar_lea.hbm %s4975_s30, 2 }
  0x89   : > { %p4248_p8 = scmp.ne.s32.totalorder %s4246_s22, %s4247_s18  ;;  %p4253_p11 = scmp.lt.s32.totalorder %s4246_s22, %s4975_s30 }
  0x8a   : > { %p4254_p12 = scmp.lt.s32.totalorder %s4252_s6, %s4247_s18 }
  0x8b   : > { %p4250_p9 = pnand %p4248_p8, %p5150_p7 }
  0x8c   : > { %p4255_p13 = por %p4254_p12, %p4253_p11 }
  0x8d   : > { %p4251_p10 = pneg %p4250_p9 }
  0x8f   : > { %p4256_p0 = pnand %p4255_p13, %p4251_p10 }
  0x91   : > { %4259 = shalt.err (!%p4256_p0)
}
  0x92   : > { %3912 = dma.hbm_to_vmem [thread:$0]  (!%p5138_p5), %s5170_s1, 32, %s1068_s16, [#allocation14]  }
  0x93   : > { %s4880_s7 = smov [#allocation16]   ;;  %s1119_s11 = sshll.u32 %s5861_s9, 4  ;;  %s5192_s11 = int_to_ptr.hbm [resolvable:$true] %s1119_s11 }
  0x94   : > { %s1094_s0 = sshll.u32 %s4880_s7, 4  ;;  %s4275_s15 = sshra.s32 %s5181_s2, 4  ;;  %s1095_s0 = int_to_ptr.vmem [resolvable:$true] %s1094_s0  ;;  %s4276_s15 = int_to_ptr.hbm [resolvable:$true] %s4275_s15 }
  0x95   : > { %s4277_s22 = scalar_lea.hbm %s4276_s15, 1  ;;  %s4282_s18 = scalar_lea.hbm %s4990_s20, 1 }
  0x96   : > { %p4278_p1 = scmp.ne.s32.totalorder %s4276_s15, %s4277_s22  ;;  %p4283_p8 = scmp.lt.s32.totalorder %s4276_s15, %s4990_s20 }
  0x97   : > { %p4284_p9 = scmp.lt.s32.totalorder %s4282_s18, %s4277_s22 }
  0x98   : > { %p4280_p4 = pnand %p4278_p1, %p5150_p7 }
  0x99   : > { %p4285_p10 = por %p4284_p9, %p4283_p8 }
  0x9a   : > { %p4281_p6 = pneg %p4280_p4 }
  0x9c   : > { %p4286_p11 = pnand %p4285_p10, %p4281_p6 }
  0x9e   : > { %4289 = shalt.err (!%p4286_p11)
}
  0x9f   : > { %3918 = dma.hbm_to_vmem [thread:$0]  (!%p5138_p5), %s5181_s2, 16, %s1095_s0, [#allocation17]  }
  0xa0   : > { %s1149_s1 = sshll.u32 %s5865_s3, 4  ;;  %s4881_s16 = smov [#allocation19]   ;;  %s5203_s1 = int_to_ptr.hbm [resolvable:$true] %s1149_s1 }
  0xa1   : > { %s1121_s6 = sshll.u32 %s4881_s16, 4  ;;  %s4305_s7 = sshra.s32 %s5192_s11, 4  ;;  %s1122_s6 = int_to_ptr.vmem [resolvable:$true] %s1121_s6  ;;  %s4306_s7 = int_to_ptr.hbm [resolvable:$true] %s4305_s7 }
  0xa2   : > { %s4307_s15 = scalar_lea.hbm %s4306_s7, 2  ;;  %s4312_s22 = scalar_lea.hbm %s5861_s9, 2 }
  0xa3   : > { %p4308_p12 = scmp.ne.s32.totalorder %s4306_s7, %s4307_s15  ;;  %p4313_p1 = scmp.lt.s32.totalorder %s4306_s7, %s5861_s9 }
  0xa4   : > { %p4314_p4 = scmp.lt.s32.totalorder %s4312_s22, %s4307_s15 }
  0xa5   : > { %p4310_p13 = pnand %p4308_p12, %p5150_p7 }
  0xa6   : > { %p4315_p6 = por %p4314_p4, %p4313_p1 }
  0xa7   : > { %p4311_p0 = pneg %p4310_p13 }
  0xa9   : > { %p4316_p8 = pnand %p4315_p6, %p4311_p0 }
  0xab   : > { %4319 = shalt.err (!%p4316_p8)
}
  0xac   : > { %3924 = dma.hbm_to_vmem [thread:$0]  (!%p5138_p5), %s5192_s11, 32, %s1122_s6, [#allocation20]  }
  0xad   : > { %s4882_s2 = smov [#allocation22]   ;;  %s1175_s18 = sshll.u32 %s5035_s24, 4  ;;  %s5214_s18 = int_to_ptr.hbm [resolvable:$true] %s1175_s18 }
  0xae   : > { %s1151_s0 = sshll.u32 %s4882_s2, 4  ;;  %s4335_s16 = sshra.s32 %s5203_s1, 4  ;;  %s1152_s0 = int_to_ptr.vmem [resolvable:$true] %s1151_s0  ;;  %s4336_s16 = int_to_ptr.hbm [resolvable:$true] %s4335_s16 }
  0xaf   : > { %s4337_s7 = scalar_lea.hbm %s4336_s16, 1  ;;  %s4342_s15 = scalar_lea.hbm %s5865_s3, 1 }
  0xb0   : > { %p4338_p9 = scmp.ne.s32.totalorder %s4336_s16, %s4337_s7  ;;  %p4343_p12 = scmp.lt.s32.totalorder %s4336_s16, %s5865_s3 }
  0xb1   : > { %p4344_p13 = scmp.lt.s32.totalorder %s4342_s15, %s4337_s7 }
  0xb2   : > { %p4340_p10 = pnand %p4338_p9, %p5150_p7 }
  0xb3   : > { %p4345_p0 = por %p4344_p13, %p4343_p12 }
  0xb4   : > { %p4341_p11 = pneg %p4340_p10 }
  0xb6   : > { %p4346_p1 = pnand %p4345_p0, %p4341_p11 }
  0xb8   : > { %4349 = shalt.err (!%p4346_p1)
}
  0xb9   : > { %3930 = dma.hbm_to_vmem [thread:$0]  (!%p5138_p5), %s5203_s1, 16, %s1152_s0, [#allocation23]  }
  0xba   : > { %s1201_s11 = sshll.u32 %s5863_s5, 4  ;;  %s4883_s6 = smov [#allocation25]   ;;  %s5225_s11 = int_to_ptr.hbm [resolvable:$true] %s1201_s11 }
  0xbb   : > { %s1177_s22 = sshll.u32 %s4883_s6, 4  ;;  %s4365_s2 = sshra.s32 %s5214_s18, 4  ;;  %s1178_s22 = int_to_ptr.vmem [resolvable:$true] %s1177_s22  ;;  %s4366_s2 = int_to_ptr.hbm [resolvable:$true] %s4365_s2 }
  0xbc   : > { %s4367_s16 = scalar_lea.hbm %s4366_s2, 1  ;;  %s4372_s7 = scalar_lea.hbm %s5035_s24, 1 }
  0xbd   : > { %p4368_p4 = scmp.ne.s32.totalorder %s4366_s2, %s4367_s16  ;;  %p4373_p9 = scmp.lt.s32.totalorder %s4366_s2, %s5035_s24 }
  0xbe   : > { %p4374_p10 = scmp.lt.s32.totalorder %s4372_s7, %s4367_s16 }
  0xbf   : > { %p4370_p6 = pnand %p4368_p4, %p5150_p7 }
  0xc0   : > { %p4375_p11 = por %p4374_p10, %p4373_p9 }
  0xc1   : > { %p4371_p8 = pneg %p4370_p6 }
  0xc3   : > { %p4376_p12 = pnand %p4375_p11, %p4371_p8 }
  0xc5   : > { %4379 = shalt.err (!%p4376_p12)
}
  0xc6   : > { %3936 = dma.hbm_to_vmem [thread:$0]  (!%p5138_p5), %s5214_s18, 16, %s1178_s22, [#allocation26]  }
  0xc7   : > { %s4884_s1 = smov [#allocation28]   ;;  %s1227_s15 = sshll.u32 %s5864_s4, 4  ;;  %s5236_s15 = int_to_ptr.hbm [resolvable:$true] %s1227_s15 }
  0xc8   : > { %s1203_s0 = sshll.u32 %s4884_s1, 4  ;;  %s4395_s6 = sshra.s32 %s5225_s11, 4  ;;  %s1204_s0 = int_to_ptr.vmem [resolvable:$true] %s1203_s0  ;;  %s4396_s6 = int_to_ptr.hbm [resolvable:$true] %s4395_s6 }
  0xc9   : > { %s4397_s2 = scalar_lea.hbm %s4396_s6, 1  ;;  %s4402_s16 = scalar_lea.hbm %s5863_s5, 1 }
  0xca   : > { %p4398_p13 = scmp.ne.s32.totalorder %s4396_s6, %s4397_s2  ;;  %p4403_p4 = scmp.lt.s32.totalorder %s4396_s6, %s5863_s5 }
  0xcb   : > { %p4404_p6 = scmp.lt.s32.totalorder %s4402_s16, %s4397_s2 }
  0xcc   : > { %p4400_p0 = pnand %p4398_p13, %p5150_p7 }
  0xcd   : > { %p4405_p8 = por %p4404_p6, %p4403_p4 }
  0xce   : > { %p4401_p1 = pneg %p4400_p0 }
  0xd0   : > { %p4406_p9 = pnand %p4405_p8, %p4401_p1 }
  0xd2   : > { %4409 = shalt.err (!%p4406_p9)
}
  0xd3   : > { %3942 = dma.hbm_to_vmem [thread:$0]  (!%p5138_p5), %s5225_s11, 16, %s1204_s0, [#allocation29]  }
  0xd4   : > { %s972_s18 = sshll.u32 %s5860_s13, 4  ;;  %s4885_s22 = smov [#allocation31]   ;;  %s5247_s18 = int_to_ptr.hbm [resolvable:$true] %s972_s18 }
  0xd5   : > { %s1229_s7 = sshll.u32 %s4885_s22, 4  ;;  %s4425_s1 = sshra.s32 %s5236_s15, 4  ;;  %s1230_s7 = int_to_ptr.vmem [resolvable:$true] %s1229_s7  ;;  %s4426_s1 = int_to_ptr.hbm [resolvable:$true] %s4425_s1 }
  0xd6   : > { %s4427_s6 = scalar_lea.hbm %s4426_s1, 1  ;;  %s4432_s2 = scalar_lea.hbm %s5864_s4, 1 }
  0xd7   : > { %p4428_p10 = scmp.ne.s32.totalorder %s4426_s1, %s4427_s6  ;;  %p4433_p13 = scmp.lt.s32.totalorder %s4426_s1, %s5864_s4 }
  0xd8   : > { %p4434_p0 = scmp.lt.s32.totalorder %s4432_s2, %s4427_s6 }
  0xd9   : > { %p4430_p11 = pnand %p4428_p10, %p5150_p7 }
  0xda   : > { %p4435_p1 = por %p4434_p0, %p4433_p13 }
  0xdb   : > { %p4431_p12 = pneg %p4430_p11 }
  0xdd   : > { %p4436_p4 = pnand %p4435_p1, %p4431_p12 }
  0xdf   : > { %4439 = shalt.err (!%p4436_p4)
}
  0xe0   : > { %3948 = dma.hbm_to_vmem [thread:$0]  (!%p5138_p5), %s5236_s15, 16, %s1230_s7, [#allocation32]  }
  0xe1   : > { %s4886_s11 = smov [#allocation2]   ;;  %s996_s16 = sshll.u32 %s4935_s21, 4  ;;  %s5258_s16 = int_to_ptr.hbm [resolvable:$true] %s996_s16 }
  0xe2   : > { %s974_s0 = sshll.u32 %s4886_s11, 4  ;;  %s4455_s22 = sshra.s32 %s5247_s18, 4  ;;  %s975_s0 = int_to_ptr.vmem [resolvable:$true] %s974_s0  ;;  %s4456_s22 = int_to_ptr.hbm [resolvable:$true] %s4455_s22 }
  0xe3   : > { %s4457_s1 = scalar_lea.hbm %s4456_s22, 8  ;;  %s4462_s6 = scalar_lea.hbm %s5860_s13, 8 }
  0xe4   : > { %p4458_p6 = scmp.ne.s32.totalorder %s4456_s22, %s4457_s1  ;;  %p4463_p10 = scmp.lt.s32.totalorder %s4456_s22, %s5860_s13 }
  0xe5   : > { %p4464_p11 = scmp.lt.s32.totalorder %s4462_s6, %s4457_s1 }
  0xe6   : > { %p4460_p8 = pnand %p4458_p6, %p5150_p7 }
  0xe7   : > { %p4465_p12 = por %p4464_p11, %p4463_p10 }
  0xe8   : > { %p4461_p9 = pneg %p4460_p8 }
  0xea   : > { %p4466_p13 = pnand %p4465_p12, %p4461_p9 }
  0xec   : > { %4469 = shalt.err (!%p4466_p13)
}
  0xed   : > { %3891 = dma.hbm_to_vmem [thread:$0]  (!%p5138_p5), %s5247_s18, 128, %s975_s0, [#allocation3]  }
  0xee   : > { %s1026_s15 = sshll.u32 %s5862_s8, 4  ;;  %s4887_s7 = smov [#allocation6]   ;;  %s5269_s15 = int_to_ptr.hbm [resolvable:$true] %s1026_s15 }
  0xef   : > { %s998_s2 = sshll.u32 %s4887_s7, 4  ;;  %s4485_s11 = sshra.s32 %s5258_s16, 4  ;;  %s999_s2 = int_to_ptr.vmem [resolvable:$true] %s998_s2  ;;  %s4486_s11 = int_to_ptr.hbm [resolvable:$true] %s4485_s11 }
  0xf0   : > { %s4487_s22 = scalar_lea.hbm %s4486_s11, 1  ;;  %s4492_s1 = scalar_lea.hbm %s4935_s21, 1 }
  0xf1   : > { %p4488_p0 = scmp.ne.s32.totalorder %s4486_s11, %s4487_s22  ;;  %p4493_p6 = scmp.lt.s32.totalorder %s4486_s11, %s4935_s21 }
  0xf2   : > { %p4494_p8 = scmp.lt.s32.totalorder %s4492_s1, %s4487_s22 }
  0xf3   : > { %p4490_p1 = pnand %p4488_p0, %p5150_p7 }
  0xf4   : > { %p4495_p9 = por %p4494_p8, %p4493_p6 }
  0xf5   : > { %p4491_p4 = pneg %p4490_p1 }
  0xf7   : > { %p4496_p10 = pnand %p4495_p9, %p4491_p4 }
  0xf9   : > { %4499 = shalt.err (!%p4496_p10)
}
  0xfa   : > { %3897 = dma.hbm_to_vmem [thread:$0]  (!%p5138_p5), %s5258_s16, 16, %s999_s2, [#allocation5]  }
  0xfb   : > { %s4888_s18 = smov [#allocation9]   ;;  %s1050_s6 = sshll.u32 %s4965_s19, 4  ;;  %s5280_s6 = int_to_ptr.hbm [resolvable:$true] %s1050_s6 }
  0xfc   : > { %s1028_s0 = sshll.u32 %s4888_s18, 4  ;;  %s4515_s7 = sshra.s32 %s5269_s15, 4  ;;  %s1029_s0 = int_to_ptr.vmem [resolvable:$true] %s1028_s0  ;;  %s4516_s7 = int_to_ptr.hbm [resolvable:$true] %s4515_s7 }
  0xfd   : > { %s4517_s11 = scalar_lea.hbm %s4516_s7, 1  ;;  %s4522_s22 = scalar_lea.hbm %s5862_s8, 1 }
  0xfe   : > { %p4518_p11 = scmp.ne.s32.totalorder %s4516_s7, %s4517_s11  ;;  %p4523_p0 = scmp.lt.s32.totalorder %s4516_s7, %s5862_s8 }
  0xff   : > { %p4524_p1 = scmp.lt.s32.totalorder %s4522_s22, %s4517_s11 }
 0x100   : > { %p4520_p12 = pnand %p4518_p11, %p5150_p7 }
 0x101   : > { %p4525_p4 = por %p4524_p1, %p4523_p0 }
 0x102   : > { %p4521_p13 = pneg %p4520_p12 }
 0x104   : > { %p4526_p6 = pnand %p4525_p4, %p4521_p13 }
 0x106   : > { %4529 = shalt.err (!%p4526_p6)
}
 0x107   : > { %s5870_s16 = sld [smem:[#allocation53_spill]]  ;;  %s4889_s1 = smov [#allocation12]  }
 0x108   : > { %3903 = dma.hbm_to_vmem [thread:$0]  (!%p5138_p5), %s5269_s15, 16, %s1029_s0, [#allocation8]  }
 0x109   : > { %s1052_s18 = sshll.u32 %s4889_s1, 4  ;;  %s4545_s7 = sshra.s32 %s5280_s6, 4  ;;  %s1053_s18 = int_to_ptr.vmem [resolvable:$true] %s1052_s18  ;;  %s4546_s7 = int_to_ptr.hbm [resolvable:$true] %s4545_s7 }
 0x10a   : > { %s4547_s11 = scalar_lea.hbm %s4546_s7, 1  ;;  %s4552_s22 = scalar_lea.hbm %s4965_s19, 1 }
 0x10b   : > { %p4548_p8 = scmp.ne.s32.totalorder %s4546_s7, %s4547_s11  ;;  %p4553_p11 = scmp.lt.s32.totalorder %s4546_s7, %s4965_s19 }
 0x10c   : > { %p4554_p12 = scmp.lt.s32.totalorder %s4552_s22, %s4547_s11 }
 0x10d   : > { %s1080_s2 = sshll.u32 %s5870_s16, 4  ;;  %p4550_p9 = pnand %p4548_p8, %p5150_p7  ;;  %s5291_s2 = int_to_ptr.hbm [resolvable:$true] %s1080_s2 }
 0x10e   : > { %p4555_p13 = por %p4554_p12, %p4553_p11 }
 0x10f   : > { %p4551_p10 = pneg %p4550_p9 }
 0x111   : > { %p4556_p0 = pnand %p4555_p13, %p4551_p10 }
 0x113   : > { %4559 = shalt.err (!%p4556_p0)
}
 0x114   : > { %s5871_s15 = sld [smem:[#allocation54_spill]]  ;;  %s4890_s0 = smov [#allocation15]  }
 0x115   : > { %3909 = dma.hbm_to_vmem [thread:$0]  (!%p5138_p5), %s5280_s6, 16, %s1053_s18, [#allocation11]  }
 0x116   : > { %s1082_s1 = sshll.u32 %s4890_s0, 4  ;;  %s4575_s7 = sshra.s32 %s5291_s2, 4  ;;  %s1083_s1 = int_to_ptr.vmem [resolvable:$true] %s1082_s1  ;;  %s4576_s7 = int_to_ptr.hbm [resolvable:$true] %s4575_s7 }
 0x117   : > { %s4577_s11 = scalar_lea.hbm %s4576_s7, 1  ;;  %s4582_s22 = scalar_lea.hbm %s5870_s16, 1 }
 0x118   : > { %p4578_p1 = scmp.ne.s32.totalorder %s4576_s7, %s4577_s11  ;;  %p4583_p8 = scmp.lt.s32.totalorder %s4576_s7, %s5870_s16 }
 0x119   : > { %p4584_p9 = scmp.lt.s32.totalorder %s4582_s22, %s4577_s11 }
 0x11a   : > { %s1104_s3 = sshll.u32 %s5871_s15, 4  ;;  %p4580_p4 = pnand %p4578_p1, %p5150_p7  ;;  %s5302_s3 = int_to_ptr.hbm [resolvable:$true] %s1104_s3 }
 0x11b   : > { %p4585_p10 = por %p4584_p9, %p4583_p8 }
 0x11c   : > { %p4581_p6 = pneg %p4580_p4 }
 0x11e   : > { %p4586_p11 = pnand %p4585_p10, %p4581_p6 }
 0x120   : > { %4589 = shalt.err (!%p4586_p11)
}
 0x121   : > { %s5872_s6 = sld [smem:[#allocation59_spill]]  ;;  %s4891_s0 = smov [#allocation18]  }
 0x122   : > { %3915 = dma.hbm_to_vmem [thread:$0]  (!%p5138_p5), %s5291_s2, 16, %s1083_s1, [#allocation14]  }
 0x123   : > { %s1106_s4 = sshll.u32 %s4891_s0, 4  ;;  %s4605_s7 = sshra.s32 %s5302_s3, 4  ;;  %s1107_s4 = int_to_ptr.vmem [resolvable:$true] %s1106_s4  ;;  %s4606_s7 = int_to_ptr.hbm [resolvable:$true] %s4605_s7 }
 0x124   : > { %s4607_s11 = scalar_lea.hbm %s4606_s7, 1  ;;  %s4612_s22 = scalar_lea.hbm %s5871_s15, 1 }
 0x125   : > { %p4608_p12 = scmp.ne.s32.totalorder %s4606_s7, %s4607_s11  ;;  %p4613_p1 = scmp.lt.s32.totalorder %s4606_s7, %s5871_s15 }
 0x126   : > { %p4614_p4 = scmp.lt.s32.totalorder %s4612_s22, %s4607_s11 }
 0x127   : > { %s1137_s18 = sshll.u32 %s5872_s6, 4  ;;  %p4610_p13 = pnand %p4608_p12, %p5150_p7  ;;  %s5313_s18 = int_to_ptr.hbm [resolvable:$true] %s1137_s18 }
 0x128   : > { %p4615_p6 = por %p4614_p4, %p4613_p1 }
 0x129   : > { %p4611_p0 = pneg %p4610_p13 }
 0x12b   : > { %p4616_p8 = pnand %p4615_p6, %p4611_p0 }
 0x12d   : > { %4619 = shalt.err (!%p4616_p8)
}
 0x12e   : > { %s5873_s2 = sld [smem:[#allocation61_spill]]  ;;  %s4892_s1 = smov [#allocation21]  }
 0x12f   : > { %3921 = dma.hbm_to_vmem [thread:$0]  (!%p5138_p5), %s5302_s3, 16, %s1107_s4, [#allocation17]  }
 0x130   : > { %s1139_s0 = sshll.u32 %s4892_s1, 4  ;;  %s4635_s7 = sshra.s32 %s5313_s18, 4  ;;  %s1140_s0 = int_to_ptr.vmem [resolvable:$true] %s1139_s0  ;;  %s4636_s7 = int_to_ptr.hbm [resolvable:$true] %s4635_s7 }
 0x131   : > { %s4637_s11 = scalar_lea.hbm %s4636_s7, 1  ;;  %s4642_s22 = scalar_lea.hbm %s5872_s6, 1 }
 0x132   : > { %p4638_p9 = scmp.ne.s32.totalorder %s4636_s7, %s4637_s11  ;;  %p4643_p12 = scmp.lt.s32.totalorder %s4636_s7, %s5872_s6 }
 0x133   : > { %p4644_p13 = scmp.lt.s32.totalorder %s4642_s22, %s4637_s11 }
 0x134   : > { %s1160_s5 = sshll.u32 %s5873_s2, 4  ;;  %p4640_p10 = pnand %p4638_p9, %p5150_p7  ;;  %s5324_s5 = int_to_ptr.hbm [resolvable:$true] %s1160_s5 }
 0x135   : > { %p4645_p0 = por %p4644_p13, %p4643_p12 }
 0x136   : > { %p4641_p11 = pneg %p4640_p10 }
 0x138   : > { %p4646_p1 = pnand %p4645_p0, %p4641_p11 }
 0x13a   : > { %4649 = shalt.err (!%p4646_p1)
}
 0x13b   : > { %s5874_s3 = sld [smem:[#allocation62_spill]]  ;;  %s4893_s4 = smov [#allocation24]  }
 0x13c   : > { %3927 = dma.hbm_to_vmem [thread:$0]  (!%p5138_p5), %s5313_s18, 16, %s1140_s0, [#allocation20]  }
 0x13d   : > { %s1162_s1 = sshll.u32 %s4893_s4, 4  ;;  %s4665_s9 = sshra.s32 %s5324_s5, 4  ;;  %s1163_s1 = int_to_ptr.vmem [resolvable:$true] %s1162_s1  ;;  %s4666_s9 = int_to_ptr.hbm [resolvable:$true] %s4665_s9 }
 0x13e   : > { %s4667_s7 = scalar_lea.hbm %s4666_s9, 64  ;;  %s4672_s11 = scalar_lea.hbm %s5873_s2, 64 }
 0x13f   : > { %p4668_p4 = scmp.ne.s32.totalorder %s4666_s9, %s4667_s7  ;;  %p4673_p9 = scmp.lt.s32.totalorder %s4666_s9, %s5873_s2 }
 0x140   : > { %p4674_p10 = scmp.lt.s32.totalorder %s4672_s11, %s4667_s7 }
 0x141   : > { %s1186_s8 = sshll.u32 %s5874_s3, 4  ;;  %p4670_p6 = pnand %p4668_p4, %p5150_p7  ;;  %s1187_s8 = int_to_ptr.hbm [resolvable:$true] %s1186_s8 }
 0x142   : > { %p4675_p11 = por %p4674_p10, %p4673_p9 }
 0x143   : > { %p4671_p8 = pneg %p4670_p6 }
 0x145   : > { %p4676_p12 = pnand %p4675_p11, %p4671_p8 }
 0x147   : > { %4679 = shalt.err (!%p4676_p12)
}
 0x148   : > { %s4894_s22 = smov 128   ;;  %s5875_s18 = sld [smem:[#allocation64_spill]] }
 0x149   : > { %s4895_s0 = smov 8   ;;  %s4896_s4 = smov [#allocation27]  }
 0x14a   : > { %3933 = dma.hbm_to_vmem [thread:$0]  (!%p5138_p5), %s5324_s5, 1024, %s1163_s1, [#allocation23], %s4894_s22, %s4894_s22, %s4895_s0  }
 0x14b   : > { %s1188_s9 = sshll.u32 %s4896_s4, 4  ;;  %s4695_s11 = sshra.s32 %s1187_s8, 4  ;;  %s1189_s9 = int_to_ptr.vmem [resolvable:$true] %s1188_s9  ;;  %s4696_s11 = int_to_ptr.hbm [resolvable:$true] %s4695_s11 }
 0x14c   : > { %s4697_s2 = scalar_lea.hbm %s4696_s11, 64  ;;  %s4702_s6 = scalar_lea.hbm %s5874_s3, 64 }
 0x14d   : > { %p4698_p13 = scmp.ne.s32.totalorder %s4696_s11, %s4697_s2  ;;  %p4703_p4 = scmp.lt.s32.totalorder %s4696_s11, %s5874_s3 }
 0x14e   : > { %s1212_s7 = sshll.u32 %s5875_s18, 4  ;;  %p4704_p6 = scmp.lt.s32.totalorder %s4702_s6, %s4697_s2  ;;  %s5347_s7 = int_to_ptr.hbm [resolvable:$true] %s1212_s7 }
 0x14f   : > { %p4700_p0 = pnand %p4698_p13, %p5150_p7 }
 0x150   : > { %p4705_p8 = por %p4704_p6, %p4703_p4 }
 0x151   : > { %p4701_p1 = pneg %p4700_p0 }
 0x153   : > { %p4706_p9 = pnand %p4705_p8, %p4701_p1 }
 0x155   : > { %4709 = shalt.err (!%p4706_p9)
}
 0x156   : > { %s5876_s5 = sld [smem:[#allocation66_spill]]  ;;  %s4897_s4 = smov [#allocation30]  }
 0x157   : > { %3939 = dma.hbm_to_vmem [thread:$0]  (!%p5138_p5), %s1187_s8, 1024, %s1189_s9, [#allocation26], %s4894_s22, %s4894_s22, %s4895_s0  }
 0x158   : > { %s1214_s13 = sshll.u32 %s4897_s4, 4  ;;  %s4725_s6 = sshra.s32 %s5347_s7, 4  ;;  %s1215_s13 = int_to_ptr.vmem [resolvable:$true] %s1214_s13  ;;  %s4726_s6 = int_to_ptr.hbm [resolvable:$true] %s4725_s6 }
 0x159   : > { %s4727_s2 = scalar_lea.hbm %s4726_s6, 64  ;;  %s4732_s11 = scalar_lea.hbm %s5875_s18, 64 }
 0x15a   : > { %p4728_p10 = scmp.ne.s32.totalorder %s4726_s6, %s4727_s2  ;;  %p4733_p13 = scmp.lt.s32.totalorder %s4726_s6, %s5875_s18 }
 0x15b   : > { %p4734_p0 = scmp.lt.s32.totalorder %s4732_s11, %s4727_s2 }
 0x15c   : > { %s1239_s1 = sshll.u32 %s5876_s5, 4  ;;  %p4730_p11 = pnand %p4728_p10, %p5150_p7  ;;  %s5359_s1 = int_to_ptr.hbm [resolvable:$true] %s1239_s1 }
 0x15d   : > { %p4735_p1 = por %p4734_p0, %p4733_p13 }
 0x15e   : > { %p4731_p12 = pneg %p4730_p11 }
 0x160   : > { %p4736_p4 = pnand %p4735_p1, %p4731_p12 }
 0x162   : > { %4739 = shalt.err (!%p4736_p4)
}
 0x163   : > { %3945 = dma.hbm_to_vmem [thread:$0]  (!%p5138_p5), %s5347_s7, 1024, %s1215_s13, [#allocation29], %s4894_s22, %s4894_s22, %s4895_s0  }
 0x164   : > { %s4898_s8 = smov [#allocation33]   ;;  %s4755_s4 = sshra.s32 %s5359_s1, 4  ;;  %s4756_s4 = int_to_ptr.hbm [resolvable:$true] %s4755_s4 }
 0x165   : > { %s1241_s9 = sshll.u32 %s4898_s8, 4  ;;  %s4757_s6 = scalar_lea.hbm %s4756_s4, 1  ;;  %s1242_s9 = int_to_ptr.vmem [resolvable:$true] %s1241_s9 }
 0x166   : > { %p4758_p6 = scmp.ne.s32.totalorder %s4756_s4, %s4757_s6  ;;  %s4762_s2 = scalar_lea.hbm %s5876_s5, 1 }
 0x167   : > { %p4763_p10 = scmp.lt.s32.totalorder %s4756_s4, %s5876_s5  ;;  %p4764_p11 = scmp.lt.s32.totalorder %s4762_s2, %s4757_s6 }
 0x168   : > { %p4760_p8 = pnand %p4758_p6, %p5150_p7 }
 0x169   : > { %p4765_p12 = por %p4764_p11, %p4763_p10 }
 0x16a   : > { %p4761_p9 = pneg %p4760_p8 }
 0x16c   : > { %p4766_p13 = pnand %p4765_p12, %p4761_p9 }
 0x16e   : > { %4769 = shalt.err (!%p4766_p13)
}
 0x16f   : > { %3951 = dma.hbm_to_vmem [thread:$0]  (!%p5138_p5), %s5359_s1, 16, %s1242_s9, [#allocation32]  }
 0x170   : > { %1295 = sbr.rel (%p5126_p3) target bundleno = 6344 (0x18c8), region = 176 }
 0x175   : > { %4790 = dma.done.wait (%p3952_p2), [#allocation3], 128  }
 0x176   : > { %4792 = vsyncadd (%p3952_p2), [#allocation3], 4294967168 }
 0x177   : > { %4794 = dma.done.wait (%p3952_p2), [#allocation5], 80  }
 0x178   : > { %4796 = vsyncadd (%p3952_p2), [#allocation5], 4294967216 }
 0x179   : > { %4798 = dma.done.wait (%p3952_p2), [#allocation8], 48  }
 0x17a   : > { %4800 = vsyncadd (%p3952_p2), [#allocation8], 4294967248 }
 0x17b   : > { %4802 = dma.done.wait (%p3952_p2), [#allocation11], 32  }
 0x17c   : > { %4804 = vsyncadd (%p3952_p2), [#allocation11], 4294967264 }
 0x17d   : > { %4806 = dma.done.wait (%p3952_p2), [#allocation14], 48  }
 0x17e   : > { %4808 = vsyncadd (%p3952_p2), [#allocation14], 4294967248 }
 0x17f   : > { %4810 = dma.done.wait (%p3952_p2), [#allocation17], 32  }
 0x180   : > { %4812 = vsyncadd (%p3952_p2), [#allocation17], 4294967264 }
 0x181   : > { %4814 = dma.done.wait (%p3952_p2), [#allocation20], 48  }
 0x182   : > { %4816 = vsyncadd (%p3952_p2), [#allocation20], 4294967248 }
 0x183   : > { %4818 = dma.done.wait (%p3952_p2), [#allocation23], 1040  }
 0x184   : > { %4820 = vsyncadd (%p3952_p2), [#allocation23], 4294966256 }
 0x185   : > { %4822 = dma.done.wait (%p3952_p2), [#allocation26], 1040  }
 0x186   : > { %4824 = vsyncadd (%p3952_p2), [#allocation26], 4294966256 }
 0x187   : > { %4826 = dma.done.wait (%p3952_p2), [#allocation29], 1040  }
 0x188   : > { %4828 = vsyncadd (%p3952_p2), [#allocation29], 4294966256 }
 0x189   : > { %4830 = dma.done.wait (%p3952_p2), [#allocation32], 32  }
 0x18a   : > { %4832 = vsyncadd (%p3952_p2), [#allocation32], 4294967264  ;;  %s5877_s13 = sld [smem:[#allocation45_spill]]  ;;  %p1494_p3 = scmp.lt.s32.totalorder %s5121_s23, 1  ;;  %vm1516_vm0 = vcmask 1043456   ;;  %vm1512_vm1 = vcmask 31744  }
 0x18b   : > { %s5878_s26 = sld [smem:[#allocation48_spill]]  ;;  %v5432_v0 = vld [vmem:[#allocation4] sm:$0xf]  ;;  %v5453_v18 = vld [vmem:[#allocation6] ss:$0 sm:$0xff]  ;;  %v1541_v21 = vld [vmem:[#allocation2] sm:$0xff] }
 0x18c   : > { %s5896_s23 = smov (!%p1494_p3, %s5121_s23), 1  ;;  %3738 = vmatpush.msk.msra.mxu2 %vm1516_vm0, %v5432_v0  ;;  %vm1565_vm2 = vcmask 523264   ;;  %v1559_v24 = vld [vmem:[#allocation7] sm:$0x3]  ;;  %s5879_s22 = sld [smem:[#allocation49_spill]]  ;;  %vm1621_vm3 = vcmask 130048  }
 0x18d   : > { %s5428_s10 = sshll.u32 %s5896_s23, 3  ;;  %v1561_v25 = vperm.slane %v1559_v24, 0  ;;  %s4899_s23 = smov 64   ;;  %v1562_v29 = vperm.slane %v1559_v24, 1  ;;  %vm1647_vm4 = vcmask 64512  }
 0x18e   : > { %s4900_s7 = smov 112   ;;  %s4901_s1 = smov 32  }
 0x18f   : > { %s4902_s11 = smov 96   ;;  %s4903_s8 = smov 16  }
 0x190   : > { %s1497_s28 = scalar_lea.vmem %s5877_s13, %s5428_s10  ;;  %s4904_s9 = smov 80  }
 0x191   : > { %v1506_v1 = vld [vmem:[%s1497_s28] sm:$0xff]  ;;  %v1557_v2 = vld [vmem:[%s5878_s26 + $0x70] sm:$0xff]  ;;  %v1558_v3 = vld [vmem:[%s5878_s26 + $0x78] sm:$0xff]  ;;  %s4905_s4 = smov 48   ;;  %s5881_s6 = sld [smem:[#allocation51_spill]] }
 0x192   : > { %1577 = vmatpush.msra.mxu1 %v1557_v2  ;;  %v1555_v4 = vld [vmem:[%s5878_s26 + $0x60] sm:$0xff]  ;;  %3739 = vmatmul.msk.f32.vlgmr.msra.gmra.mxu2 %vm1512_vm1, %v1506_v1  ;;  %v1556_v5 = vld [vmem:[%s5878_s26 + $0x68] sm:$0xff]  ;;  %v1553_v6 = vld [vmem:[%s5878_s26 + $0x50] sm:$0xff]  ;;  %s5880_s0 = smov %s5879_s22  ;;  %s5882_s2 = sld [smem:[#allocation52_spill]] }
 0x193   : > { %1597 = vmatpush.msrb.mxu2 %v1558_v3  ;;  %v1554_v7 = vld [vmem:[%s5878_s26 + $0x58] sm:$0xff]  ;;  %v1551_v8 = vld [vmem:[%s5878_s26 + $0x40] sm:$0xff]  ;;  %v1552_v9 = vld [vmem:[%s5878_s26 + $0x48] sm:$0xff]  ;;  %s5883_s13 = sld [smem:[#allocation46_spill]] }
 0x194   : > { %1578 = vmatpush.msra.mxu1 %v1555_v4  ;;  %v1549_v10 = vld [vmem:[%s5878_s26 + $0x30] sm:$0xff]  ;;  %v1550_v11 = vld [vmem:[%s5878_s26 + $0x38] sm:$0xff]  ;;  %v1547_v12 = vld [vmem:[%s5878_s26 + $0x20] sm:$0xff]  ;;  %s5884_s28 = sld [smem:[#allocation55_spill]] }
 0x195   : > { %1598 = vmatpush.msrb.mxu2 %v1556_v5  ;;  %v1548_v13 = vld [vmem:[%s5878_s26 + $0x28] sm:$0xff]  ;;  %v1545_v14 = vld [vmem:[%s5878_s26 + $0x10] sm:$0xff]  ;;  %v1546_v15 = vld [vmem:[%s5878_s26 + $0x18] sm:$0xff] }
 0x196   : > { %1579 = vmatpush.msra.mxu1 %v1553_v6  ;;  %v1543_v16 = vld [vmem:[%s5878_s26] sm:$0xff]  ;;  %v1544_v17 = vld [vmem:[%s5878_s26 + $0x8] sm:$0xff] }
 0x197   : > { %1599 = vmatpush.msrb.mxu2 %v1554_v7  ;;  %v1610_v32 = vld [vmem:[%s5879_s22 + $0x8] sm:$0xff]  ;;  %v1609_v33 = vld [vmem:[%s5880_s0] sm:$0xff] }
 0x198   : > { %1580 = vmatpush.msra.mxu1 %v1551_v8  ;;  %v1614_v24 = vld [vmem:[%s5880_s0 + $0x28] sm:$0xff] }
 0x199   : > { %1600 = vmatpush.msrb.mxu2 %v1552_v9  ;;  %s1501_s22 = scalar_lea.vmem %s5883_s13, %s5428_s10  ;;  %s5885_s13 = sld [smem:[#allocation57_spill]] }
 0x19a   : > { %1581 = vmatpush.msra.mxu1 %v1549_v10 }
 0x19b   : > { %1601 = vmatpush.msrb.mxu2 %v1550_v11 }
 0x19c   : > { %1582 = vmatpush.msra.mxu1 %v1547_v12 }
 0x19d   : > { %1602 = vmatpush.msrb.mxu2 %v1548_v13 }
 0x19e   : > { %1583 = vmatpush.msra.mxu1 %v1545_v14 }
 0x19f   : > { %1603 = vmatpush.msrb.mxu2 %v1546_v15 }
 0x1a0   : > { %1584 = vmatpush.msra.mxu1 %v1543_v16 }
 0x1a1   : > { %1604 = vmatpush.msrb.mxu2 %v1544_v17 }
 0x1a2   : > { %1788 = vmatpush.msrb.mxu1 %v1610_v32  ;;  %v1615_v32 = vld [vmem:[%s5880_s0 + $0x30] sm:$0xff] }
 0x1a4   : > { %1789 = vmatpush.msrb.mxu1 %v1609_v33 }
 0x215   : > { %v1537_v19 = vpop.f32.mrf.mxu2 }
 0x216   : > { %v1538_v20 = vadd.f32 %v5453_v18, %v1537_v19 }
 0x218   : > { %v1540_v22 = vmul.f32 8.0, %v1538_v20  ;;  %v1612_v20 = vld [vmem:[%s5880_s0 + $0x18] sm:$0xff] }
 0x21a   : > { %v5456_v23 = vadd.f32 %v1541_v21, %v1540_v22  ;;  %v1611_v22 = vld [vmem:[%s5880_s0 + $0x10] sm:$0xff] }
 0x21c   : > { %3740 = vmatmul.msk.f32.vlgmr.msra.gmra.mxu1 %vm1565_vm2, %v5456_v23  ;;  %3741 = vmatmul.msk.f32.vlgmr.msrb.gmra.mxu2 %vm1565_vm2, %v5456_v23 }
 0x299   : > { %v1586_v26 = vpop.f32.mrf.mxu1 }
 0x29a   : > { %v1587_v27 = vadd.f32 %v1586_v26, %v1561_v25  ;;  %v1613_v25 = vld [vmem:[%s5880_s0 + $0x20] sm:$0xff] }
 0x29c   : > { %1619 = vrot.lane.b32.xlu0 %v1587_v27, %s4899_s23  ;;  %v1617_v28 = vmul.f32 0.25, %v1587_v27 }
 0x29e   : > { %1682 = vrot.lane.b32.xlu2 %v1617_v28, %s4900_s7 }
 0x29f   : > { %v1606_v30 = vpop.f32.mrf.mxu2 }
 0x2a0   : > { %v5464_v31 = vadd.f32 %v1606_v30, %v1562_v29 }
 0x2a2   : > { %1677 = vmatpush.msra.mxu0 %v5464_v31 }
 0x2a6   : > { %1796 = vrot.lane.b32.xlu2 %v1587_v27, %s4901_s1 }
 0x2ae   : > { %1794 = vrot.lane.b32.xlu2 %v1617_v28, %s4902_s11 }
 0x2b6   : > { %1885 = vrot.lane.b32.xlu2 %v1587_v27, %s4903_s8 }
 0x2be   : > { %1883 = vrot.lane.b32.xlu2 %v1617_v28, %s4904_s9 }
 0x2f8   : > { %v1683_v34 = vpop.permute.xlu2 %1682 }
 0x300   : > { %v1797_v35 = vpop.permute.xlu2 %1796 }
 0x308   : > { %v1795_v36 = vpop.permute.xlu2 %1794 }
 0x30e   : > { %v1620_v37 = vpop.permute.xlu0 %1619 }
 0x30f   : > { %3742 = vmatpush.xpose.msk.msra.mxu2 %vm1621_vm3, %v1620_v37 }
 0x310   : > { %v1886_v38 = vpop.permute.xlu2 %1885 }
 0x311   : > { %3754 = vmatpush.xpose.msk.msra.mxu1 %vm1621_vm3, %v1886_v38  ;;  %v4073_v38 = vld [vmem:[#allocation9] ss:$0 sm:$0xff] }
 0x312   : > { %3743 = vmatmul.msk.f32.vlgmr.msra.gmra.mxu2 %vm1621_vm3, %v1617_v28 }
 0x313   : > { %3750 = vmatpush.xpose.msk.msrb.mxu2 %vm1621_vm3, %v1797_v35 }
 0x318   : > { %v1884_v53 = vpop.permute.xlu2 %1883 }
 0x31a   : > { %3751 = vmatmul.msk.f32.vlgmr.msrb.gmra.mxu2 %vm1621_vm3, %v1795_v36 }
 0x395   : > { %v1644_v39 = vpop.f32.mrf.mxu2 }
 0x396   : > { %v1648_v40 = vsel %vm1647_vm4, %v1644_v39, -inf }
 0x397   : > { %1649 = vmax.xlane.f32.xlu0 %v1648_v40 }
 0x39d   : > { %v1819_v41 = vpop.f32.mrf.mxu2 }
 0x39e   : > { %v1822_v42 = vsel %vm1647_vm4, %v1819_v41, -inf }
 0x39f   : > { %1823 = vmax.xlane.f32.xlu2 %v1822_v42 }
 0x3b7   : > { %1833 = vrot.lane.b32.xlu2 %v5464_v31, %s4902_s11 }
 0x40a   : > { %v1650_v43 = vpop.xlane.xlu0 %1649 }
 0x40b   : > { %v1651_v44 = vsub.f32 %v1644_v39, %v1650_v43 }
 0x40d   : > { %v1652_v45 = vmul.f32 1.442695, %v1651_v44  ;;  %v4906_v44 = vmov 64.0  }
 0x40f   : > { %4091 = vpow2.f32 %v1652_v45 }
 0x412   : > { %v1824_v59 = vpop.xlane.xlu2 %1823 }
 0x413   : > { %v1825_v62 = vsub.f32 %v1819_v41, %v1824_v59  ;;  %v2027_v59 = vld [vmem:[%s5881_s6 + $0x50] sm:$0xff] }
 0x415   : > { %v4092_v46 = vpop.eup %4091  ;;  %v1826_v1 = vmul.f32 1.442695, %v1825_v62  ;;  %v2026_v62 = vld [vmem:[%s5881_s6 + $0x48] sm:$0xff] }
 0x416   : > { %v1654_v47 = vsel %vm1647_vm4, %v4092_v46, 0.0 }
 0x417   : > { %1655 = vadd.xlane.f32.xlu1 %v1654_v47 }
 0x41a   : > { %v1834_v16 = vpop.permute.xlu2 %1833 }
 0x430   : > { %1684 = vrot.lane.b32.xlu1 %v1587_v27, %s4905_s4  ;;  %v1616_v27 = vld [vmem:[%s5880_s0 + $0x38] sm:$0xff] }
 0x48a   : > { %v1656_v48 = vpop.xlane.xlu1 %1655 }
 0x48b   : > { %4093 = vrcp.f32 %v1656_v48 }
 0x491   : > { %v4094_v49 = vpop.eup %4093 }
 0x492   : > { %v1658_v50 = vmul.f32 %v4094_v49, %v4092_v46 }
 0x494   : > { %3744 = vmatmul.msk.f32.vlgmr.msra.gmra.mxu0 %vm1647_vm4, %v1658_v50 }
 0x4a2   : > { %v1685_v51 = vpop.permute.xlu1 %1684 }
 0x4a3   : > { %3745 = vmatpush.xpose.msk.msra.mxu3 %vm1621_vm3, %v1685_v51 }
 0x4a6   : > { %3746 = vmatmul.msk.f32.vlgmr.msra.gmra.mxu3 %vm1621_vm3, %v1683_v34 }
 0x4a7   : > { %1765 = vmatpush.msrb.mxu3 %v1612_v20  ;;  %v2111_v20 = vld [vmem:[%s5882_s2 + $0xd8] sm:$0xff] }
 0x4a9   : > { %1766 = vmatpush.msrb.mxu3 %v1611_v22  ;;  %v2095_v22 = vld [vmem:[%s5882_s2 + $0x58] sm:$0xff] }
 0x4ab   : > { %1876 = vmatpush.msra.mxu3 %v1614_v24  ;;  %v2110_v24 = vld [vmem:[%s5882_s2 + $0xd0] sm:$0xff] }
 0x4ad   : > { %1877 = vmatpush.msra.mxu3 %v1613_v25 }
 0x511   : > { %v1679_v52 = vpop.f32.mrf.mxu0 }
 0x512   : > { %3749 = vmatmul.msk.f32.vlgmr.msrb.gmra.mxu1 %vm1621_vm3, %v1679_v52 }
 0x51a   : > { %3755 = vmatmul.msk.f32.vlgmr.msra.gmra.mxu1 %vm1621_vm3, %v1884_v53 }
 0x529   : > { %v1707_v54 = vpop.f32.mrf.mxu3 }
 0x52a   : > { %v1710_v55 = vsel %vm1647_vm4, %v1707_v54, -inf }
 0x52b   : > { %1711 = vmax.xlane.f32.xlu1 %v1710_v55  ;;  %v2031_v55 = vld [vmem:[%s5881_s6 + $0x70] sm:$0xff] }
 0x58f   : > { %v5490_v56 = vpop.f32.mrf.mxu1 }
 0x597   : > { %v1908_v57 = vpop.f32.mrf.mxu1 }
 0x598   : > { %v1911_v58 = vsel %vm1647_vm4, %v1908_v57, -inf }
 0x599   : > { %1912 = vmax.xlane.f32.xlu0 %v1911_v58  ;;  %v2030_v58 = vld [vmem:[%s5881_s6 + $0x68] sm:$0xff] }
 0x59e   : > { %v1712_v60 = vpop.xlane.xlu1 %1711 }
 0x59f   : > { %v1713_v61 = vsub.f32 %v1707_v54, %v1712_v60  ;;  %v2028_v60 = vld [vmem:[%s5881_s6 + $0x58] sm:$0xff] }
 0x5a1   : > { %v1714_v63 = vmul.f32 1.442695, %v1713_v61  ;;  %v2025_v61 = vld [vmem:[%s5881_s6 + $0x40] sm:$0xff] }
 0x5a3   : > { %4095 = vpow2.f32 %v1714_v63  ;;  %v2023_v63 = vld [vmem:[%s5881_s6 + $0x30] sm:$0xff] }
 0x5a4   : > { %4097 = vpow2.f32 %v1826_v1  ;;  %v2024_v1 = vld [vmem:[%s5881_s6 + $0x38] sm:$0xff] }
 0x5a9   : > { %v4096_v2 = vpop.eup %4095 }
 0x5aa   : > { %v1716_v3 = vsel %vm1647_vm4, %v4096_v2, 0.0  ;;  %v4098_v4 = vpop.eup %4097 }
 0x5ab   : > { %1717 = vadd.xlane.f32.xlu0 %v1716_v3  ;;  %v1828_v5 = vsel %vm1647_vm4, %v4098_v4, 0.0  ;;  %v2022_v3 = vld [vmem:[%s5881_s6 + $0x28] sm:$0xff] }
 0x5b3   : > { %1829 = vadd.xlane.f32.xlu0 %v1828_v5  ;;  %v2020_v5 = vld [vmem:[%s5881_s6 + $0x18] sm:$0xff] }
 0x5c7   : > { %1722 = vrot.lane.b32.xlu0 %v5464_v31, %s4900_s7 }
 0x60c   : > { %v1913_v6 = vpop.xlane.xlu0 %1912 }
 0x60d   : > { %v1914_v7 = vsub.f32 %v1908_v57, %v1913_v6  ;;  %v2029_v57 = vld [vmem:[%s5881_s6 + $0x60] sm:$0xff] }
 0x60e   : > { %v2017_v6 = vld [vmem:[%s5881_s6] sm:$0xff] }
 0x60f   : > { %v1915_v8 = vmul.f32 1.442695, %v1914_v7  ;;  %v2018_v7 = vld [vmem:[%s5881_s6 + $0x8] sm:$0xff] }
 0x611   : > { %4099 = vpow2.f32 %v1915_v8 }
 0x617   : > { %v4100_v9 = vpop.eup %4099 }
 0x618   : > { %v1917_v10 = vsel %vm1647_vm4, %v4100_v9, 0.0 }
 0x619   : > { %1918 = vadd.xlane.f32.xlu1 %v1917_v10 }
 0x61e   : > { %v1718_v11 = vpop.xlane.xlu0 %1717 }
 0x61f   : > { %4101 = vrcp.f32 %v1718_v11  ;;  %v2115_v11 = vld [vmem:[%s5882_s2 + $0xf8] sm:$0xff] }
 0x625   : > { %v4102_v13 = vpop.eup %4101 }
 0x626   : > { %v1830_v12 = vpop.xlane.xlu0 %1829  ;;  %v1720_v15 = vmul.f32 %v4102_v13, %v4096_v2  ;;  %v2021_v2 = vld [vmem:[%s5881_s6 + $0x20] sm:$0xff]  ;;  %v2099_v13 = vld [vmem:[%s5882_s2 + $0x78] sm:$0xff] }
 0x627   : > { %4103 = vrcp.f32 %v1830_v12  ;;  %v2114_v12 = vld [vmem:[%s5882_s2 + $0xf0] sm:$0xff] }
 0x62d   : > { %v4104_v17 = vpop.eup %4103 }
 0x62e   : > { %v1832_v19 = vmul.f32 %v4104_v17, %v4098_v4  ;;  %v2019_v4 = vld [vmem:[%s5881_s6 + $0x10] sm:$0xff]  ;;  %v2096_v17 = vld [vmem:[%s5882_s2 + $0x60] sm:$0xff] }
 0x632   : > { %1922 = vrot.lane.b32.xlu1 %v5464_v31, %s4904_s9 }
 0x639   : > { %v1723_v14 = vpop.permute.xlu0 %1722 }
 0x63a   : > { %1743 = vmatpush.msrb.mxu0 %v1723_v14  ;;  %v2098_v14 = vld [vmem:[%s5882_s2 + $0x70] sm:$0xff] }
 0x63b   : > { %3747 = vmatmul.msk.f32.vlgmr.msrb.gmra.mxu0 %vm1647_vm4, %v1720_v15  ;;  %v2113_v15 = vld [vmem:[%s5882_s2 + $0xe8] sm:$0xff] }
 0x63c   : > { %1854 = vmatpush.msra.mxu0 %v1834_v16  ;;  %v2097_v16 = vld [vmem:[%s5882_s2 + $0x68] sm:$0xff] }
 0x63e   : > { %1965 = vmatpush.msrb.mxu0 %v1616_v27  ;;  %v2109_v27 = vld [vmem:[%s5882_s2 + $0xc8] sm:$0xff] }
 0x640   : > { %1966 = vmatpush.msrb.mxu0 %v1615_v32  ;;  %v2092_v32 = vld [vmem:[%s5882_s2 + $0x40] sm:$0xff] }
 0x643   : > { %3752 = vmatmul.msk.f32.vlgmr.msra.gmra.mxu0 %vm1647_vm4, %v1832_v19 }
 0x644   : > { %2140 = vmatpush.msra.mxu0 %v2115_v11 }
 0x646   : > { %2141 = vmatpush.msra.mxu0 %v2114_v12 }
 0x648   : > { %2142 = vmatpush.msra.mxu0 %v2113_v15 }
 0x68c   : > { %v1919_v21 = vpop.xlane.xlu1 %1918 }
 0x68d   : > { %4105 = vrcp.f32 %v1919_v21 }
 0x68e   : > { %4107 = vrcp.f32 %v4906_v44  ;;  %v2104_v44 = vld [vmem:[%s5882_s2 + $0xa0] sm:$0xff] }
 0x693   : > { %v4106_v26 = vpop.eup %4105 }
 0x694   : > { %v1921_v28 = vmul.f32 %v4106_v26, %v4100_v9  ;;  %v4108_v45 = vpop.eup %4107  ;;  %v2094_v26 = vld [vmem:[%s5882_s2 + $0x50] sm:$0xff] }
 0x695   : > { %v1982_v46 = vmul.f32 64.0, %v4108_v45  ;;  %vm1986_vm5 = vweird.f32 %v4108_v45 }
 0x697   : > { %v1983_v47 = vsub.f32 1.0, %v1982_v46  ;;  %v2103_v46 = vld [vmem:[%s5882_s2 + $0x98] sm:$0xff] }
 0x699   : > { %v1984_v48 = vmul.f32 %v4108_v45, %v1983_v47  ;;  %v2193_v47 = vld [vmem:[%s1501_s22] sm:$0xff]  ;;  %s5886_s22 = sld [smem:[#allocation58_spill]] }
 0x69b   : > { %v1985_v49 = vadd.f32 %v4108_v45, %v1984_v48  ;;  %v2089_v48 = vld [vmem:[%s5882_s2 + $0x28] sm:$0xff] }
 0x69d   : > { %v5515_v50 = vsel %vm1986_vm5, %v4108_v45, %v1985_v49  ;;  %v2102_v49 = vld [vmem:[%s5882_s2 + $0x90] sm:$0xff] }
 0x6a4   : > { %v1923_v29 = vpop.permute.xlu1 %1922 }
 0x6a5   : > { %1943 = vmatpush.msra.mxu2 %v1923_v29  ;;  %v2093_v29 = vld [vmem:[%s5882_s2 + $0x48] sm:$0xff] }
 0x6a6   : > { %3756 = vmatmul.msk.f32.vlgmr.msra.gmra.mxu2 %vm1647_vm4, %v1921_v28 }
 0x6a7   : > { %2120 = vmatpush.msrb.mxu2 %v2099_v13 }
 0x6a9   : > { %2121 = vmatpush.msrb.mxu2 %v2098_v14 }
 0x6ab   : > { %2122 = vmatpush.msrb.mxu2 %v2097_v16 }
 0x6ad   : > { %2123 = vmatpush.msrb.mxu2 %v2096_v17 }
 0x6af   : > { %2124 = vmatpush.msrb.mxu2 %v2095_v22  ;;  %v2234_v22 = vld [vmem:[#allocation19] sm:$0x3] }
 0x6b1   : > { %2125 = vmatpush.msrb.mxu2 %v2094_v26 }
 0x6b3   : > { %2126 = vmatpush.msrb.mxu2 %v2093_v29 }
 0x6b5   : > { %2127 = vmatpush.msrb.mxu2 %v2092_v32 }
 0x6b8   : > { %v1745_v30 = vpop.f32.mrf.mxu0 }
 0x6b9   : > { %3748 = vmatmul.msk.f32.vlgmr.msrb.gmra.mxu3 %vm1621_vm3, %v1745_v30  ;;  %v2108_v30 = vld [vmem:[%s5882_s2 + $0xc0] sm:$0xff] }
 0x6ba   : > { %2050 = vmatpush.msrb.mxu3 %v2031_v55  ;;  %v2233_v55 = vld [vmem:[%s5884_s28 + $0x78] sm:$0xff] }
 0x6bc   : > { %2051 = vmatpush.msrb.mxu3 %v2029_v57  ;;  %v2230_v57 = vld [vmem:[%s5884_s28 + $0x60] sm:$0xff] }
 0x6be   : > { %2052 = vmatpush.msrb.mxu3 %v2027_v59  ;;  %v2085_v59 = vld [vmem:[%s5882_s2 + $0x8] sm:$0xff] }
 0x6c0   : > { %v1856_v31 = vpop.f32.mrf.mxu0  ;;  %2053 = vmatpush.msrb.mxu3 %v2025_v61  ;;  %v2229_v61 = vld [vmem:[%s5884_s28 + $0x58] sm:$0xff] }
 0x6c1   : > { %3753 = vmatmul.msk.f32.vlgmr.msra.gmra.mxu3 %vm1621_vm3, %v1856_v31 }
 0x6c2   : > { %2054 = vmatpush.msrb.mxu3 %v2023_v63  ;;  %v2226_v63 = vld [vmem:[%s5884_s28 + $0x40] sm:$0xff] }
 0x6c4   : > { %2055 = vmatpush.msrb.mxu3 %v2021_v2  ;;  %v2224_v2 = vld [vmem:[%s5884_s28 + $0x30] sm:$0xff] }
 0x6c6   : > { %2056 = vmatpush.msrb.mxu3 %v2019_v4  ;;  %v2222_v4 = vld [vmem:[%s5884_s28 + $0x20] sm:$0xff] }
 0x6c8   : > { %2057 = vmatpush.msrb.mxu3 %v2017_v6  ;;  %v2220_v6 = vld [vmem:[%s5884_s28 + $0x10] sm:$0xff] }
 0x6ca   : > { %3760 = vmatpush.msk.msra.mxu3 %vm1516_vm0, %v5432_v0  ;;  %v2112_v0 = vld [vmem:[%s5882_s2 + $0xe0] sm:$0xff] }
 0x6cb   : > { %2143 = vmatpush.msra.mxu0 %v2112_v0 }
 0x6cd   : > { %2144 = vmatpush.msra.mxu0 %v2111_v20 }
 0x6cf   : > { %2145 = vmatpush.msra.mxu0 %v2110_v24  ;;  %v2236_v24 = vperm.slane %v2234_v22, 0 }
 0x6d1   : > { %2146 = vmatpush.msra.mxu0 %v2109_v27 }
 0x6d3   : > { %2147 = vmatpush.msra.mxu0 %v2108_v30 }
 0x729   : > { %v1945_v33 = vpop.f32.mrf.mxu2 }
 0x72a   : > { %3757 = vmatmul.msk.f32.vlgmr.msrb.gmra.mxu0 %vm1621_vm3, %v1945_v33  ;;  %v2107_v33 = vld [vmem:[%s5882_s2 + $0xb8] sm:$0xff] }
 0x72b   : > { %2148 = vmatpush.msra.mxu0 %v2107_v33 }
 0x73c   : > { %v1768_v34 = vpop.f32.mrf.mxu3 }
 0x73d   : > { %v1792_v36 = vadd.f32 %v5490_v56, %v1768_v34  ;;  %v2032_v56 = vld [vmem:[%s5881_s6 + $0x78] sm:$0xff] }
 0x73e   : > { %2070 = vmatpush.msrb.mxu1 %v2032_v56  ;;  %v2086_v56 = vld [vmem:[%s5882_s2 + $0x10] sm:$0xff] }
 0x740   : > { %2071 = vmatpush.msrb.mxu1 %v2030_v58  ;;  %v2231_v58 = vld [vmem:[%s5884_s28 + $0x68] sm:$0xff] }
 0x742   : > { %2072 = vmatpush.msrb.mxu1 %v2028_v60  ;;  %v2228_v60 = vld [vmem:[%s5884_s28 + $0x50] sm:$0xff] }
 0x744   : > { %v1879_v35 = vpop.f32.mrf.mxu3  ;;  %2073 = vmatpush.msrb.mxu1 %v2026_v62  ;;  %v2084_v62 = vld [vmem:[%s5882_s2] sm:$0xff] }
 0x745   : > { %v1882_v37 = vadd.f32 %v1879_v35, %v1792_v36  ;;  %v2091_v35 = vld [vmem:[%s5882_s2 + $0x38] sm:$0xff]  ;;  %v4074_v36 = vld [vmem:[#allocation10] ss:$0 sm:$0xff] }
 0x746   : > { %2074 = vmatpush.msrb.mxu1 %v2024_v1  ;;  %2128 = vmatpush.msrb.mxu2 %v2091_v35  ;;  %v2227_v1 = vld [vmem:[%s5884_s28 + $0x48] sm:$0xff] }
 0x748   : > { %2075 = vmatpush.msrb.mxu1 %v2022_v3  ;;  %v2225_v3 = vld [vmem:[%s5884_s28 + $0x38] sm:$0xff] }
 0x74a   : > { %2076 = vmatpush.msrb.mxu1 %v2020_v5  ;;  %v2223_v5 = vld [vmem:[%s5884_s28 + $0x28] sm:$0xff] }
 0x74c   : > { %2077 = vmatpush.msrb.mxu1 %v2018_v7  ;;  %v2221_v7 = vld [vmem:[%s5884_s28 + $0x18] sm:$0xff] }
 0x7a7   : > { %v1968_v39 = vpop.f32.mrf.mxu0 }
 0x7a8   : > { %v1971_v40 = vadd.f32 %v1968_v39, %v1882_v37  ;;  %v2106_v37 = vld [vmem:[%s5882_s2 + $0xb0] sm:$0xff] }
 0x7a9   : > { %v2090_v39 = vld [vmem:[%s5882_s2 + $0x30] sm:$0xff]  ;;  %2149 = vmatpush.msra.mxu0 %v2106_v37 }
 0x7aa   : > { %v1976_v41 = vadd.f32 %v4073_v38, %v1971_v40  ;;  %2129 = vmatpush.msrb.mxu2 %v2090_v39  ;;  %v2283_v39 = vld [vmem:[%s5885_s13] sm:$0xff] }
 0x7ac   : > { %v1977_v42 = vadd.f32 %v1976_v41, %v5456_v23  ;;  %v4075_v41 = vld [vmem:[#allocation12] ss:$0 sm:$0xff]  ;;  %2130 = vmatpush.msrb.mxu2 %v2089_v48 }
 0x7ae   : > { %v1978_v43 = vsel %vm1565_vm2, %v1977_v42, 0.0 }
 0x7af   : > { %1979 = vadd.xlane.f32.xlu0 %v1978_v43 }
 0x822   : > { %v1980_v23 = vpop.xlane.xlu0 %1979 }
 0x823   : > { %v1988_v51 = vmul.f32 %v5515_v50, %v1980_v23  ;;  %v2088_v23 = vld [vmem:[%s5882_s2 + $0x20] sm:$0xff] }
 0x824   : > { %2131 = vmatpush.msrb.mxu2 %v2088_v23 }
 0x825   : > { %v5518_v52 = vsub.f32 %v1977_v42, %v1988_v51  ;;  %v2105_v42 = vld [vmem:[%s5882_s2 + $0xa8] sm:$0xff] }
 0x826   : > { %2150 = vmatpush.msra.mxu0 %v2105_v42  ;;  %v2101_v51 = vld [vmem:[%s5882_s2 + $0x88] sm:$0xff] }
 0x827   : > { %v1990_v53 = vmul.f32 %v5518_v52, %v5518_v52 }
 0x828   : > { %2151 = vmatpush.msra.mxu0 %v2104_v44 }
 0x829   : > { %v1991_v54 = vsel %vm1565_vm2, %v1990_v53, 0.0  ;;  %v2100_v53 = vld [vmem:[%s5882_s2 + $0x80] sm:$0xff] }
 0x82a   : > { %1992 = vadd.xlane.f32.xlu2 %v1991_v54  ;;  %2152 = vmatpush.msra.mxu0 %v2103_v46  ;;  %v2232_v54 = vld [vmem:[%s5884_s28 + $0x70] sm:$0xff] }
 0x82b   : > { %2251 = vmatpush.msra.mxu1 %v2232_v54 }
 0x82c   : > { %2153 = vmatpush.msra.mxu0 %v2102_v49 }
 0x82d   : > { %2252 = vmatpush.msra.mxu1 %v2230_v57 }
 0x82e   : > { %2154 = vmatpush.msra.mxu0 %v2101_v51 }
 0x82f   : > { %2253 = vmatpush.msra.mxu1 %v2228_v60 }
 0x830   : > { %2155 = vmatpush.msra.mxu0 %v2100_v53 }
 0x831   : > { %2254 = vmatpush.msra.mxu1 %v2226_v63 }
 0x833   : > { %2255 = vmatpush.msra.mxu1 %v2224_v2 }
 0x835   : > { %2256 = vmatpush.msra.mxu1 %v2222_v4 }
 0x837   : > { %2257 = vmatpush.msra.mxu1 %v2220_v6 }
 0x89d   : > { %v1993_v8 = vpop.xlane.xlu2 %1992 }
 0x89e   : > { %v1994_v9 = vmul.f32 %v1993_v8, %v5515_v50  ;;  %v2218_v8 = vld [vmem:[%s5884_s28] sm:$0xff] }
 0x89f   : > { %2258 = vmatpush.msra.mxu1 %v2218_v8 }
 0x8a0   : > { %v1995_v10 = vadd.f32 1e-05, %v1994_v9  ;;  %v2219_v9 = vld [vmem:[%s5884_s28 + $0x8] sm:$0xff] }
 0x8a2   : > { %4109 = vrsqrt.f32 %v1995_v10  ;;  %vm2002_vm7 = vweird.f32 %v1995_v10 }
 0x8a8   : > { %v4110_v19 = vpop.eup %4109 }
 0x8a9   : > { %v1997_v21 = vmul.f32 %v4110_v19, %v1995_v10  ;;  %vm2003_vm6 = vweird.f32 %v4110_v19  ;;  %v2033_v10 = vld [vmem:[#allocation13] sm:$0x3] }
 0x8aa   : > { %vm2004_vm8 = vmor %vm2002_vm7, %vm2003_vm6  ;;  %v2036_v11 = vperm.slane %v2033_v10, 1  ;;  %v2035_v15 = vperm.slane %v2033_v10, 0 }
 0x8ab   : > { %v1998_v25 = vmul.f32 %v4110_v19, %v1997_v21 }
 0x8ad   : > { %v1999_v28 = vmul.f32 0.5, %v1998_v25 }
 0x8af   : > { %v2000_v31 = vsub.f32 1.5, %v1999_v28  ;;  %v2237_v28 = vperm.slane %v2234_v22, 1 }
 0x8b1   : > { %v2001_v34 = vmul.f32 %v4110_v19, %v2000_v31 }
 0x8b3   : > { %v2005_v38 = vsel %vm2004_vm8, %v4110_v19, %v2001_v34 }
 0x8b4   : > { %v2006_v40 = vmul.f32 %v2005_v38, %v5518_v52  ;;  %v2087_v52 = vld [vmem:[%s5882_s2 + $0x18] sm:$0xff]  ;;  %v2284_v38 = vld [vmem:[%s5885_s13 + $0x8] sm:$0xff] }
 0x8b5   : > { %2132 = vmatpush.msrb.mxu2 %v2087_v52 }
 0x8b6   : > { %v2011_v43 = vmul.f32 %v4074_v36, %v2006_v40 }
 0x8b7   : > { %2133 = vmatpush.msrb.mxu2 %v2086_v56 }
 0x8b8   : > { %v5565_v45 = vadd.f32 %v4075_v41, %v2011_v43 }
 0x8b9   : > { %2134 = vmatpush.msrb.mxu2 %v2085_v59 }
 0x8ba   : > { %3758 = vmatmul.msk.f32.vlgmr.msrb.gmra.mxu3 %vm1565_vm2, %v5565_v45  ;;  %3759 = vmatmul.msk.f32.vlgmr.msrb.gmra.mxu1 %vm1565_vm2, %v5565_v45 }
 0x8bb   : > { %2271 = vmatpush.msrb.mxu3 %v2233_v55  ;;  %2135 = vmatpush.msrb.mxu2 %v2084_v62 }
 0x8bd   : > { %2272 = vmatpush.msrb.mxu3 %v2231_v58 }
 0x8bf   : > { %2273 = vmatpush.msrb.mxu3 %v2229_v61 }
 0x8c1   : > { %2274 = vmatpush.msrb.mxu3 %v2227_v1 }
 0x8c2   : > { %3761 = vmatmul.msk.f32.vlgmr.msra.gmra.mxu3 %vm1512_vm1, %v2193_v47 }
 0x8c3   : > { %2275 = vmatpush.msrb.mxu3 %v2225_v3 }
 0x8c5   : > { %2276 = vmatpush.msrb.mxu3 %v2223_v5 }
 0x8c7   : > { %2277 = vmatpush.msrb.mxu3 %v2221_v7  ;;  %v4076_v7 = vld [vmem:[#allocation15] ss:$0 sm:$0xff] }
 0x8c9   : > { %2278 = vmatpush.msrb.mxu3 %v2219_v9 }
 0x937   : > { %v2079_v12 = vpop.f32.mrf.mxu1 }
 0x938   : > { %v2080_v13 = vadd.f32 %v2079_v12, %v2036_v11 }
 0x93a   : > { %v2083_v14 = vmax.f32 %v2080_v13, 0.0 }
 0x93c   : > { %2156 = vmatmul.f32.vlgmr.msra.gmra.mxu0 %v2083_v14 }
 0x93d   : > { %v2059_v16 = vpop.f32.mrf.mxu3 }
 0x93e   : > { %v2060_v0 = vadd.f32 %v2059_v16, %v2035_v15 }
 0x940   : > { %v2082_v17 = vmax.f32 %v2060_v0, 0.0 }
 0x942   : > { %2136 = vmatmul.f32.vlgmr.msrb.gmra.mxu2 %v2082_v17 }
 0x945   : > { %v2214_v19 = vpop.f32.mrf.mxu3 }
 0x946   : > { %v2215_v20 = vadd.f32 %v5453_v18, %v2214_v19 }
 0x948   : > { %v5601_v21 = vmul.f32 8.0, %v2215_v20 }
 0x94a   : > { %3762 = vmatmul.msk.f32.vlgmr.msra.gmra.mxu1 %vm1565_vm2, %v5601_v21  ;;  %3763 = vmatmul.msk.f32.vlgmr.msrb.gmra.mxu3 %vm1565_vm2, %v5601_v21 }
 0x9b9   : > { %v2157_v51 = vpop.f32.mrf.mxu0 }
 0x9c5   : > { %v2137_v23 = vpop.f32.mrf.mxu2 }
 0x9c6   : > { %v2138_v8 = vadd.f32 %v4076_v7, %v2137_v23 }
 0x9c7   : > { %v2260_v25 = vpop.f32.mrf.mxu1 }
 0x9c8   : > { %v2261_v26 = vadd.f32 %v2260_v25, %v2236_v24  ;;  %v2158_v9 = vadd.f32 %v2157_v51, %v2138_v8 }
 0x9ca   : > { %2293 = vrot.lane.b32.xlu1 %v2261_v26, %s4899_s23  ;;  %v2291_v27 = vmul.f32 0.25, %v2261_v26  ;;  %v2160_v10 = vadd.f32 %v2158_v9, %v5565_v45 }
 0x9cc   : > { %2354 = vrot.lane.b32.xlu2 %v2291_v27, %s4900_s7  ;;  %v2161_v11 = vsel %vm1565_vm2, %v2160_v10, 0.0 }
 0x9cd   : > { %v2280_v29 = vpop.f32.mrf.mxu3 }
 0x9ce   : > { %v5609_v18 = vadd.f32 %v2280_v29, %v2237_v28 }
 0x9d0   : > { %2349 = vmatpush.msra.mxu2 %v5609_v18 }
 0x9d2   : > { %2460 = vmatpush.msrb.mxu2 %v2284_v38 }
 0x9d4   : > { %2468 = vrot.lane.b32.xlu2 %v2261_v26, %s4901_s1  ;;  %2461 = vmatpush.msrb.mxu2 %v2283_v39 }
 0xa26   : > { %v2355_v43 = vpop.permute.xlu2 %2354 }
 0xa2e   : > { %v2469_v47 = vpop.permute.xlu2 %2468 }
 0xa3c   : > { %v2294_v30 = vpop.permute.xlu1 %2293 }
 0xa3d   : > { %3764 = vmatpush.xpose.msk.msrb.mxu1 %vm1621_vm3, %v2294_v30 }
 0xa40   : > { %3765 = vmatmul.msk.f32.vlgmr.msrb.gmra.mxu1 %vm1621_vm3, %v2291_v27 }
 0xabd   : > { %v2317_v31 = vpop.f32.mrf.mxu1 }
 0xabe   : > { %v2320_v32 = vsel %vm1647_vm4, %v2317_v31, -inf }
 0xabf   : > { %2321 = vmax.xlane.f32.xlu1 %v2320_v32  ;;  %v2285_v32 = vld [vmem:[%s5885_s13 + $0x10] sm:$0xff] }
 0xad8   : > { %2557 = vrot.lane.b32.xlu1 %v2261_v26, %s4903_s8 }
 0xb32   : > { %v2322_v33 = vpop.xlane.xlu1 %2321 }
 0xb33   : > { %v2323_v34 = vsub.f32 %v2317_v31, %v2322_v33  ;;  %v2286_v31 = vld [vmem:[%s5885_s13 + $0x18] sm:$0xff]  ;;  %v2288_v33 = vld [vmem:[%s5885_s13 + $0x28] sm:$0xff] }
 0xb34   : > { %2437 = vmatpush.msra.mxu1 %v2286_v31  ;;  %v2684_v31 = vld [vmem:[#allocation24 + $0x10] sm:$0xff] }
 0xb35   : > { %v2324_v35 = vmul.f32 1.442695, %v2323_v34 }
 0xb36   : > { %2438 = vmatpush.msra.mxu1 %v2285_v32  ;;  %v2683_v32 = vld [vmem:[#allocation24 + $0x8] sm:$0xff] }
 0xb37   : > { %4111 = vpow2.f32 %v2324_v35  ;;  %v2287_v35 = vld [vmem:[%s5885_s13 + $0x20] sm:$0xff] }
 0xb38   : > { %2548 = vmatpush.msrb.mxu1 %v2288_v33  ;;  %v2682_v33 = vld [vmem:[#allocation24] sm:$0xff] }
 0xb3a   : > { %2549 = vmatpush.msrb.mxu1 %v2287_v35 }
 0xb3d   : > { %v4112_v36 = vpop.eup %4111 }
 0xb3e   : > { %v2326_v37 = vsel %vm1647_vm4, %v4112_v36, 0.0 }
 0xb3f   : > { %2327 = vadd.xlane.f32.xlu0 %v2326_v37 }
 0xb4a   : > { %v2558_v44 = vpop.permute.xlu1 %2557 }
 0xb53   : > { %2356 = vrot.lane.b32.xlu0 %v2261_v26, %s4905_s4 }
 0xb5b   : > { %2555 = vrot.lane.b32.xlu0 %v2291_v27, %s4904_s9 }
 0xb63   : > { %2466 = vrot.lane.b32.xlu0 %v2291_v27, %s4902_s11 }
 0xbb2   : > { %v2328_v40 = vpop.xlane.xlu0 %2327 }
 0xbb3   : > { %4113 = vrcp.f32 %v2328_v40  ;;  %v2724_v40 = vld [vmem:[#allocation27 + $0x38] sm:$0xff] }
 0xbb9   : > { %v4114_v41 = vpop.eup %4113 }
 0xbba   : > { %v2330_v42 = vmul.f32 %v4114_v41, %v4112_v36  ;;  %v2723_v41 = vld [vmem:[#allocation27 + $0x30] sm:$0xff] }
 0xbbc   : > { %3766 = vmatmul.msk.f32.vlgmr.msra.gmra.mxu2 %vm1647_vm4, %v2330_v42  ;;  %v2722_v42 = vld [vmem:[#allocation27 + $0x28] sm:$0xff] }
 0xbbd   : > { %3776 = vmatpush.xpose.msk.msra.mxu2 %vm1621_vm3, %v2558_v44  ;;  %v2720_v44 = vld [vmem:[#allocation27 + $0x18] sm:$0xff] }
 0xbc5   : > { %v2357_v46 = vpop.permute.xlu0 %2356 }
 0xbc6   : > { %3767 = vmatpush.xpose.msk.msrb.mxu0 %vm1621_vm3, %v2357_v46  ;;  %v2719_v46 = vld [vmem:[#allocation27 + $0x10] sm:$0xff] }
 0xbc9   : > { %3768 = vmatmul.msk.f32.vlgmr.msrb.gmra.mxu0 %vm1621_vm3, %v2355_v43  ;;  %v2721_v43 = vld [vmem:[#allocation27 + $0x20] sm:$0xff] }
 0xbca   : > { %3772 = vmatpush.xpose.msk.msra.mxu0 %vm1621_vm3, %v2469_v47  ;;  %v2718_v47 = vld [vmem:[#allocation27 + $0x8] sm:$0xff] }
 0xbcd   : > { %v2556_v48 = vpop.permute.xlu0 %2555 }
 0xbd5   : > { %v2467_v49 = vpop.permute.xlu0 %2466 }
 0xbd6   : > { %3773 = vmatmul.msk.f32.vlgmr.msra.gmra.mxu0 %vm1621_vm3, %v2467_v49  ;;  %v2290_v49 = vld [vmem:[%s5885_s13 + $0x38] sm:$0xff] }
 0xc3f   : > { %v2351_v52 = vpop.f32.mrf.mxu2 }
 0xc40   : > { %3771 = vmatmul.msk.f32.vlgmr.msrb.gmra.mxu2 %vm1621_vm3, %v2351_v52 }
 0xc41   : > { %2740 = vmatpush.msrb.mxu2 %v2724_v40 }
 0xc43   : > { %2741 = vmatpush.msrb.mxu2 %v2723_v41 }
 0xc45   : > { %2742 = vmatpush.msrb.mxu2 %v2722_v42  ;;  %v4081_v42 = vld [vmem:[#allocation21] ss:$0 sm:$0xff] }
 0xc46   : > { %v2379_v53 = vpop.f32.mrf.mxu0 }
 0xc47   : > { %v2382_v54 = vsel %vm1647_vm4, %v2379_v53, -inf  ;;  %2743 = vmatpush.msrb.mxu2 %v2721_v43 }
 0xc48   : > { %2383 = vmax.xlane.f32.xlu2 %v2382_v54  ;;  %3777 = vmatmul.msk.f32.vlgmr.msra.gmra.mxu2 %vm1621_vm3, %v2556_v48  ;;  %v2717_v48 = vld [vmem:[#allocation27] sm:$0xff] }
 0xc49   : > { %2744 = vmatpush.msrb.mxu2 %v2720_v44 }
 0xc4b   : > { %2745 = vmatpush.msrb.mxu2 %v2719_v46  ;;  %v4082_v46 = vld [vmem:[#allocation22] ss:$0 sm:$0xff] }
 0xc4d   : > { %2746 = vmatpush.msrb.mxu2 %v2718_v47 }
 0xc4f   : > { %2747 = vmatpush.msrb.mxu2 %v2717_v48 }
 0xc53   : > { %v2491_v55 = vpop.f32.mrf.mxu0 }
 0xc54   : > { %v2494_v56 = vsel %vm1647_vm4, %v2491_v55, -inf }
 0xc55   : > { %2495 = vmax.xlane.f32.xlu0 %v2494_v56 }
 0xcbb   : > { %v2384_v57 = vpop.xlane.xlu2 %2383 }
 0xcbc   : > { %v2385_v58 = vsub.f32 %v2379_v53, %v2384_v57 }
 0xcbe   : > { %v2386_v59 = vmul.f32 1.442695, %v2385_v58 }
 0xcc0   : > { %4115 = vpow2.f32 %v2386_v59  ;;  %v4077_v59 = vld [vmem:[#allocation16] ss:$0 sm:$0xff] }
 0xcc3   : > { %v5633_v60 = vpop.f32.mrf.mxu2 }
 0xcc6   : > { %v4116_v61 = vpop.eup %4115 }
 0xcc7   : > { %v2388_v62 = vsel %vm1647_vm4, %v4116_v61, 0.0 }
 0xcc8   : > { %2389 = vadd.xlane.f32.xlu2 %v2388_v62  ;;  %v2496_v63 = vpop.xlane.xlu0 %2495 }
 0xcc9   : > { %v2497_v1 = vsub.f32 %v2491_v55, %v2496_v63  ;;  %v4078_v63 = vld [vmem:[#allocation18] ss:$0 sm:$0xff] }
 0xccb   : > { %v2498_v2 = vmul.f32 1.442695, %v2497_v1  ;;  %v2580_v3 = vpop.f32.mrf.mxu2 }
 0xccc   : > { %v2583_v4 = vsel %vm1647_vm4, %v2580_v3, -inf }
 0xccd   : > { %4117 = vpow2.f32 %v2498_v2  ;;  %2584 = vmax.xlane.f32.xlu1 %v2583_v4 }
 0xcd3   : > { %v4118_v5 = vpop.eup %4117 }
 0xcd4   : > { %v2500_v6 = vsel %vm1647_vm4, %v4118_v5, 0.0 }
 0xcd5   : > { %2501 = vadd.xlane.f32.xlu0 %v2500_v6 }
 0xce6   : > { %2394 = vrot.lane.b32.xlu1 %v5609_v18, %s4900_s7 }
 0xce9   : > { %2505 = vrot.lane.b32.xlu0 %v5609_v18, %s4902_s11 }
 0xd13   : > { %2162 = vadd.xlane.f32.xlu0 %v2161_v11 }
 0xd3b   : > { %v2390_v16 = vpop.xlane.xlu2 %2389 }
 0xd40   : > { %v2585_v12 = vpop.xlane.xlu1 %2584 }
 0xd41   : > { %v2586_v13 = vsub.f32 %v2580_v3, %v2585_v12  ;;  %v2289_v3 = vld [vmem:[%s5885_s13 + $0x30] sm:$0xff]  ;;  %v4080_v12 = vld [vmem:[%s5886_s22] ss:$0 sm:$0xff] }
 0xd43   : > { %v2587_v14 = vmul.f32 1.442695, %v2586_v13 }
 0xd45   : > { %4119 = vpow2.f32 %v2587_v14 }
 0xd46   : > { %4121 = vrcp.f32 %v2390_v16 }
 0xd48   : > { %v2502_v17 = vpop.xlane.xlu0 %2501 }
 0xd49   : > { %4123 = vrcp.f32 %v2502_v17  ;;  %v2753_v17 = vld [vmem:[#allocation30 + $0x8] sm:$0xff] }
 0xd4a   : > { %2929 = vmatpush.msra.mxu2 %v2753_v17 }
 0xd4b   : > { %v4120_v15 = vpop.eup %4119 }
 0xd4c   : > { %v2589_v0 = vsel %vm1647_vm4, %v4120_v15, 0.0  ;;  %v4122_v19 = vpop.eup %4121 }
 0xd4d   : > { %2590 = vadd.xlane.f32.xlu2 %v2589_v0  ;;  %v2392_v20 = vmul.f32 %v4122_v19, %v4116_v61  ;;  %v2752_v19 = vld [vmem:[#allocation30] sm:$0xff] }
 0xd4e   : > { %2930 = vmatpush.msra.mxu2 %v2752_v19 }
 0xd4f   : > { %v4124_v24 = vpop.eup %4123 }
 0xd50   : > { %v2504_v25 = vmul.f32 %v4124_v24, %v4118_v5  ;;  %v4079_v5 = vld [vmem:[#allocation28] ss:$0 sm:$0xff] }
 0xd58   : > { %v2395_v22 = vpop.permute.xlu1 %2394 }
 0xd59   : > { %2415 = vmatpush.msra.mxu3 %v2395_v22 }
 0xd5a   : > { %3769 = vmatmul.msk.f32.vlgmr.msra.gmra.mxu3 %vm1647_vm4, %v2392_v20 }
 0xd5b   : > { %v2506_v45 = vpop.permute.xlu0 %2505 }
 0xd5c   : > { %2526 = vmatpush.msrb.mxu3 %v2506_v45 }
 0xd5e   : > { %2637 = vmatpush.msra.mxu3 %v2290_v49  ;;  %v4083_v49 = vld [vmem:[#allocation25] ss:$0 sm:$0xff] }
 0xd60   : > { %2638 = vmatpush.msra.mxu3 %v2289_v3 }
 0xd62   : > { %3774 = vmatmul.msk.f32.vlgmr.msrb.gmra.mxu3 %vm1647_vm4, %v2504_v25 }
 0xd65   : > { %2594 = vrot.lane.b32.xlu2 %v5609_v18, %s4904_s9 }
 0xd86   : > { %v2163_v26 = vpop.xlane.xlu0 %2162 }
 0xd87   : > { %v2164_v27 = vmul.f32 %v2163_v26, %v5515_v50  ;;  %v2689_v26 = vld [vmem:[#allocation24 + $0x38] sm:$0xff] }
 0xd89   : > { %v2165_v28 = vsub.f32 %v2160_v10, %v2164_v27  ;;  %v2688_v27 = vld [vmem:[#allocation24 + $0x30] sm:$0xff] }
 0xd8b   : > { %v2166_v29 = vmul.f32 %v2165_v28, %v2165_v28 }
 0xd8d   : > { %v2167_v30 = vsel %vm1565_vm2, %v2166_v29, 0.0  ;;  %v2686_v29 = vld [vmem:[#allocation24 + $0x20] sm:$0xff] }
 0xd8e   : > { %2168 = vadd.xlane.f32.xlu2 %v2167_v30  ;;  %v2685_v30 = vld [vmem:[#allocation24 + $0x18] sm:$0xff] }
 0xdc0   : > { %v2591_v34 = vpop.xlane.xlu2 %2590 }
 0xdc1   : > { %4125 = vrcp.f32 %v2591_v34 }
 0xdc7   : > { %v4126_v36 = vpop.eup %4125 }
 0xdc8   : > { %v2593_v18 = vmul.f32 %v4126_v36, %v4120_v15  ;;  %v2595_v37 = vpop.permute.xlu2 %2594 }
 0xdc9   : > { %2615 = vmatpush.msrb.mxu0 %v2595_v37 }
 0xdca   : > { %3778 = vmatmul.msk.f32.vlgmr.msrb.gmra.mxu0 %vm1647_vm4, %v2593_v18 }
 0xddd   : > { %v2417_v38 = vpop.f32.mrf.mxu3 }
 0xdde   : > { %3770 = vmatmul.msk.f32.vlgmr.msra.gmra.mxu1 %vm1621_vm3, %v2417_v38 }
 0xddf   : > { %2705 = vmatpush.msra.mxu1 %v2689_v26 }
 0xde1   : > { %2706 = vmatpush.msra.mxu1 %v2688_v27 }
 0xde5   : > { %v2528_v39 = vpop.f32.mrf.mxu3 }
 0xde6   : > { %3775 = vmatmul.msk.f32.vlgmr.msrb.gmra.mxu1 %vm1621_vm3, %v2528_v39 }
 0xe01   : > { %v2169_v23 = vpop.xlane.xlu2 %2168 }
 0xe02   : > { %v2170_v51 = vmul.f32 %v2169_v23, %v5515_v50 }
 0xe04   : > { %v2171_v52 = vadd.f32 1e-05, %v2170_v51 }
 0xe06   : > { %4127 = vrsqrt.f32 %v2171_v52  ;;  %vm2178_vm10 = vweird.f32 %v2171_v52 }
 0xe0c   : > { %v4128_v53 = vpop.eup %4127 }
 0xe0d   : > { %v2173_v54 = vmul.f32 %v4128_v53, %v2171_v52  ;;  %vm2179_vm9 = vweird.f32 %v4128_v53 }
 0xe0e   : > { %vm2180_vm11 = vmor %vm2178_vm10, %vm2179_vm9 }
 0xe0f   : > { %v2174_v55 = vmul.f32 %v4128_v53, %v2173_v54 }
 0xe11   : > { %v2175_v56 = vmul.f32 0.5, %v2174_v55 }
 0xe13   : > { %v2176_v57 = vsub.f32 1.5, %v2175_v56 }
 0xe15   : > { %v2177_v58 = vmul.f32 %v4128_v53, %v2176_v57 }
 0xe17   : > { %v2181_v61 = vsel %vm2180_vm11, %v4128_v53, %v2177_v58 }
 0xe18   : > { %v2182_v62 = vmul.f32 %v2181_v61, %v2165_v28  ;;  %v2687_v28 = vld [vmem:[#allocation24 + $0x28] sm:$0xff] }
 0xe19   : > { %2707 = vmatpush.msra.mxu1 %v2687_v28 }
 0xe1a   : > { %v2187_v1 = vmul.f32 %v4077_v59, %v2182_v62 }
 0xe1b   : > { %2708 = vmatpush.msra.mxu1 %v2686_v29 }
 0xe1c   : > { %v2192_v2 = vadd.f32 %v4078_v63, %v2187_v1 }
 0xe1d   : > { %2709 = vmatpush.msra.mxu1 %v2685_v30 }
 0xe1e   : > { %3781 = vmatmul.msk.f32.vlgmr.msrb.gmra.mxu2 %vm1565_vm2, %v2192_v2 }
 0xe1f   : > { %2710 = vmatpush.msra.mxu1 %v2684_v31 }
 0xe21   : > { %2711 = vmatpush.msra.mxu1 %v2683_v32 }
 0xe23   : > { %2712 = vmatpush.msra.mxu1 %v2682_v33 }
 0xe47   : > { %v2617_v4 = vpop.f32.mrf.mxu0 }
 0xe48   : > { %3779 = vmatmul.msk.f32.vlgmr.msra.gmra.mxu3 %vm1621_vm3, %v2617_v4 }
 0xe5b   : > { %v2440_v8 = vpop.f32.mrf.mxu1 }
 0xe5c   : > { %v2464_v10 = vadd.f32 %v5633_v60, %v2440_v8 }
 0xe63   : > { %v2551_v9 = vpop.f32.mrf.mxu1 }
 0xe64   : > { %v2554_v11 = vadd.f32 %v2551_v9, %v2464_v10 }
 0xea1   : > { %v2749_v6 = vpop.f32.mrf.mxu2 }
 0xea2   : > { %v5663_v7 = vadd.f32 %v4079_v5, %v2749_v6 }
 0xea4   : > { %2826 = vrot.lane.b32.xlu2 %v5663_v7, %s4900_s7  ;;  %3782 = vmatpush.xpose.msk.msra.mxu0 %vm1621_vm3, %v5663_v7 }
 0xeac   : > { %3026 = vrot.lane.b32.xlu2 %v5663_v7, %s4904_s9 }
 0xecb   : > { %v2640_v13 = vpop.f32.mrf.mxu3 }
 0xecc   : > { %v2643_v14 = vadd.f32 %v2640_v13, %v2554_v11 }
 0xece   : > { %v2648_v15 = vadd.f32 %v4080_v12, %v2643_v14 }
 0xed0   : > { %v2649_v16 = vadd.f32 %v2648_v15, %v5601_v21 }
 0xed2   : > { %v2650_v0 = vsel %vm1565_vm2, %v2649_v16, 0.0 }
 0xed3   : > { %2651 = vadd.xlane.f32.xlu1 %v2650_v0 }
 0xefe   : > { %v2827_v20 = vpop.permute.xlu2 %2826 }
 0xeff   : > { %3785 = vmatpush.xpose.msk.msrb.mxu0 %vm1621_vm3, %v2827_v20 }
 0xf06   : > { %v3027_v22 = vpop.permute.xlu2 %3026 }
 0xf07   : > { %3794 = vmatpush.xpose.msk.msrb.mxu2 %vm1621_vm3, %v3027_v22 }
 0xf46   : > { %v2652_v60 = vpop.xlane.xlu1 %2651 }
 0xf47   : > { %v2653_v45 = vmul.f32 %v2652_v60, %v5515_v50 }
 0xf49   : > { %v2654_v24 = vsub.f32 %v2649_v16, %v2653_v45 }
 0xf4b   : > { %v2655_v25 = vmul.f32 %v2654_v24, %v2654_v24 }
 0xf4d   : > { %v2656_v21 = vsel %vm1565_vm2, %v2655_v25, 0.0 }
 0xf4e   : > { %2657 = vadd.xlane.f32.xlu0 %v2656_v21 }
 0xfc1   : > { %v2658_v34 = vpop.xlane.xlu0 %2657 }
 0xfc2   : > { %v2659_v35 = vmul.f32 %v2658_v34, %v5515_v50 }
 0xfc4   : > { %v2660_v36 = vadd.f32 1e-05, %v2659_v35 }
 0xfc6   : > { %4129 = vrsqrt.f32 %v2660_v36  ;;  %vm2667_vm13 = vweird.f32 %v2660_v36 }
 0xfcc   : > { %v4130_v18 = vpop.eup %4129 }
 0xfcd   : > { %v2662_v37 = vmul.f32 %v4130_v18, %v2660_v36  ;;  %vm2668_vm12 = vweird.f32 %v4130_v18 }
 0xfce   : > { %vm2669_vm14 = vmor %vm2667_vm13, %vm2668_vm12 }
 0xfcf   : > { %v2663_v38 = vmul.f32 %v4130_v18, %v2662_v37  ;;  %v2754_v37 = vld [vmem:[#allocation30 + $0x10] sm:$0xff] }
 0xfd1   : > { %v2664_v39 = vmul.f32 0.5, %v2663_v38  ;;  %v2757_v38 = vld [vmem:[#allocation30 + $0x28] sm:$0xff] }
 0xfd3   : > { %v2665_v40 = vsub.f32 1.5, %v2664_v39  ;;  %v2756_v39 = vld [vmem:[#allocation30 + $0x20] sm:$0xff] }
 0xfd5   : > { %v2666_v41 = vmul.f32 %v4130_v18, %v2665_v40 }
 0xfd7   : > { %v2670_v43 = vsel %vm2669_vm14, %v4130_v18, %v2666_v41  ;;  %v2755_v18 = vld [vmem:[#allocation30 + $0x18] sm:$0xff] }
 0xfd8   : > { %v2671_v44 = vmul.f32 %v2670_v43, %v2654_v24  ;;  %2906 = vmatpush.msrb.mxu1 %v2755_v18 }
 0xfda   : > { %v2676_v47 = vmul.f32 %v4081_v42, %v2671_v44  ;;  %2907 = vmatpush.msrb.mxu1 %v2754_v37 }
 0xfdc   : > { %v5680_v48 = vadd.f32 %v4082_v46, %v2676_v47  ;;  %v2759_v46 = vld [vmem:[#allocation30 + $0x38] sm:$0xff]  ;;  %v2758_v47 = vld [vmem:[#allocation30 + $0x30] sm:$0xff] }
 0xfde   : > { %3780 = vmatmul.msk.f32.vlgmr.msra.gmra.mxu1 %vm1565_vm2, %v5680_v48 }
 0xfdf   : > { %3017 = vmatpush.msra.mxu1 %v2757_v38 }
 0xfe1   : > { %3018 = vmatpush.msra.mxu1 %v2756_v39 }
0x105b   : > { %v2714_v23 = vpop.f32.mrf.mxu1 }
0x105c   : > { %v2715_v51 = vadd.f32 %v4083_v49, %v2714_v23 }
0x105e   : > { %v2760_v52 = vmul.f32 0.25, %v2715_v51 }
0x1060   : > { %2935 = vrot.lane.b32.xlu2 %v2760_v52, %s4902_s11  ;;  %3783 = vmatmul.msk.f32.vlgmr.msra.gmra.mxu0 %vm1621_vm3, %v2760_v52 }
0x10ba   : > { %v2936_v4 = vpop.permute.xlu2 %2935 }
0x10dd   : > { %v2784_v53 = vpop.f32.mrf.mxu0 }
0x10de   : > { %v2787_v54 = vsel %vm1647_vm4, %v2784_v53, -inf }
0x10df   : > { %2788 = vmax.xlane.f32.xlu1 %v2787_v54  ;;  %v4084_v54 = vld [vmem:[#allocation31] ss:$0 sm:$0xff] }
0x10f8   : > { %2798 = vrot.lane.b32.xlu1 %v5663_v7, %s4899_s23  ;;  %s5887_s23 = sld [smem:[#allocation68_spill]] }
0x1100   : > { %3024 = vrot.lane.b32.xlu1 %v2760_v52, %s4904_s9  ;;  %s5892_s9 = sld [smem:[#allocation72_spill]] }
0x1152   : > { %v2789_v55 = vpop.xlane.xlu1 %2788 }
0x1153   : > { %v2790_v56 = vsub.f32 %v2784_v53, %v2789_v55 }
0x1155   : > { %v2791_v57 = vmul.f32 1.442695, %v2790_v56 }
0x1157   : > { %4131 = vpow2.f32 %v2791_v57 }
0x115d   : > { %v4132_v58 = vpop.eup %4131 }
0x115e   : > { %v2793_v59 = vsel %vm1647_vm4, %v4132_v58, 0.0 }
0x115f   : > { %2794 = vadd.xlane.f32.xlu0 %v2793_v59 }
0x116a   : > { %v2799_v61 = vpop.permute.xlu1 %2798 }
0x116b   : > { %2819 = vmatpush.msrb.mxu3 %v2799_v61 }
0x1172   : > { %v3025_v9 = vpop.permute.xlu1 %3024 }
0x1173   : > { %2824 = vrot.lane.b32.xlu0 %v2760_v52, %s4900_s7  ;;  %s5888_s7 = sld [smem:[#allocation70_spill]] }
0x1179   : > { %v3225_v37 = vld [vmem:[%s5888_s7 + $0x38] sm:$0xff] }
0x117a   : > { %v3241_v39 = vld [vmem:[%s5888_s7 + $0xb8] sm:$0xff] }
0x117b   : > { %2937 = vrot.lane.b32.xlu0 %v5663_v7, %s4902_s11  ;;  %s5890_s11 = sld [smem:[#allocation69_spill]] }
0x11d2   : > { %v2795_v62 = vpop.xlane.xlu0 %2794 }
0x11d3   : > { %4133 = vrcp.f32 %v2795_v62 }
0x11d9   : > { %v4134_v63 = vpop.eup %4133 }
0x11da   : > { %v2797_v1 = vmul.f32 %v4134_v63, %v4132_v58 }
0x11dc   : > { %3784 = vmatmul.msk.f32.vlgmr.msrb.gmra.mxu3 %vm1647_vm4, %v2797_v1 }
0x11e5   : > { %v2825_v2 = vpop.permute.xlu0 %2824 }
0x11e6   : > { %3786 = vmatmul.msk.f32.vlgmr.msrb.gmra.mxu0 %vm1621_vm3, %v2825_v2 }
0x11ed   : > { %v2938_v3 = vpop.permute.xlu0 %2937 }
0x11ee   : > { %3790 = vmatpush.xpose.msk.msra.mxu0 %vm1621_vm3, %v2938_v3  ;;  %v3165_v3 = vld [vmem:[%s5887_s23 + $0x70] sm:$0xff] }
0x11f1   : > { %3791 = vmatmul.msk.f32.vlgmr.msra.gmra.mxu0 %vm1621_vm3, %v2936_v4  ;;  %v3163_v4 = vld [vmem:[%s5887_s23 + $0x60] sm:$0xff] }
0x125f   : > { %v2821_v5 = vpop.f32.mrf.mxu3 }
0x1260   : > { %3789 = vmatmul.msk.f32.vlgmr.msra.gmra.mxu2 %vm1621_vm3, %v2821_v5  ;;  %v3164_v5 = vld [vmem:[%s5887_s23 + $0x68] sm:$0xff] }
0x1263   : > { %v2849_v6 = vpop.f32.mrf.mxu0 }
0x1264   : > { %v2852_v8 = vsel %vm1647_vm4, %v2849_v6, -inf }
0x1265   : > { %2853 = vmax.xlane.f32.xlu1 %v2852_v8  ;;  %v3162_v8 = vld [vmem:[%s5887_s23 + $0x58] sm:$0xff] }
0x1268   : > { %3795 = vmatmul.msk.f32.vlgmr.msrb.gmra.mxu2 %vm1621_vm3, %v3025_v9  ;;  %v3159_v9 = vld [vmem:[%s5887_s23 + $0x40] sm:$0xff] }
0x126e   : > { %v2960_v10 = vpop.f32.mrf.mxu0 }
0x126f   : > { %v2963_v11 = vsel %vm1647_vm4, %v2960_v10, -inf }
0x1270   : > { %2964 = vmax.xlane.f32.xlu0 %v2963_v11  ;;  %v3157_v11 = vld [vmem:[%s5887_s23 + $0x30] sm:$0xff] }
0x12d8   : > { %v2854_v12 = vpop.xlane.xlu1 %2853 }
0x12d9   : > { %v2855_v13 = vsub.f32 %v2849_v6, %v2854_v12  ;;  %v3161_v6 = vld [vmem:[%s5887_s23 + $0x50] sm:$0xff]  ;;  %v3158_v12 = vld [vmem:[%s5887_s23 + $0x38] sm:$0xff] }
0x12db   : > { %v2856_v14 = vmul.f32 1.442695, %v2855_v13  ;;  %v3155_v13 = vld [vmem:[%s5887_s23 + $0x20] sm:$0xff] }
0x12dd   : > { %4135 = vpow2.f32 %v2856_v14  ;;  %v3156_v14 = vld [vmem:[%s5887_s23 + $0x28] sm:$0xff] }
0x12e3   : > { %v4136_v15 = vpop.eup %4135  ;;  %v2965_v16 = vpop.xlane.xlu0 %2964 }
0x12e4   : > { %v5702_v0 = vpop.f32.mrf.mxu2  ;;  %v2966_v17 = vsub.f32 %v2960_v10, %v2965_v16  ;;  %v2858_v19 = vsel %vm1647_vm4, %v4136_v15, 0.0  ;;  %v3160_v10 = vld [vmem:[%s5887_s23 + $0x48] sm:$0xff]  ;;  %v3154_v16 = vld [vmem:[%s5887_s23 + $0x18] sm:$0xff] }
0x12e5   : > { %2859 = vadd.xlane.f32.xlu1 %v2858_v19  ;;  %v3233_v19 = vld [vmem:[%s5888_s7 + $0x78] sm:$0xff] }
0x12e6   : > { %v2967_v20 = vmul.f32 1.442695, %v2966_v17  ;;  %v3152_v17 = vld [vmem:[%s5887_s23 + $0x8] sm:$0xff] }
0x12e8   : > { %4137 = vpow2.f32 %v2967_v20  ;;  %v3232_v20 = vld [vmem:[%s5888_s7 + $0x70] sm:$0xff] }
0x12ec   : > { %v3049_v22 = vpop.f32.mrf.mxu2 }
0x12ed   : > { %v3052_v60 = vsel %vm1647_vm4, %v3049_v22, -inf }
0x12ee   : > { %3053 = vmax.xlane.f32.xlu2 %v3052_v60  ;;  %v4138_v45 = vpop.eup %4137  ;;  %v3231_v60 = vld [vmem:[%s5888_s7 + $0x68] sm:$0xff] }
0x12ef   : > { %v2969_v24 = vsel %vm1647_vm4, %v4138_v45, 0.0 }
0x12f0   : > { %2970 = vadd.xlane.f32.xlu0 %v2969_v24 }
0x1304   : > { %2974 = vrot.lane.b32.xlu0 %v5663_v7, %s4901_s1  ;;  %s5889_s1 = sld [smem:[#allocation67_spill]] }
0x1306   : > { %2863 = vrot.lane.b32.xlu2 %v5663_v7, %s4905_s4  ;;  %s5893_s4 = sld [smem:[#allocation73_spill]] }
0x130c   : > { %s1505_s22 = scalar_lea.vmem %s5893_s4, %s5428_s10 }
0x1358   : > { %v2860_v25 = vpop.xlane.xlu1 %2859 }
0x1359   : > { %4139 = vrcp.f32 %v2860_v25  ;;  %v3247_v25 = vld [vmem:[%s5888_s7 + $0xe8] sm:$0xff] }
0x135f   : > { %v4140_v28 = vpop.eup %4139 }
0x1360   : > { %v2862_v29 = vmul.f32 %v4140_v28, %v4136_v15  ;;  %v3153_v15 = vld [vmem:[%s5887_s23 + $0x10] sm:$0xff] }
0x1361   : > { %v3054_v21 = vpop.xlane.xlu2 %3053 }
0x1362   : > { %v3055_v26 = vsub.f32 %v3049_v22, %v3054_v21  ;;  %v3249_v22 = vld [vmem:[%s5888_s7 + $0xf8] sm:$0xff] }
0x1363   : > { %v2971_v31 = vpop.xlane.xlu0 %2970 }
0x1364   : > { %v3056_v27 = vmul.f32 1.442695, %v3055_v26  ;;  %v3230_v26 = vld [vmem:[%s5888_s7 + $0x60] sm:$0xff] }
0x1366   : > { %4141 = vpow2.f32 %v3056_v27  ;;  %v3246_v27 = vld [vmem:[%s5888_s7 + $0xe0] sm:$0xff] }
0x1367   : > { %4143 = vrcp.f32 %v2971_v31  ;;  %v3228_v31 = vld [vmem:[%s5888_s7 + $0x50] sm:$0xff] }
0x1369   : > { %v2864_v30 = vpop.permute.xlu2 %2863 }
0x136a   : > { %2884 = vmatpush.msra.mxu3 %v2864_v30  ;;  %v3245_v30 = vld [vmem:[%s5888_s7 + $0xd8] sm:$0xff] }
0x136b   : > { %3787 = vmatmul.msk.f32.vlgmr.msra.gmra.mxu3 %vm1647_vm4, %v2862_v29  ;;  %v3229_v29 = vld [vmem:[%s5888_s7 + $0x58] sm:$0xff] }
0x136c   : > { %v4142_v32 = vpop.eup %4141 }
0x136d   : > { %v3058_v33 = vsel %vm1647_vm4, %v4142_v32, 0.0  ;;  %v4144_v34 = vpop.eup %4143 }
0x136e   : > { %3059 = vadd.xlane.f32.xlu1 %v3058_v33  ;;  %v2973_v35 = vmul.f32 %v4144_v34, %v4138_v45  ;;  %v3248_v45 = vld [vmem:[%s5888_s7 + $0xf0] sm:$0xff]  ;;  %v3227_v33 = vld [vmem:[%s5888_s7 + $0x48] sm:$0xff] }
0x136f   : > { %v3243_v34 = vld [vmem:[%s5888_s7 + $0xc8] sm:$0xff] }
0x1376   : > { %v2975_v36 = vpop.permute.xlu0 %2974 }
0x1377   : > { %2995 = vmatpush.msrb.mxu3 %v2975_v36  ;;  %v3242_v36 = vld [vmem:[%s5888_s7 + $0xc0] sm:$0xff] }
0x1378   : > { %3792 = vmatmul.msk.f32.vlgmr.msrb.gmra.mxu3 %vm1647_vm4, %v2973_v35  ;;  %v3226_v35 = vld [vmem:[%s5888_s7 + $0x40] sm:$0xff] }
0x1379   : > { %3106 = vmatpush.msra.mxu3 %v2759_v46 }
0x137b   : > { %3107 = vmatpush.msra.mxu3 %v2758_v47  ;;  %v3221_v47 = vld [vmem:[%s5888_s7 + $0x18] sm:$0xff] }
0x137d   : > { %3274 = vmatpush.msrb.mxu3 %v3249_v22 }
0x137f   : > { %3275 = vmatpush.msrb.mxu3 %v3248_v45 }
0x1381   : > { %3276 = vmatpush.msrb.mxu3 %v3247_v25  ;;  %v3333_v25 = vld [vmem:[%s5100_s25 + $0x30] sm:$0xff] }
0x1383   : > { %3277 = vmatpush.msrb.mxu3 %v3246_v27  ;;  %v3330_v27 = vld [vmem:[%s5100_s25 + $0x18] sm:$0xff] }
0x1385   : > { %3278 = vmatpush.msrb.mxu3 %v3245_v30  ;;  %v3327_v30 = vld [vmem:[%s5100_s25] sm:$0xff] }
0x1387   : > { %3063 = vrot.lane.b32.xlu1 %v5663_v7, %s4903_s8  ;;  %s5891_s8 = sld [smem:[#allocation71_spill]] }
0x13e1   : > { %v3060_v40 = vpop.xlane.xlu1 %3059 }
0x13e2   : > { %4145 = vrcp.f32 %v3060_v40  ;;  %v3224_v40 = vld [vmem:[%s5888_s7 + $0x30] sm:$0xff] }
0x13e8   : > { %v4146_v42 = vpop.eup %4145 }
0x13e9   : > { %v3062_v43 = vmul.f32 %v4146_v42, %v4142_v32  ;;  %v3244_v32 = vld [vmem:[%s5888_s7 + $0xd0] sm:$0xff] }
0x13ea   : > { %3279 = vmatpush.msrb.mxu3 %v3244_v32  ;;  %v3240_v42 = vld [vmem:[%s5888_s7 + $0xb0] sm:$0xff] }
0x13ec   : > { %3280 = vmatpush.msrb.mxu3 %v3243_v34 }
0x13ee   : > { %v2886_v41 = vpop.f32.mrf.mxu3  ;;  %3281 = vmatpush.msrb.mxu3 %v3242_v36 }
0x13ef   : > { %3788 = vmatmul.msk.f32.vlgmr.msrb.gmra.mxu1 %vm1621_vm3, %v2886_v41 }
0x13f0   : > { %3184 = vmatpush.msrb.mxu1 %v3165_v3  ;;  %3282 = vmatpush.msrb.mxu3 %v3241_v39  ;;  %v3167_v3 = vld [vmem:[%s5890_s11] sm:$0x3] }
0x13f1   : > { %v4088_v39 = vld [vmem:[%s5892_s9] ss:$0 sm:$0xff] }
0x13f2   : > { %3185 = vmatpush.msrb.mxu1 %v3163_v4  ;;  %3283 = vmatpush.msrb.mxu3 %v3240_v42  ;;  %v4089_v42 = vld [vmem:[%s5095_s12] ss:$0 sm:$0xff] }
0x13f4   : > { %3186 = vmatpush.msrb.mxu1 %v3161_v6 }
0x13f6   : > { %3187 = vmatpush.msrb.mxu1 %v3159_v9 }
0x13f8   : > { %3188 = vmatpush.msrb.mxu1 %v3157_v11 }
0x13f9   : > { %v3064_v44 = vpop.permute.xlu1 %3063 }
0x13fa   : > { %3084 = vmatpush.msrb.mxu0 %v3064_v44  ;;  %3189 = vmatpush.msrb.mxu1 %v3155_v13 }
0x13fb   : > { %3796 = vmatmul.msk.f32.vlgmr.msrb.gmra.mxu0 %vm1647_vm4, %v3062_v43  ;;  %v2997_v7 = vpop.f32.mrf.mxu3  ;;  %v3223_v43 = vld [vmem:[%s5888_s7 + $0x28] sm:$0xff] }
0x13fc   : > { %3793 = vmatmul.msk.f32.vlgmr.msra.gmra.mxu1 %vm1621_vm3, %v2997_v7  ;;  %3254 = vmatpush.msra.mxu0 %v3233_v19  ;;  %v3222_v7 = vld [vmem:[%s5888_s7 + $0x20] sm:$0xff] }
0x13fd   : > { %3190 = vmatpush.msrb.mxu1 %v3153_v15 }
0x13fe   : > { %3255 = vmatpush.msra.mxu0 %v3232_v20 }
0x1400   : > { %3256 = vmatpush.msra.mxu0 %v3231_v60 }
0x1402   : > { %3257 = vmatpush.msra.mxu0 %v3230_v26  ;;  %v3331_v26 = vld [vmem:[%s5100_s25 + $0x20] sm:$0xff] }
0x1404   : > { %3258 = vmatpush.msra.mxu0 %v3229_v29  ;;  %v3328_v29 = vld [vmem:[%s5100_s25 + $0x8] sm:$0xff] }
0x1406   : > { %3259 = vmatpush.msra.mxu0 %v3228_v31 }
0x1408   : > { %3260 = vmatpush.msra.mxu0 %v3227_v33 }
0x140a   : > { %3261 = vmatpush.msra.mxu0 %v3226_v35 }
0x140c   : > { %3262 = vmatpush.msra.mxu0 %v3225_v37 }
0x140e   : > { %3263 = vmatpush.msra.mxu0 %v3224_v40 }
0x1410   : > { %3264 = vmatpush.msra.mxu0 %v3223_v43 }
0x1412   : > { %3265 = vmatpush.msra.mxu0 %v3222_v7 }
0x1414   : > { %3266 = vmatpush.msra.mxu0 %v3221_v47 }
0x146c   : > { %v2909_v23 = vpop.f32.mrf.mxu1 }
0x146d   : > { %v2933_v52 = vadd.f32 %v5702_v0, %v2909_v23  ;;  %v3151_v0 = vld [vmem:[%s5887_s23] sm:$0xff]  ;;  %v4085_v23 = vld [vmem:[#allocation33] ss:$0 sm:$0xff] }
0x146e   : > { %3191 = vmatpush.msrb.mxu1 %v3151_v0 }
0x1478   : > { %v3086_v49 = vpop.f32.mrf.mxu0 }
0x1479   : > { %3797 = vmatmul.msk.f32.vlgmr.msra.gmra.mxu3 %vm1621_vm3, %v3086_v49  ;;  %v3020_v51 = vpop.f32.mrf.mxu1 }
0x147a   : > { %v3023_v53 = vadd.f32 %v3020_v51, %v2933_v52 }
0x14fc   : > { %v3109_v55 = vpop.f32.mrf.mxu3 }
0x14fd   : > { %v3112_v56 = vadd.f32 %v3109_v55, %v3023_v53  ;;  %v4086_v53 = vld [vmem:[%s5889_s1] ss:$0 sm:$0xff] }
0x14ff   : > { %v3117_v57 = vadd.f32 %v4084_v54, %v3112_v56  ;;  %v3220_v56 = vld [vmem:[%s5888_s7 + $0x10] sm:$0xff] }
0x1500   : > { %3267 = vmatpush.msra.mxu0 %v3220_v56 }
0x1501   : > { %v3118_v58 = vadd.f32 %v3117_v57, %v5680_v48  ;;  %v3166_v48 = vld [vmem:[%s5887_s23 + $0x78] sm:$0xff]  ;;  %v3239_v57 = vld [vmem:[%s5888_s7 + $0xa8] sm:$0xff] }
0x1502   : > { %3204 = vmatpush.msra.mxu2 %v3166_v48  ;;  %3284 = vmatpush.msrb.mxu3 %v3239_v57  ;;  %v3169_v48 = vperm.slane %v3167_v3, 0 }
0x1503   : > { %v3119_v59 = vsel %vm1565_vm2, %v3118_v58, 0.0 }
0x1504   : > { %3120 = vadd.xlane.f32.xlu2 %v3119_v59  ;;  %3205 = vmatpush.msra.mxu2 %v3164_v5  ;;  %v3238_v59 = vld [vmem:[%s5888_s7 + $0xa0] sm:$0xff] }
0x1505   : > { %3285 = vmatpush.msrb.mxu3 %v3238_v59 }
0x1506   : > { %3206 = vmatpush.msra.mxu2 %v3162_v8  ;;  %v3170_v8 = vperm.slane %v3167_v3, 1 }
0x1508   : > { %3207 = vmatpush.msra.mxu2 %v3160_v10 }
0x150a   : > { %3208 = vmatpush.msra.mxu2 %v3158_v12  ;;  %v4087_v12 = vld [vmem:[%s5891_s8] ss:$0 sm:$0xff] }
0x150c   : > { %3209 = vmatpush.msra.mxu2 %v3156_v14 }
0x150e   : > { %3210 = vmatpush.msra.mxu2 %v3154_v16 }
0x1510   : > { %3211 = vmatpush.msra.mxu2 %v3152_v17 }
0x1577   : > { %v3121_v61 = vpop.xlane.xlu2 %3120 }
0x1578   : > { %v3122_v62 = vmul.f32 %v3121_v61, %v5515_v50  ;;  %v3218_v61 = vld [vmem:[%s5888_s7] sm:$0xff] }
0x157a   : > { %v5724_v63 = vsub.f32 %v3118_v58, %v3122_v62  ;;  %v3219_v58 = vld [vmem:[%s5888_s7 + $0x8] sm:$0xff]  ;;  %v3237_v62 = vld [vmem:[%s5888_s7 + $0x98] sm:$0xff] }
0x157b   : > { %3268 = vmatpush.msra.mxu0 %v3219_v58  ;;  %3286 = vmatpush.msrb.mxu3 %v3237_v62 }
0x157c   : > { %v3124_v1 = vmul.f32 %v5724_v63, %v5724_v63 }
0x157d   : > { %3269 = vmatpush.msra.mxu0 %v3218_v61 }
0x157e   : > { %v3125_v2 = vsel %vm1565_vm2, %v3124_v1, 0.0  ;;  %v3235_v1 = vld [vmem:[%s5888_s7 + $0x88] sm:$0xff] }
0x157f   : > { %3126 = vadd.xlane.f32.xlu0 %v3125_v2  ;;  %v3234_v2 = vld [vmem:[%s5888_s7 + $0x80] sm:$0xff] }
0x15f2   : > { %v3127_v24 = vpop.xlane.xlu0 %3126 }
0x15f3   : > { %v3128_v21 = vmul.f32 %v3127_v24, %v5515_v50  ;;  %v3334_v24 = vld [vmem:[%s5100_s25 + $0x38] sm:$0xff] }
0x15f4   : > { %3350 = vmatpush.msra.mxu1 %v3334_v24 }
0x15f5   : > { %v3129_v28 = vadd.f32 1e-05, %v3128_v21  ;;  %v3332_v21 = vld [vmem:[%s5100_s25 + $0x28] sm:$0xff] }
0x15f6   : > { %3351 = vmatpush.msra.mxu1 %v3333_v25 }
0x15f7   : > { %4147 = vrsqrt.f32 %v3129_v28  ;;  %vm3136_vm0 = vweird.f32 %v3129_v28 }
0x15f8   : > { %3352 = vmatpush.msra.mxu1 %v3332_v21 }
0x15fa   : > { %3353 = vmatpush.msra.mxu1 %v3331_v26 }
0x15fc   : > { %3354 = vmatpush.msra.mxu1 %v3330_v27 }
0x15fd   : > { %v4148_v18 = vpop.eup %4147 }
0x15fe   : > { %v3131_v38 = vmul.f32 %v4148_v18, %v3129_v28  ;;  %vm3137_vm15 = vweird.f32 %v4148_v18  ;;  %v3329_v28 = vld [vmem:[%s5100_s25 + $0x10] sm:$0xff] }
0x15ff   : > { %vm3138_vm3 = vmor %vm3136_vm0, %vm3137_vm15  ;;  %3355 = vmatpush.msra.mxu1 %v3329_v28 }
0x1600   : > { %v3132_v41 = vmul.f32 %v4148_v18, %v3131_v38 }
0x1601   : > { %3356 = vmatpush.msra.mxu1 %v3328_v29 }
0x1602   : > { %v3133_v44 = vmul.f32 0.5, %v3132_v41 }
0x1603   : > { %3357 = vmatpush.msra.mxu1 %v3327_v30 }
0x1604   : > { %v3134_v46 = vsub.f32 1.5, %v3133_v44 }
0x1606   : > { %v3135_v49 = vmul.f32 %v4148_v18, %v3134_v46 }
0x1608   : > { %v3139_v51 = vsel %vm3138_vm3, %v4148_v18, %v3135_v49 }
0x1609   : > { %v3140_v52 = vmul.f32 %v3139_v51, %v5724_v63  ;;  %v3236_v63 = vld [vmem:[%s5888_s7 + $0x90] sm:$0xff] }
0x160a   : > { %3287 = vmatpush.msrb.mxu3 %v3236_v63 }
0x160b   : > { %v3145_v54 = vmul.f32 %v4085_v23, %v3140_v52 }
0x160c   : > { %3288 = vmatpush.msrb.mxu3 %v3235_v1 }
0x160d   : > { %v3150_v55 = vadd.f32 %v4086_v53, %v3145_v54 }
0x160e   : > { %3289 = vmatpush.msrb.mxu3 %v3234_v2 }
0x160f   : > { %3798 = vmatmul.msk.f32.vlgmr.msrb.gmra.mxu1 %vm1565_vm2, %v3150_v55  ;;  %3799 = vmatmul.msk.f32.vlgmr.msra.gmra.mxu2 %vm1565_vm2, %v3150_v55 }
0x168c   : > { %v3193_v4 = vpop.f32.mrf.mxu1 }
0x168d   : > { %v3194_v5 = vadd.f32 %v3193_v4, %v3169_v48 }
0x168f   : > { %v3216_v6 = vmax.f32 %v3194_v5, 0.0 }
0x1691   : > { %3270 = vmatmul.f32.vlgmr.msra.gmra.mxu0 %v3216_v6 }
0x1692   : > { %v3213_v9 = vpop.f32.mrf.mxu2 }
0x1693   : > { %v3214_v10 = vadd.f32 %v3213_v9, %v3170_v8 }
0x1695   : > { %v3217_v11 = vmax.f32 %v3214_v10, 0.0 }
0x1697   : > { %3290 = vmatmul.f32.vlgmr.msrb.gmra.mxu3 %v3217_v11 }
0x170e   : > { %v3271_v13 = vpop.f32.mrf.mxu0 }
0x170f   : > { %v3272_v14 = vadd.f32 %v4087_v12, %v3271_v13 }
0x171a   : > { %v3291_v15 = vpop.f32.mrf.mxu3 }
0x171b   : > { %v3292_v16 = vadd.f32 %v3291_v15, %v3272_v14 }
0x171d   : > { %v3294_v0 = vadd.f32 %v3292_v16, %v3150_v55 }
0x171f   : > { %v3295_v17 = vsel %vm1565_vm2, %v3294_v0, 0.0 }
0x1720   : > { %3296 = vadd.xlane.f32.xlu1 %v3295_v17 }
0x1793   : > { %v3297_v19 = vpop.xlane.xlu1 %3296 }
0x1794   : > { %v3298_v20 = vmul.f32 %v3297_v19, %v5515_v50 }
0x1796   : > { %v3299_v22 = vsub.f32 %v3294_v0, %v3298_v20 }
0x1798   : > { %v3300_v60 = vmul.f32 %v3299_v22, %v3299_v22 }
0x179a   : > { %v3301_v45 = vsel %vm1565_vm2, %v3300_v60, 0.0 }
0x179b   : > { %3302 = vadd.xlane.f32.xlu2 %v3301_v45 }
0x180e   : > { %v3303_v31 = vpop.xlane.xlu2 %3302 }
0x180f   : > { %v3304_v32 = vmul.f32 %v3303_v31, %v5515_v50  ;;  %v4090_v50 = vld [vmem:[%s5105_s27] ss:$0 sm:$0xff] }
0x1811   : > { %v3305_v33 = vadd.f32 1e-05, %v3304_v32 }
0x1813   : > { %4149 = vrsqrt.f32 %v3305_v33  ;;  %vm3312_vm5 = vweird.f32 %v3305_v33 }
0x1819   : > { %v4150_v34 = vpop.eup %4149 }
0x181a   : > { %v3307_v35 = vmul.f32 %v4150_v34, %v3305_v33  ;;  %vm3313_vm4 = vweird.f32 %v4150_v34 }
0x181b   : > { %vm3314_vm6 = vmor %vm3312_vm5, %vm3313_vm4 }
0x181c   : > { %v3308_v36 = vmul.f32 %v4150_v34, %v3307_v35 }
0x181e   : > { %v3309_v18 = vmul.f32 0.5, %v3308_v36 }
0x1820   : > { %v3310_v37 = vsub.f32 1.5, %v3309_v18 }
0x1822   : > { %v3311_v38 = vmul.f32 %v4150_v34, %v3310_v37 }
0x1824   : > { %v3315_v40 = vsel %vm3314_vm6, %v4150_v34, %v3311_v38 }
0x1825   : > { %v3316_v41 = vmul.f32 %v3315_v40, %v3299_v22 }
0x1827   : > { %v3321_v43 = vmul.f32 %v4088_v39, %v3316_v41 }
0x1829   : > { %v3326_v44 = vadd.f32 %v4089_v42, %v3321_v43 }
0x182b   : > { %3800 = vmatmul.msk.f32.vlgmr.msra.gmra.mxu1 %vm1565_vm2, %v3326_v44 }
0x18a8   : > { %v3359_v7 = vpop.f32.mrf.mxu1 }
0x18a9   : > { %v3360_v46 = vadd.f32 %v4090_v50, %v3359_v7 }
0x18ab   : > { %v3801_v47 = vmul.f32 -1.442695, %v3360_v46 }
0x18ad   : > { %4151 = vpow2.f32 %v3801_v47 }
0x18b3   : > { %v4152_v49 = vpop.eup %4151 }
0x18b4   : > { %v3365_v23 = vadd.f32 1.0, %v4152_v49 }
0x18b6   : > { %4153 = vrcp.f32 %v3365_v23  ;;  %v3377_v54 = vand.u32 2147483648, %v3365_v23  ;;  %v3375_v56 = vand.u32 2147483647, %v3365_v23  ;;  %vm3371_vm8 = vweird.f32 %v3365_v23 }
0x18b8   : > { %v3378_v58 = vor.u32 1.1754944e-38, %v3377_v54  ;;  %vm3376_vm9 = vcmp.eq.f32.partialorder %v3375_v56, 8.507059e+37 }
0x18bc   : > { %v4154_v51 = vpop.eup %4153 }
0x18bd   : > { %v3367_v52 = vmul.f32 %v4154_v51, %v3365_v23  ;;  %vm3372_vm7 = vweird.f32 %v4154_v51 }
0x18be   : > { %vm3373_vm2 = vmor %vm3371_vm8, %vm3372_vm7 }
0x18bf   : > { %v3368_v53 = vsub.f32 1.0, %v3367_v52 }
0x18c1   : > { %v3369_v55 = vmul.f32 %v4154_v51, %v3368_v53 }
0x18c3   : > { %v3370_v57 = vadd.f32 %v4154_v51, %v3369_v55 }
0x18c5   : > { %v3374_v59 = vsel %vm3373_vm2, %v4154_v51, %v3370_v57 }
0x18c6   : > { %v3379_v61 = vsel %vm3376_vm9, %v3378_v58, %v3374_v59 }
0x18c7   : > { %3381 = vst.msk [vmem:[%s1505_s22] sm:$0xff] %vm1512_vm1, %v3379_v61 }
0x18c8 PF: > { %s5894_s1 = sld [smem:[#allocation74_spill]] }
0x18ce   : > { %s100_s22 = sadd.s32 1, %s5894_s1  }
0x18cf   : > { %p97_p2 = scmp.ge.s32.totalorder %s100_s22, 4  }
0x18d1   :  { %99 = sbr.rel (!%p97_p2) target bundleno = 87 (0x57), region = 333 }
0x18d6   :  { %3401 = vsyncpa [#allocation3], 1 }
0x18d7   :  { %3403 = vsyncpa [#allocation3 + $0x1], 1 }
0x18d8   :  { %3404 = vsyncpa [#allocation5], 1 }
0x18d9   :  { %3405 = vsyncpa [#allocation8], 1 }
0x18da   :  { %3406 = vsyncpa [#allocation11], 1 }
0x18db   :  { %3407 = vsyncpa [#allocation14], 1 }
0x18dc   :  { %3408 = vsyncpa [#allocation17], 1 }
0x18dd   :  { %3409 = vsyncpa [#allocation20], 1 }
0x18de   :  { %3410 = vsyncpa [#allocation23], 1 }
0x18df   :  { %3411 = vsyncpa [#allocation26], 1 }
0x18e0   :  { %3412 = vsyncpa [#allocation29], 1 }
0x18e1   :  { %3413 = vsyncpa [#allocation32], 1 }

</bundles_post_ra>
